<compile_context>
chip_gen: v7x
topology: tpu7x:2x2x1
jax: 0.10.0
libtpu: 0.0.40
codegen_flags: <defaults>
</compile_context>

<pallas_src>
import functools
import math

import jax
import jax.numpy as jnp
from jax.experimental import pallas as pl
from jax.experimental.pallas import tpu as pltpu


# ------------------------- packed small-vector layout -------------------------

def _vec_layout(num_enc, num_dec):
    """Row order of the packed (n,128) bias / LayerNorm-param slab."""
    names = ['yolo_b', 'pt_b', 'cls_b']
    for i in range(num_enc):
        names += [f'enc{i}_{n}' for n in
                  ('bq', 'bk', 'bv', 'bo', 'n1g', 'n1b', 'b2', 'n2g', 'n2b')]
    for i in range(num_dec):
        names += [f'dec{i}_{n}' for n in
                  ('sa_b', 'n1g', 'n1b', 'ca_bq', 'ca_bk', 'ca_bv', 'ca_bo',
                   'n2g', 'n2b', 'b2', 'n3g', 'n3b')]
    return names


# ------------------------------ fused kernel ------------------------------

def _fused_forward_kernel(nhead,
                          obj_ref, pt_ref, vec_ref, ffnb_ref, wsmall_ref,
                          enc_w_hbm, dec_w_hbm, w2_hbm,
                          o_ref,
                          enc_w_buf, dec_w_buf, w2_buf,
                          sem_enc, sem_dec, sem_w2):
    f32, bf16 = jnp.float32, jnp.bfloat16
    E = vec_ref.shape[1]                 # embed dim (lane-sized, 128)
    FEAT = obj_ref.shape[1]              # 640
    PTR = pt_ref.shape[1]                # padded pointing dim (128)
    FFN = ffnb_ref.shape[1]              # feed-forward dim
    num_enc = enc_w_buf.shape[0]
    num_dec = dec_w_buf.shape[0]
    Dh = E // nhead
    scale = 1.0 / math.sqrt(Dh)
    vrow = {n: r for r, n in enumerate(_vec_layout(num_enc, num_dec))}

    # ---- kick off all per-layer weight DMAs (HBM -> VMEM) in use order; ----
    # ---- wait lazily right before each layer so compute hides the stream ----
    def _start(src, dst, sem):
        cp = pltpu.make_async_copy(src, dst, sem)
        cp.start()
        return cp

    enc_cp, encw2_cp, dec_cp, decw2_cp = [], [], [], []
    for i in range(num_enc):
        enc_cp.append(_start(enc_w_hbm.at[i], enc_w_buf.at[i], sem_enc.at[i]))
        encw2_cp.append(_start(w2_hbm.at[i], w2_buf.at[i], sem_w2.at[i]))
    for i in range(num_dec):
        dec_cp.append(_start(dec_w_hbm.at[i], dec_w_buf.at[i], sem_dec.at[i]))
        decw2_cp.append(_start(w2_hbm.at[num_enc + i], w2_buf.at[num_enc + i],
                               sem_w2.at[num_enc + i]))

    # ---- helpers ----
    def vec(name):                       # (1, E) f32 bias / LN-param row
        r = vrow[name]
        return vec_ref[r:r + 1, :]

    def mm(x, w, b=None):                # bf16 operands, f32 accumulation
        y = jnp.dot(x.astype(bf16), w, preferred_element_type=f32)
        return y if b is None else y + b

    def norml(x):                        # LayerNorm core (eps=1e-5), no affine
        mu = jnp.mean(x, axis=-1, keepdims=True)
        xc = x - mu
        var = jnp.mean(xc * xc, axis=-1, keepdims=True)
        return xc * jax.lax.rsqrt(var + 1e-5)

    def ln(x, g, b):
        return norml(x) * g + b

    # Per-head lane masks (built once): head h owns lanes [h*Dh, (h+1)*Dh).
    lane = jax.lax.broadcasted_iota(jnp.int32, (1, E), 1)
    hmask = [((lane >= h * Dh) & (lane < (h + 1) * Dh)).astype(f32)
             for h in range(nhead)]

    def attend(q, k, v):
        # q: (Lq, E), k/v: (Lk, E).  Heads via lane masks + sublane stacking:
        # no sub-128 lane slices, no lane concatenates, ONE softmax for all
        # heads, approximate-reciprocal normalization on the EUP.
        Lq = q.shape[0]
        qs = jnp.concatenate([q * hmask[h] for h in range(nhead)], axis=0)
        s = jax.lax.dot_general(qs.astype(bf16), k.astype(bf16),
                                (((1,), (1,)), ((), ())),
                                preferred_element_type=f32) * scale  # (nhead*Lq, Lk)
        m = jnp.max(s, axis=-1, keepdims=True)
        p = jnp.exp(s - m)
        p = p * pl.reciprocal(jnp.sum(p, axis=-1, keepdims=True), approx=True)
        o = None
        for h in range(nhead):
            oh = jnp.dot(p[h * Lq:(h + 1) * Lq, :].astype(bf16),
                         (v * hmask[h]).astype(bf16),
                         preferred_element_type=f32)   # (Lq, E), head-h lanes only
            o = oh if o is None else o + oh
        return o

    # ---- input projections (small weights already resident in VMEM) ----
    yolo_w = wsmall_ref[0:FEAT, :]                       # (FEAT, E) bf16
    pt_w = wsmall_ref[FEAT:FEAT + PTR, :]                # (PTR, E)  bf16
    cls_w = wsmall_ref[FEAT + PTR:FEAT + PTR + E, :]     # (E, E)    bf16 (LN-folded)
    mem = mm(obj_ref[...], yolo_w, vec('yolo_b'))        # (S, E)
    y = mm(pt_ref[...], pt_w, vec('pt_b'))               # (1, E)

    # ---- encoder stack (post-norm layers, ReLU FFN) ----
    for i in range(num_enc):
        enc_cp[i].wait()
        wqkv = enc_w_buf[i, :, 0:3 * E]
        wo = enc_w_buf[i, :, 3 * E:4 * E]
        w1 = enc_w_buf[i, :, 4 * E:4 * E + FFN]
        qkv = mm(mem, wqkv)                              # (S, 3E)
        q = qkv[:, 0:E] + vec(f'enc{i}_bq')
        k = qkv[:, E:2 * E] + vec(f'enc{i}_bk')
        v = qkv[:, 2 * E:3 * E] + vec(f'enc{i}_bv')
        a = mm(attend(q, k, v), wo, vec(f'enc{i}_bo'))
        x = ln(mem + a, vec(f'enc{i}_n1g'), vec(f'enc{i}_n1b'))
        encw2_cp[i].wait()
        h = jnp.maximum(mm(x, w1, ffnb_ref[i:i + 1, :]), 0.0)
        f = mm(h, w2_buf[i], vec(f'enc{i}_b2'))
        mem = ln(x + f, vec(f'enc{i}_n2g'), vec(f'enc{i}_n2b'))

    # final encoder LayerNorm (affine folded into each decoder ca_wkv / bkv)
    mem = norml(mem)

    # ---- decoder stack (post-norm layers; length-1 self-attn pre-folded) ----
    for i in range(num_dec):
        dec_cp[i].wait()
        sa_w = dec_w_buf[i, :, 0:E]
        ca_wq = dec_w_buf[i, :, E:2 * E]
        ca_wkv = dec_w_buf[i, :, 2 * E:4 * E]
        ca_wo = dec_w_buf[i, :, 4 * E:5 * E]
        w1 = dec_w_buf[i, :, 5 * E:5 * E + FFN]
        a = mm(y, sa_w, vec(f'dec{i}_sa_b'))
        y = ln(y + a, vec(f'dec{i}_n1g'), vec(f'dec{i}_n1b'))
        q = mm(y, ca_wq, vec(f'dec{i}_ca_bq'))           # (1, E)
        kv = mm(mem, ca_wkv)                             # (S, 2E)
        k = kv[:, 0:E] + vec(f'dec{i}_ca_bk')
        v = kv[:, E:2 * E] + vec(f'dec{i}_ca_bv')
        c = mm(attend(q, k, v), ca_wo, vec(f'dec{i}_ca_bo'))
        y = ln(y + c, vec(f'dec{i}_n2g'), vec(f'dec{i}_n2b'))
        decw2_cp[i].wait()
        h = jnp.maximum(mm(y, w1, ffnb_ref[num_enc + i:num_enc + i + 1, :]), 0.0)
        f = mm(h, w2_buf[num_enc + i], vec(f'dec{i}_b2'))
        y = ln(y + f, vec(f'dec{i}_n3g'), vec(f'dec{i}_n3b'))

    # final decoder LayerNorm (affine folded into cls_w / cls_b)
    y = norml(y)

    # ---- classifier (lane-dense padded 128-wide output store) ----
    o_ref[...] = mm(y, cls_w, vec('cls_b')).astype(o_ref.dtype)


# ------------------------------ jitted wrapper ------------------------------

@functools.partial(jax.jit, static_argnames=('nhead', 'num_classes'))
def transformer_pointing_classifier(object_features, pointing_vector, prepared,
                                    *, nhead, num_classes):
    """object_features: (S, 640); pointing_vector: (3,) -> logits (num_classes,)"""
    E = prepared['vec128'].shape[1]
    FEAT = object_features.shape[1]
    num_enc = prepared['enc_w'].shape[0]
    num_dec = prepared['dec_w'].shape[0]
    pt_rows = prepared['wsmall'].shape[0] - FEAT - E   # padded contraction dim
    point_dim = pointing_vector.shape[0]

    # Zero-pad the pointing vector once; padded rows of pt_w are zero.
    pv = jnp.zeros((1, pt_rows), jnp.float32).at[0, :point_dim].set(
        pointing_vector.astype(jnp.float32))

    kernel = functools.partial(_fused_forward_kernel, nhead)
    vmem_spec = pl.BlockSpec(memory_space=pltpu.MemorySpace.VMEM)
    hbm_spec = pl.BlockSpec(memory_space=pl.ANY)

    out = pl.pallas_call(
        kernel,
        out_shape=jax.ShapeDtypeStruct((1, E), jnp.float32),
        in_specs=[vmem_spec,   # obj features
                  vmem_spec,   # padded pointing vector
                  vmem_spec,   # packed (n,128) bias / LN-param slab
                  vmem_spec,   # packed (L,FFN) first-FFN-bias slab
                  vmem_spec,   # packed yolo/pt/cls weight slab (bf16)
                  hbm_spec,    # stacked encoder-layer weights (bf16, HBM)
                  hbm_spec,    # stacked decoder-layer weights (bf16, HBM)
                  hbm_spec],   # stacked FFN second-layer weights (bf16, HBM)
        out_specs=vmem_spec,
        scratch_shapes=[
            pltpu.VMEM(prepared['enc_w'].shape, jnp.bfloat16),
            pltpu.VMEM(prepared['dec_w'].shape, jnp.bfloat16),
            pltpu.VMEM(prepared['w2_all'].shape, jnp.bfloat16),
            pltpu.SemaphoreType.DMA((num_enc,)),
            pltpu.SemaphoreType.DMA((num_dec,)),
            pltpu.SemaphoreType.DMA((num_enc + num_dec,)),
        ],
        compiler_params=pltpu.CompilerParams(
            # <2 MiB resident; 32 MiB is safe on v5e/v6e/v7x.
            vmem_limit_bytes=32 * 1024 * 1024),
    )(object_features.astype(jnp.float32), pv,
      prepared['vec128'], prepared['ffn_b1'], prepared['wsmall'],
      prepared['enc_w'], prepared['dec_w'], prepared['w2_all'])
    return out[0, :num_classes]


# ------------------- one-time parameter preparation (host) -------------------

def prepare_params(params, *, lane=128):
    """Transpose / fuse / fold / pack PyTorch-layout params into a few slabs."""
    f32, bf16 = jnp.float32, jnp.bfloat16
    E = params['yolo_proj_w'].shape[0]
    FFN = params['enc_layers'][0]['ff_w1'].shape[0]
    num_enc = len(params['enc_layers'])
    num_dec = len(params['dec_layers'])
    assert E % lane == 0 and E == lane, "this packing assumes embed_dim == 128"

    def t(w):                      # PyTorch (out, in) -> (in, out)
        return jnp.asarray(w, f32).T

    def r1(b):                     # bias -> (1, N)
        return jnp.asarray(b, f32).reshape(1, -1)

    vecs = {}
    vecs['yolo_b'] = r1(params['yolo_proj_b'])
    vecs['pt_b'] = r1(params['point_proj_b'])

    # ---- encoder layer slabs:  [ wqkv | wo | w1 ]  (E, 4E+FFN) ----
    enc_rows = []
    for i, lp in enumerate(params['enc_layers']):
        sa = lp['self_attn']
        wqkv = jnp.concatenate([t(sa['wq']), t(sa['wk']), t(sa['wv'])], axis=1)
        enc_rows.append(jnp.concatenate([wqkv, t(sa['wo']), t(lp['ff_w1'])],
                                        axis=1))
        vecs[f'enc{i}_bq'] = r1(sa['bq']); vecs[f'enc{i}_bk'] = r1(sa['bk'])
        vecs[f'enc{i}_bv'] = r1(sa['bv']); vecs[f'enc{i}_bo'] = r1(sa['bo'])
        vecs[f'enc{i}_n1g'] = r1(lp['norm1_g']); vecs[f'enc{i}_n1b'] = r1(lp['norm1_b'])
        vecs[f'enc{i}_b2'] = r1(lp['ff_b2'])
        vecs[f'enc{i}_n2g'] = r1(lp['norm2_g']); vecs[f'enc{i}_n2b'] = r1(lp['norm2_b'])
    enc_w = jnp.stack(enc_rows).astype(bf16)                       # (Ne, E, 4E+FFN)

    # Final encoder LayerNorm affine is folded into every decoder ca_wkv/bkv.
    enc_g, enc_b = r1(params['enc_norm_g']), r1(params['enc_norm_b'])

    # ---- decoder layer slabs:  [ sa_w | ca_wq | ca_wkv | ca_wo | w1 ] ----
    dec_rows = []
    for i, lp in enumerate(params['dec_layers']):
        sa, ca = lp['self_attn'], lp['cross_attn']
        # Exact fold of length-1-target self-attention.
        sa_w = t(sa['wv']) @ t(sa['wo'])                           # (E, E)
        sa_b = r1(sa['bv']) @ t(sa['wo']) + r1(sa['bo'])           # (1, E)
        wkv = jnp.concatenate([t(ca['wk']), t(ca['wv'])], axis=1)  # (E, 2E)
        bkv = jnp.concatenate([r1(ca['bk']), r1(ca['bv'])], axis=1)
        wkv_f = wkv * enc_g.reshape(-1, 1)                         # fold LN gamma
        bkv_f = enc_b @ wkv + bkv                                  # fold LN beta
        dec_rows.append(jnp.concatenate(
            [sa_w, t(ca['wq']), wkv_f, t(ca['wo']), t(lp['ff_w1'])], axis=1))
        vecs[f'dec{i}_sa_b'] = sa_b
        vecs[f'dec{i}_n1g'] = r1(lp['norm1_g']); vecs[f'dec{i}_n1b'] = r1(lp['norm1_b'])
        vecs[f'dec{i}_ca_bq'] = r1(ca['bq'])
        vecs[f'dec{i}_ca_bk'] = bkv_f[:, :E]; vecs[f'dec{i}_ca_bv'] = bkv_f[:, E:]
        vecs[f'dec{i}_ca_bo'] = r1(ca['bo'])
        vecs[f'dec{i}_n2g'] = r1(lp['norm2_g']); vecs[f'dec{i}_n2b'] = r1(lp['norm2_b'])
        vecs[f'dec{i}_b2'] = r1(lp['ff_b2'])
        vecs[f'dec{i}_n3g'] = r1(lp['norm3_g']); vecs[f'dec{i}_n3b'] = r1(lp['norm3_b'])
    dec_w = jnp.stack(dec_rows).astype(bf16)                       # (Nd, E, 5E+FFN)

    # ---- FFN second-layer weights / first-layer biases (enc..., dec...) ----
    all_layers = list(params['enc_layers']) + list(params['dec_layers'])
    w2_all = jnp.stack([t(lp['ff_w2']) for lp in all_layers]).astype(bf16)
    ffn_b1 = jnp.concatenate([r1(lp['ff_b1']) for lp in all_layers], axis=0)

    # ---- small-weight slab: yolo proj, padded pointing proj, folded cls ----
    P = params['point_proj_w'].shape[1]
    pt_w_pad = jnp.zeros((lane, E), f32).at[:P, :].set(t(params['point_proj_w']))
    C = params['cls_w'].shape[0]
    cpad = ((C + lane - 1) // lane) * lane
    assert cpad == E
    cls_w_pad = jnp.zeros((E, cpad), f32).at[:, :C].set(t(params['cls_w']))
    cls_b_pad = jnp.zeros((1, cpad), f32).at[0, :C].set(
        jnp.asarray(params['cls_b'], f32))
    dec_g, dec_b = r1(params['dec_norm_g']), r1(params['dec_norm_b'])
    cls_w_f = cls_w_pad * dec_g.reshape(-1, 1)          # fold final dec LN gamma
    cls_b_f = dec_b @ cls_w_pad + cls_b_pad             # fold final dec LN beta
    vecs['cls_b'] = cls_b_f
    wsmall = jnp.concatenate([t(params['yolo_proj_w']), pt_w_pad, cls_w_f],
                             axis=0).astype(bf16)       # (FEAT+lane+E, E)

    names = _vec_layout(num_enc, num_dec)
    assert all(vecs[n].shape == (1, E) for n in names)
    vec128 = jnp.concatenate([vecs[n] for n in names], axis=0)     # (n_vec, E) f32

    return dict(vec128=vec128, ffn_b1=ffn_b1, wsmall=wsmall,
                enc_w=enc_w, dec_w=dec_w, w2_all=w2_all)


# ------------------------- deterministic parameters -------------------------

def init_params(key, *, feat_dim, point_dim, embed_dim, ffn_dim,
                num_enc, num_dec, num_classes):
    keys = iter(jax.random.split(key, 4096))

    def lin(out_f, in_f):
        bound = 1.0 / (in_f ** 0.5)
        w = jax.random.uniform(next(keys), (out_f, in_f), jnp.float32,
                               -bound, bound)
        b = jax.random.uniform(next(keys), (out_f,), jnp.float32,
                               -bound, bound)
        return w, b

    def ln():
        return (jnp.ones((embed_dim,), jnp.float32),
                jnp.zeros((embed_dim,), jnp.float32))

    def mha():
        wq, bq = lin(embed_dim, embed_dim)
        wk, bk = lin(embed_dim, embed_dim)
        wv, bv = lin(embed_dim, embed_dim)
        wo, bo = lin(embed_dim, embed_dim)
        return dict(wq=wq, bq=bq, wk=wk, bk=bk, wv=wv, bv=bv, wo=wo, bo=bo)

    def enc_layer():
        n1g, n1b = ln(); n2g, n2b = ln()
        w1, b1 = lin(ffn_dim, embed_dim)
        w2, b2 = lin(embed_dim, ffn_dim)
        return dict(self_attn=mha(), norm1_g=n1g, norm1_b=n1b,
                    ff_w1=w1, ff_b1=b1, ff_w2=w2, ff_b2=b2,
                    norm2_g=n2g, norm2_b=n2b)

    def dec_layer():
        n1g, n1b = ln(); n2g, n2b = ln(); n3g, n3b = ln()
        w1, b1 = lin(ffn_dim, embed_dim)
        w2, b2 = lin(embed_dim, ffn_dim)
        return dict(self_attn=mha(), norm1_g=n1g, norm1_b=n1b,
                    cross_attn=mha(), norm2_g=n2g, norm2_b=n2b,
                    ff_w1=w1, ff_b1=b1, ff_w2=w2, ff_b2=b2,
                    norm3_g=n3g, norm3_b=n3b)

    yolo_w, yolo_b = lin(embed_dim, feat_dim)
    pt_w, pt_b = lin(embed_dim, point_dim)
    cls_w, cls_b = lin(num_classes, embed_dim)
    enc_ng, enc_nb = ln()
    dec_ng, dec_nb = ln()

    return dict(
        yolo_proj_w=yolo_w, yolo_proj_b=yolo_b,
        point_proj_w=pt_w, point_proj_b=pt_b,
        cls_w=cls_w, cls_b=cls_b,
        enc_layers=[enc_layer() for _ in range(num_enc)],
        dec_layers=[dec_layer() for _ in range(num_dec)],
        enc_norm_g=enc_ng, enc_norm_b=enc_nb,
        dec_norm_g=dec_ng, dec_norm_b=dec_nb,
    )


# ----------------------------------- main -----------------------------------

if __name__ == "__main__":
    # Small, module-consistent configuration.
    NUM_OBJECTS = 8          # number of YOLO boxes
    FEAT_DIM = 640           # per-box feature dim (yolo_feature_proj input)
    POINT_DIM = 3            # pointing vector dim
    EMBED_DIM = 128          # d_model (scaled down from 256)
    NHEAD = 4
    FFN_DIM = 256            # dim_feedforward (scaled down from 2048)
    NUM_ENC = 2
    NUM_DEC = 2
    NUM_CLASSES = 10

    root = jax.random.PRNGKey(0)
    k_params, k_feat, k_point = jax.random.split(root, 3)

    raw_params = init_params(
        k_params, feat_dim=FEAT_DIM, point_dim=POINT_DIM, embed_dim=EMBED_DIM,
        ffn_dim=FFN_DIM, num_enc=NUM_ENC, num_dec=NUM_DEC,
        num_classes=NUM_CLASSES)
    prepared = prepare_params(raw_params)    # one-time transpose/fuse/fold/pack

    object_features = jax.random.normal(k_feat, (NUM_OBJECTS, FEAT_DIM),
                                        jnp.float32)
    pointing_vector = jax.random.normal(k_point, (POINT_DIM,), jnp.float32)

    logits = transformer_pointing_classifier(
        object_features, pointing_vector, prepared,
        nhead=NHEAD, num_classes=NUM_CLASSES)
    logits = jax.block_until_ready(logits)

    assert logits.shape == (NUM_CLASSES,)
    assert bool(jnp.all(jnp.isfinite(logits)))
    print("KERNEL_OK")
</pallas_src>

<mosaic_0001>
module attributes {stable_mosaic.version = 11 : i64} {
  func.func @_fused_forward_kernel(%arg0: memref<8x640xf32, #tpu.memory_space<vmem>>, %arg1: memref<1x128xf32, #tpu.memory_space<vmem>>, %arg2: memref<45x128xf32, #tpu.memory_space<vmem>>, %arg3: memref<4x256xf32, #tpu.memory_space<vmem>>, %arg4: memref<896x128xbf16, #tpu.memory_space<vmem>>, %arg5: memref<2x128x768xbf16, #tpu.memory_space<any>>, %arg6: memref<2x128x896xbf16, #tpu.memory_space<any>>, %arg7: memref<4x256x128xbf16, #tpu.memory_space<any>>, %arg8: memref<1x128xf32, #tpu.memory_space<vmem>>, %arg9: memref<2x128x768xbf16, #tpu.memory_space<vmem>>, %arg10: memref<2x128x896xbf16, #tpu.memory_space<vmem>>, %arg11: memref<4x256x128xbf16, #tpu.memory_space<vmem>>, %arg12: memref<2x!tpu.dma_semaphore, #tpu.memory_space<semaphore_mem>>, %arg13: memref<2x!tpu.dma_semaphore, #tpu.memory_space<semaphore_mem>>, %arg14: memref<4x!tpu.dma_semaphore, #tpu.memory_space<semaphore_mem>>) attributes {dimension_semantics = [], scalar_prefetch = 0 : i64, scratch_operands = 6 : i64, tpu.core_type = #tpu.core_type<tc>} {
    %c0_i32 = arith.constant 0 : i32
    %c0_i32_0 = arith.constant 0 : i32
    %c0_i32_1 = arith.constant 0 : i32
    %c0_i32_2 = arith.constant 0 : i32
    %c0_i32_3 = arith.constant 0 : i32
    %0 = tpu.memref_slice %arg5[%c0_i32, %c0_i32_2, %c0_i32_3] : memref<2x128x768xbf16, #tpu.memory_space<any>> -> memref<1x128x768xbf16, #tpu.memory_space<any>>
    %1 = tpu.memref_squeeze %0 : memref<1x128x768xbf16, #tpu.memory_space<any>> -> memref<128x768xbf16, #tpu.memory_space<any>>
    %c0_i32_4 = arith.constant 0 : i32
    %c0_i32_5 = arith.constant 0 : i32
    %2 = tpu.memref_slice %arg9[%c0_i32_0, %c0_i32_4, %c0_i32_5] : memref<2x128x768xbf16, #tpu.memory_space<vmem>> -> memref<1x128x768xbf16, #tpu.memory_space<vmem>>
    %3 = tpu.memref_squeeze %2 : memref<1x128x768xbf16, #tpu.memory_space<vmem>> -> memref<128x768xbf16, #tpu.memory_space<vmem>>
    %4 = tpu.memref_slice %arg12[%c0_i32_1] : memref<2x!tpu.dma_semaphore, #tpu.memory_space<semaphore_mem>> -> memref<1x!tpu.dma_semaphore, #tpu.memory_space<semaphore_mem>>
    %5 = tpu.memref_squeeze %4 : memref<1x!tpu.dma_semaphore, #tpu.memory_space<semaphore_mem>> -> memref<!tpu.dma_semaphore, #tpu.memory_space<semaphore_mem>>
    tpu.enqueue_dma source(%1 : memref<128x768xbf16, #tpu.memory_space<any>>) target(%3 : memref<128x768xbf16, #tpu.memory_space<vmem>>) target_semaphore(%5 : memref<!tpu.dma_semaphore, #tpu.memory_space<semaphore_mem>>)
    %c0_i32_6 = arith.constant 0 : i32
    %c0_i32_7 = arith.constant 0 : i32
    %c0_i32_8 = arith.constant 0 : i32
    %c0_i32_9 = arith.constant 0 : i32
    %c0_i32_10 = arith.constant 0 : i32
    %6 = tpu.memref_slice %arg7[%c0_i32_6, %c0_i32_9, %c0_i32_10] : memref<4x256x128xbf16, #tpu.memory_space<any>> -> memref<1x256x128xbf16, #tpu.memory_space<any>>
    %7 = tpu.memref_squeeze %6 : memref<1x256x128xbf16, #tpu.memory_space<any>> -> memref<256x128xbf16, #tpu.memory_space<any>>
    %c0_i32_11 = arith.constant 0 : i32
    %c0_i32_12 = arith.constant 0 : i32
    %8 = tpu.memref_slice %arg11[%c0_i32_7, %c0_i32_11, %c0_i32_12] : memref<4x256x128xbf16, #tpu.memory_space<vmem>> -> memref<1x256x128xbf16, #tpu.memory_space<vmem>>
    %9 = tpu.memref_squeeze %8 : memref<1x256x128xbf16, #tpu.memory_space<vmem>> -> memref<256x128xbf16, #tpu.memory_space<vmem>>
    %10 = tpu.memref_slice %arg14[%c0_i32_8] : memref<4x!tpu.dma_semaphore, #tpu.memory_space<semaphore_mem>> -> memref<1x!tpu.dma_semaphore, #tpu.memory_space<semaphore_mem>>
    %11 = tpu.memref_squeeze %10 : memref<1x!tpu.dma_semaphore, #tpu.memory_space<semaphore_mem>> -> memref<!tpu.dma_semaphore, #tpu.memory_space<semaphore_mem>>
    tpu.enqueue_dma source(%7 : memref<256x128xbf16, #tpu.memory_space<any>>) target(%9 : memref<256x128xbf16, #tpu.memory_space<vmem>>) target_semaphore(%11 : memref<!tpu.dma_semaphore, #tpu.memory_space<semaphore_mem>>)
    %c1_i32 = arith.constant 1 : i32
    %c1_i32_13 = arith.constant 1 : i32
    %c1_i32_14 = arith.constant 1 : i32
    %c0_i32_15 = arith.constant 0 : i32
    %c0_i32_16 = arith.constant 0 : i32
    %12 = tpu.memref_slice %arg5[%c1_i32, %c0_i32_15, %c0_i32_16] : memref<2x128x768xbf16, #tpu.memory_space<any>> -> memref<1x128x768xbf16, #tpu.memory_space<any>>
    %13 = tpu.memref_squeeze %12 : memref<1x128x768xbf16, #tpu.memory_space<any>> -> memref<128x768xbf16, #tpu.memory_space<any>>
    %c0_i32_17 = arith.constant 0 : i32
    %c0_i32_18 = arith.constant 0 : i32
    %14 = tpu.memref_slice %arg9[%c1_i32_13, %c0_i32_17, %c0_i32_18] : memref<2x128x768xbf16, #tpu.memory_space<vmem>> -> memref<1x128x768xbf16, #tpu.memory_space<vmem>>
    %15 = tpu.memref_squeeze %14 : memref<1x128x768xbf16, #tpu.memory_space<vmem>> -> memref<128x768xbf16, #tpu.memory_space<vmem>>
    %16 = tpu.memref_slice %arg12[%c1_i32_14] : memref<2x!tpu.dma_semaphore, #tpu.memory_space<semaphore_mem>> -> memref<1x!tpu.dma_semaphore, #tpu.memory_space<semaphore_mem>>
    %17 = tpu.memref_squeeze %16 : memref<1x!tpu.dma_semaphore, #tpu.memory_space<semaphore_mem>> -> memref<!tpu.dma_semaphore, #tpu.memory_space<semaphore_mem>>
    tpu.enqueue_dma source(%13 : memref<128x768xbf16, #tpu.memory_space<any>>) target(%15 : memref<128x768xbf16, #tpu.memory_space<vmem>>) target_semaphore(%17 : memref<!tpu.dma_semaphore, #tpu.memory_space<semaphore_mem>>)
    %c1_i32_19 = arith.constant 1 : i32
    %c1_i32_20 = arith.constant 1 : i32
    %c1_i32_21 = arith.constant 1 : i32
    %c0_i32_22 = arith.constant 0 : i32
    %c0_i32_23 = arith.constant 0 : i32
    %18 = tpu.memref_slice %arg7[%c1_i32_19, %c0_i32_22, %c0_i32_23] : memref<4x256x128xbf16, #tpu.memory_space<any>> -> memref<1x256x128xbf16, #tpu.memory_space<any>>
    %19 = tpu.memref_squeeze %18 : memref<1x256x128xbf16, #tpu.memory_space<any>> -> memref<256x128xbf16, #tpu.memory_space<any>>
    %c0_i32_24 = arith.constant 0 : i32
    %c0_i32_25 = arith.constant 0 : i32
    %20 = tpu.memref_slice %arg11[%c1_i32_20, %c0_i32_24, %c0_i32_25] : memref<4x256x128xbf16, #tpu.memory_space<vmem>> -> memref<1x256x128xbf16, #tpu.memory_space<vmem>>
    %21 = tpu.memref_squeeze %20 : memref<1x256x128xbf16, #tpu.memory_space<vmem>> -> memref<256x128xbf16, #tpu.memory_space<vmem>>
    %22 = tpu.memref_slice %arg14[%c1_i32_21] : memref<4x!tpu.dma_semaphore, #tpu.memory_space<semaphore_mem>> -> memref<1x!tpu.dma_semaphore, #tpu.memory_space<semaphore_mem>>
    %23 = tpu.memref_squeeze %22 : memref<1x!tpu.dma_semaphore, #tpu.memory_space<semaphore_mem>> -> memref<!tpu.dma_semaphore, #tpu.memory_space<semaphore_mem>>
    tpu.enqueue_dma source(%19 : memref<256x128xbf16, #tpu.memory_space<any>>) target(%21 : memref<256x128xbf16, #tpu.memory_space<vmem>>) target_semaphore(%23 : memref<!tpu.dma_semaphore, #tpu.memory_space<semaphore_mem>>)
    %c0_i32_26 = arith.constant 0 : i32
    %c0_i32_27 = arith.constant 0 : i32
    %c0_i32_28 = arith.constant 0 : i32
    %c0_i32_29 = arith.constant 0 : i32
    %c0_i32_30 = arith.constant 0 : i32
    %24 = tpu.memref_slice %arg6[%c0_i32_26, %c0_i32_29, %c0_i32_30] : memref<2x128x896xbf16, #tpu.memory_space<any>> -> memref<1x128x896xbf16, #tpu.memory_space<any>>
    %25 = tpu.memref_squeeze %24 : memref<1x128x896xbf16, #tpu.memory_space<any>> -> memref<128x896xbf16, #tpu.memory_space<any>>
    %c0_i32_31 = arith.constant 0 : i32
    %c0_i32_32 = arith.constant 0 : i32
    %26 = tpu.memref_slice %arg10[%c0_i32_27, %c0_i32_31, %c0_i32_32] : memref<2x128x896xbf16, #tpu.memory_space<vmem>> -> memref<1x128x896xbf16, #tpu.memory_space<vmem>>
    %27 = tpu.memref_squeeze %26 : memref<1x128x896xbf16, #tpu.memory_space<vmem>> -> memref<128x896xbf16, #tpu.memory_space<vmem>>
    %28 = tpu.memref_slice %arg13[%c0_i32_28] : memref<2x!tpu.dma_semaphore, #tpu.memory_space<semaphore_mem>> -> memref<1x!tpu.dma_semaphore, #tpu.memory_space<semaphore_mem>>
    %29 = tpu.memref_squeeze %28 : memref<1x!tpu.dma_semaphore, #tpu.memory_space<semaphore_mem>> -> memref<!tpu.dma_semaphore, #tpu.memory_space<semaphore_mem>>
    tpu.enqueue_dma source(%25 : memref<128x896xbf16, #tpu.memory_space<any>>) target(%27 : memref<128x896xbf16, #tpu.memory_space<vmem>>) target_semaphore(%29 : memref<!tpu.dma_semaphore, #tpu.memory_space<semaphore_mem>>)
    %c2_i32 = arith.constant 2 : i32
    %c2_i32_33 = arith.constant 2 : i32
    %c2_i32_34 = arith.constant 2 : i32
    %c0_i32_35 = arith.constant 0 : i32
    %c0_i32_36 = arith.constant 0 : i32
    %30 = tpu.memref_slice %arg7[%c2_i32, %c0_i32_35, %c0_i32_36] : memref<4x256x128xbf16, #tpu.memory_space<any>> -> memref<1x256x128xbf16, #tpu.memory_space<any>>
    %31 = tpu.memref_squeeze %30 : memref<1x256x128xbf16, #tpu.memory_space<any>> -> memref<256x128xbf16, #tpu.memory_space<any>>
    %c0_i32_37 = arith.constant 0 : i32
    %c0_i32_38 = arith.constant 0 : i32
    %32 = tpu.memref_slice %arg11[%c2_i32_33, %c0_i32_37, %c0_i32_38] : memref<4x256x128xbf16, #tpu.memory_space<vmem>> -> memref<1x256x128xbf16, #tpu.memory_space<vmem>>
    %33 = tpu.memref_squeeze %32 : memref<1x256x128xbf16, #tpu.memory_space<vmem>> -> memref<256x128xbf16, #tpu.memory_space<vmem>>
    %34 = tpu.memref_slice %arg14[%c2_i32_34] : memref<4x!tpu.dma_semaphore, #tpu.memory_space<semaphore_mem>> -> memref<1x!tpu.dma_semaphore, #tpu.memory_space<semaphore_mem>>
    %35 = tpu.memref_squeeze %34 : memref<1x!tpu.dma_semaphore, #tpu.memory_space<semaphore_mem>> -> memref<!tpu.dma_semaphore, #tpu.memory_space<semaphore_mem>>
    tpu.enqueue_dma source(%31 : memref<256x128xbf16, #tpu.memory_space<any>>) target(%33 : memref<256x128xbf16, #tpu.memory_space<vmem>>) target_semaphore(%35 : memref<!tpu.dma_semaphore, #tpu.memory_space<semaphore_mem>>)
    %c1_i32_39 = arith.constant 1 : i32
    %c1_i32_40 = arith.constant 1 : i32
    %c1_i32_41 = arith.constant 1 : i32
    %c0_i32_42 = arith.constant 0 : i32
    %c0_i32_43 = arith.constant 0 : i32
    %36 = tpu.memref_slice %arg6[%c1_i32_39, %c0_i32_42, %c0_i32_43] : memref<2x128x896xbf16, #tpu.memory_space<any>> -> memref<1x128x896xbf16, #tpu.memory_space<any>>
    %37 = tpu.memref_squeeze %36 : memref<1x128x896xbf16, #tpu.memory_space<any>> -> memref<128x896xbf16, #tpu.memory_space<any>>
    %c0_i32_44 = arith.constant 0 : i32
    %c0_i32_45 = arith.constant 0 : i32
    %38 = tpu.memref_slice %arg10[%c1_i32_40, %c0_i32_44, %c0_i32_45] : memref<2x128x896xbf16, #tpu.memory_space<vmem>> -> memref<1x128x896xbf16, #tpu.memory_space<vmem>>
    %39 = tpu.memref_squeeze %38 : memref<1x128x896xbf16, #tpu.memory_space<vmem>> -> memref<128x896xbf16, #tpu.memory_space<vmem>>
    %40 = tpu.memref_slice %arg13[%c1_i32_41] : memref<2x!tpu.dma_semaphore, #tpu.memory_space<semaphore_mem>> -> memref<1x!tpu.dma_semaphore, #tpu.memory_space<semaphore_mem>>
    %41 = tpu.memref_squeeze %40 : memref<1x!tpu.dma_semaphore, #tpu.memory_space<semaphore_mem>> -> memref<!tpu.dma_semaphore, #tpu.memory_space<semaphore_mem>>
    tpu.enqueue_dma source(%37 : memref<128x896xbf16, #tpu.memory_space<any>>) target(%39 : memref<128x896xbf16, #tpu.memory_space<vmem>>) target_semaphore(%41 : memref<!tpu.dma_semaphore, #tpu.memory_space<semaphore_mem>>)
    %c3_i32 = arith.constant 3 : i32
    %c3_i32_46 = arith.constant 3 : i32
    %c3_i32_47 = arith.constant 3 : i32
    %c0_i32_48 = arith.constant 0 : i32
    %c0_i32_49 = arith.constant 0 : i32
    %42 = tpu.memref_slice %arg7[%c3_i32, %c0_i32_48, %c0_i32_49] : memref<4x256x128xbf16, #tpu.memory_space<any>> -> memref<1x256x128xbf16, #tpu.memory_space<any>>
    %43 = tpu.memref_squeeze %42 : memref<1x256x128xbf16, #tpu.memory_space<any>> -> memref<256x128xbf16, #tpu.memory_space<any>>
    %c0_i32_50 = arith.constant 0 : i32
    %c0_i32_51 = arith.constant 0 : i32
    %44 = tpu.memref_slice %arg11[%c3_i32_46, %c0_i32_50, %c0_i32_51] : memref<4x256x128xbf16, #tpu.memory_space<vmem>> -> memref<1x256x128xbf16, #tpu.memory_space<vmem>>
    %45 = tpu.memref_squeeze %44 : memref<1x256x128xbf16, #tpu.memory_space<vmem>> -> memref<256x128xbf16, #tpu.memory_space<vmem>>
    %46 = tpu.memref_slice %arg14[%c3_i32_47] : memref<4x!tpu.dma_semaphore, #tpu.memory_space<semaphore_mem>> -> memref<1x!tpu.dma_semaphore, #tpu.memory_space<semaphore_mem>>
    %47 = tpu.memref_squeeze %46 : memref<1x!tpu.dma_semaphore, #tpu.memory_space<semaphore_mem>> -> memref<!tpu.dma_semaphore, #tpu.memory_space<semaphore_mem>>
    tpu.enqueue_dma source(%43 : memref<256x128xbf16, #tpu.memory_space<any>>) target(%45 : memref<256x128xbf16, #tpu.memory_space<vmem>>) target_semaphore(%47 : memref<!tpu.dma_semaphore, #tpu.memory_space<semaphore_mem>>)
    %48 = tpu.iota {dimensions = array<i32: 1>} : vector<1x128xi32>
    %c0_i32_52 = arith.constant 0 : i32
    %49 = vector.broadcast %c0_i32_52 : i32 to vector<1x128xi32>
    %50 = arith.cmpi sge, %48, %49 : vector<1x128xi32>
    %c32_i32 = arith.constant 32 : i32
    %51 = vector.broadcast %c32_i32 : i32 to vector<1x128xi32>
    %52 = arith.cmpi slt, %48, %51 : vector<1x128xi32>
    %53 = arith.andi %50, %52 : vector<1x128xi1>
    %54 = arith.extui %53 : vector<1x128xi1> to vector<1x128xi32>
    %55 = arith.sitofp %54 : vector<1x128xi32> to vector<1x128xf32>
    %c32_i32_53 = arith.constant 32 : i32
    %56 = vector.broadcast %c32_i32_53 : i32 to vector<1x128xi32>
    %57 = arith.cmpi sge, %48, %56 : vector<1x128xi32>
    %c64_i32 = arith.constant 64 : i32
    %58 = vector.broadcast %c64_i32 : i32 to vector<1x128xi32>
    %59 = arith.cmpi slt, %48, %58 : vector<1x128xi32>
    %60 = arith.andi %57, %59 : vector<1x128xi1>
    %61 = arith.extui %60 : vector<1x128xi1> to vector<1x128xi32>
    %62 = arith.sitofp %61 : vector<1x128xi32> to vector<1x128xf32>
    %c64_i32_54 = arith.constant 64 : i32
    %63 = vector.broadcast %c64_i32_54 : i32 to vector<1x128xi32>
    %64 = arith.cmpi sge, %48, %63 : vector<1x128xi32>
    %c96_i32 = arith.constant 96 : i32
    %65 = vector.broadcast %c96_i32 : i32 to vector<1x128xi32>
    %66 = arith.cmpi slt, %48, %65 : vector<1x128xi32>
    %67 = arith.andi %64, %66 : vector<1x128xi1>
    %68 = arith.extui %67 : vector<1x128xi1> to vector<1x128xi32>
    %69 = arith.sitofp %68 : vector<1x128xi32> to vector<1x128xf32>
    %c96_i32_55 = arith.constant 96 : i32
    %70 = vector.broadcast %c96_i32_55 : i32 to vector<1x128xi32>
    %71 = arith.cmpi sge, %48, %70 : vector<1x128xi32>
    %c128_i32 = arith.constant 128 : i32
    %72 = vector.broadcast %c128_i32 : i32 to vector<1x128xi32>
    %73 = arith.cmpi slt, %48, %72 : vector<1x128xi32>
    %74 = arith.andi %71, %73 : vector<1x128xi1>
    %75 = arith.extui %74 : vector<1x128xi1> to vector<1x128xi32>
    %76 = arith.sitofp %75 : vector<1x128xi32> to vector<1x128xf32>
    %c0 = arith.constant 0 : index
    %c0_56 = arith.constant 0 : index
    %77 = vector.load %arg4[%c0, %c0_56] : memref<896x128xbf16, #tpu.memory_space<vmem>>, vector<640x128xbf16>
    %c640 = arith.constant 640 : index
    %c0_57 = arith.constant 0 : index
    %78 = vector.load %arg4[%c640, %c0_57] : memref<896x128xbf16, #tpu.memory_space<vmem>>, vector<128x128xbf16>
    %c768 = arith.constant 768 : index
    %c0_58 = arith.constant 0 : index
    %79 = vector.load %arg4[%c768, %c0_58] : memref<896x128xbf16, #tpu.memory_space<vmem>>, vector<128x128xbf16>
    %c0_59 = arith.constant 0 : index
    %c0_60 = arith.constant 0 : index
    %80 = vector.load %arg0[%c0_59, %c0_60] : memref<8x640xf32, #tpu.memory_space<vmem>>, vector<8x640xf32>
    %c0_61 = arith.constant 0 : index
    %c0_62 = arith.constant 0 : index
    %81 = vector.load %arg2[%c0_61, %c0_62] : memref<45x128xf32, #tpu.memory_space<vmem>>, vector<1x128xf32>
    %82 = arith.truncf %80 : vector<8x640xf32> to vector<8x640xbf16>
    %cst = arith.constant dense<0.000000e+00> : vector<8x128xf32>
    %83 = tpu.matmul %82, %77, %cst {dimension_numbers = #tpu.dot_dimension_numbers<[1], [0], [0], [1], [0, 0, 1, 1], [], []>} : vector<8x640xbf16>, vector<640x128xbf16>, vector<8x128xf32> -> vector<8x128xf32>
    %84 = vector.broadcast %81 : vector<1x128xf32> to vector<8x128xf32>
    %85 = arith.addf %83, %84 : vector<8x128xf32>
    %c0_63 = arith.constant 0 : index
    %c0_64 = arith.constant 0 : index
    %86 = vector.load %arg1[%c0_63, %c0_64] : memref<1x128xf32, #tpu.memory_space<vmem>>, vector<1x128xf32>
    %c1 = arith.constant 1 : index
    %c0_65 = arith.constant 0 : index
    %87 = vector.load %arg2[%c1, %c0_65] : memref<45x128xf32, #tpu.memory_space<vmem>>, vector<1x128xf32>
    %88 = arith.truncf %86 : vector<1x128xf32> to vector<1x128xbf16>
    %cst_66 = arith.constant dense<0.000000e+00> : vector<1x128xf32>
    %89 = tpu.matmul %88, %78, %cst_66 {dimension_numbers = #tpu.dot_dimension_numbers<[1], [0], [0], [1], [0, 0, 1, 1], [], []>} : vector<1x128xbf16>, vector<128x128xbf16>, vector<1x128xf32> -> vector<1x128xf32>
    %90 = arith.addf %89, %87 : vector<1x128xf32>
    %c0_i32_67 = arith.constant 0 : i32
    %c0_i32_68 = arith.constant 0 : i32
    %c0_i32_69 = arith.constant 0 : i32
    %c0_i32_70 = arith.constant 0 : i32
    %c0_i32_71 = arith.constant 0 : i32
    %91 = tpu.memref_slice %arg5[%c0_i32_67, %c0_i32_70, %c0_i32_71] : memref<2x128x768xbf16, #tpu.memory_space<any>> -> memref<1x128x768xbf16, #tpu.memory_space<any>>
    %92 = tpu.memref_squeeze %91 : memref<1x128x768xbf16, #tpu.memory_space<any>> -> memref<128x768xbf16, #tpu.memory_space<any>>
    %c0_i32_72 = arith.constant 0 : i32
    %c0_i32_73 = arith.constant 0 : i32
    %93 = tpu.memref_slice %arg9[%c0_i32_68, %c0_i32_72, %c0_i32_73] : memref<2x128x768xbf16, #tpu.memory_space<vmem>> -> memref<1x128x768xbf16, #tpu.memory_space<vmem>>
    %94 = tpu.memref_squeeze %93 : memref<1x128x768xbf16, #tpu.memory_space<vmem>> -> memref<128x768xbf16, #tpu.memory_space<vmem>>
    %95 = tpu.memref_slice %arg12[%c0_i32_69] : memref<2x!tpu.dma_semaphore, #tpu.memory_space<semaphore_mem>> -> memref<1x!tpu.dma_semaphore, #tpu.memory_space<semaphore_mem>>
    %96 = tpu.memref_squeeze %95 : memref<1x!tpu.dma_semaphore, #tpu.memory_space<semaphore_mem>> -> memref<!tpu.dma_semaphore, #tpu.memory_space<semaphore_mem>>
    tpu.wait_dma2 semaphore(%96 : memref<!tpu.dma_semaphore, #tpu.memory_space<semaphore_mem>>) src(%92 : memref<128x768xbf16, #tpu.memory_space<any>>) dst(%94 : memref<128x768xbf16, #tpu.memory_space<vmem>>)
    %c0_74 = arith.constant 0 : index
    %c0_75 = arith.constant 0 : index
    %c0_76 = arith.constant 0 : index
    %97 = vector.load %arg9[%c0_74, %c0_75, %c0_76] : memref<2x128x768xbf16, #tpu.memory_space<vmem>>, vector<1x128x384xbf16>
    %98 = vector.shape_cast %97 : vector<1x128x384xbf16> to vector<128x384xbf16>
    %c0_77 = arith.constant 0 : index
    %c0_78 = arith.constant 0 : index
    %c384 = arith.constant 384 : index
    %99 = vector.load %arg9[%c0_77, %c0_78, %c384] : memref<2x128x768xbf16, #tpu.memory_space<vmem>>, vector<1x128x128xbf16>
    %100 = vector.shape_cast %99 : vector<1x128x128xbf16> to vector<128x128xbf16>
    %c0_79 = arith.constant 0 : index
    %c0_80 = arith.constant 0 : index
    %c512 = arith.constant 512 : index
    %101 = vector.load %arg9[%c0_79, %c0_80, %c512] : memref<2x128x768xbf16, #tpu.memory_space<vmem>>, vector<1x128x256xbf16>
    %102 = vector.shape_cast %101 : vector<1x128x256xbf16> to vector<128x256xbf16>
    %103 = arith.truncf %85 : vector<8x128xf32> to vector<8x128xbf16>
    %cst_81 = arith.constant dense<0.000000e+00> : vector<8x384xf32>
    %104 = tpu.matmul %103, %98, %cst_81 {dimension_numbers = #tpu.dot_dimension_numbers<[1], [0], [0], [1], [0, 0, 1, 1], [], []>} : vector<8x128xbf16>, vector<128x384xbf16>, vector<8x384xf32> -> vector<8x384xf32>
    %105 = vector.extract_strided_slice %104 {offsets = [0, 0], sizes = [8, 128], strides = [1, 1]} : vector<8x384xf32> to vector<8x128xf32>
    %c3 = arith.constant 3 : index
    %c0_82 = arith.constant 0 : index
    %106 = vector.load %arg2[%c3, %c0_82] : memref<45x128xf32, #tpu.memory_space<vmem>>, vector<1x128xf32>
    %107 = vector.broadcast %106 : vector<1x128xf32> to vector<8x128xf32>
    %108 = arith.addf %105, %107 : vector<8x128xf32>
    %109 = vector.extract_strided_slice %104 {offsets = [0, 128], sizes = [8, 128], strides = [1, 1]} : vector<8x384xf32> to vector<8x128xf32>
    %c4 = arith.constant 4 : index
    %c0_83 = arith.constant 0 : index
    %110 = vector.load %arg2[%c4, %c0_83] : memref<45x128xf32, #tpu.memory_space<vmem>>, vector<1x128xf32>
    %111 = vector.broadcast %110 : vector<1x128xf32> to vector<8x128xf32>
    %112 = arith.addf %109, %111 : vector<8x128xf32>
    %113 = vector.extract_strided_slice %104 {offsets = [0, 256], sizes = [8, 128], strides = [1, 1]} : vector<8x384xf32> to vector<8x128xf32>
    %c5 = arith.constant 5 : index
    %c0_84 = arith.constant 0 : index
    %114 = vector.load %arg2[%c5, %c0_84] : memref<45x128xf32, #tpu.memory_space<vmem>>, vector<1x128xf32>
    %115 = vector.broadcast %114 : vector<1x128xf32> to vector<8x128xf32>
    %116 = arith.addf %113, %115 : vector<8x128xf32>
    %117 = vector.broadcast %55 : vector<1x128xf32> to vector<8x128xf32>
    %118 = arith.mulf %108, %117 : vector<8x128xf32>
    %119 = vector.broadcast %62 : vector<1x128xf32> to vector<8x128xf32>
    %120 = arith.mulf %108, %119 : vector<8x128xf32>
    %121 = vector.broadcast %69 : vector<1x128xf32> to vector<8x128xf32>
    %122 = arith.mulf %108, %121 : vector<8x128xf32>
    %123 = vector.broadcast %76 : vector<1x128xf32> to vector<8x128xf32>
    %124 = arith.mulf %108, %123 : vector<8x128xf32>
    %125 = tpu.concatenate %118, %120, %122, %124 in 0 : vector<8x128xf32>, vector<8x128xf32>, vector<8x128xf32>, vector<8x128xf32> -> vector<32x128xf32>
    %126 = arith.truncf %125 : vector<32x128xf32> to vector<32x128xbf16>
    %127 = arith.truncf %112 : vector<8x128xf32> to vector<8x128xbf16>
    %cst_85 = arith.constant dense<0.000000e+00> : vector<32x8xf32>
    %128 = tpu.matmul %126, %127, %cst_85 {dimension_numbers = #tpu.dot_dimension_numbers<[1], [1], [0], [0], [0, 0, 1, 0], [], []>} : vector<32x128xbf16>, vector<8x128xbf16>, vector<32x8xf32> -> vector<32x8xf32>
    %cst_86 = arith.constant 0.176776692 : f32
    %129 = vector.broadcast %cst_86 : f32 to vector<32x8xf32>
    %130 = arith.mulf %128, %129 : vector<32x8xf32>
    %cst_87 = arith.constant dense<0xFF800000> : vector<32xf32>
    %131 = vector.multi_reduction <maximumf>, %130, %cst_87 [1] : vector<32x8xf32> to vector<32xf32>
    %132 = vector.shape_cast %131 : vector<32xf32> to vector<32x1xf32>
    %133 = vector.broadcast %132 : vector<32x1xf32> to vector<32x8xf32>
    %134 = arith.subf %130, %133 : vector<32x8xf32>
    %135 = math.exp %134 : vector<32x8xf32>
    %cst_88 = arith.constant dense<0.000000e+00> : vector<32xf32>
    %136 = vector.multi_reduction <add>, %135, %cst_88 [1] : vector<32x8xf32> to vector<32xf32>
    %137 = vector.shape_cast %136 : vector<32xf32> to vector<32x1xf32>
    %138 = tpu.reciprocal %137 {approx = true} : vector<32x1xf32> -> vector<32x1xf32>
    %139 = vector.broadcast %138 : vector<32x1xf32> to vector<32x8xf32>
    %140 = arith.mulf %135, %139 : vector<32x8xf32>
    %141 = vector.extract_strided_slice %140 {offsets = [0, 0], sizes = [8, 8], strides = [1, 1]} : vector<32x8xf32> to vector<8x8xf32>
    %142 = arith.truncf %141 : vector<8x8xf32> to vector<8x8xbf16>
    %143 = vector.broadcast %55 : vector<1x128xf32> to vector<8x128xf32>
    %144 = arith.mulf %116, %143 : vector<8x128xf32>
    %145 = arith.truncf %144 : vector<8x128xf32> to vector<8x128xbf16>
    %cst_89 = arith.constant dense<0.000000e+00> : vector<8x128xf32>
    %146 = tpu.matmul %142, %145, %cst_89 {dimension_numbers = #tpu.dot_dimension_numbers<[1], [0], [0], [1], [0, 0, 1, 1], [], []>} : vector<8x8xbf16>, vector<8x128xbf16>, vector<8x128xf32> -> vector<8x128xf32>
    %147 = vector.extract_strided_slice %140 {offsets = [8, 0], sizes = [8, 8], strides = [1, 1]} : vector<32x8xf32> to vector<8x8xf32>
    %148 = arith.truncf %147 : vector<8x8xf32> to vector<8x8xbf16>
    %149 = vector.broadcast %62 : vector<1x128xf32> to vector<8x128xf32>
    %150 = arith.mulf %116, %149 : vector<8x128xf32>
    %151 = arith.truncf %150 : vector<8x128xf32> to vector<8x128xbf16>
    %cst_90 = arith.constant dense<0.000000e+00> : vector<8x128xf32>
    %152 = tpu.matmul %148, %151, %cst_90 {dimension_numbers = #tpu.dot_dimension_numbers<[1], [0], [0], [1], [0, 0, 1, 1], [], []>} : vector<8x8xbf16>, vector<8x128xbf16>, vector<8x128xf32> -> vector<8x128xf32>
    %153 = arith.addf %146, %152 : vector<8x128xf32>
    %154 = vector.extract_strided_slice %140 {offsets = [16, 0], sizes = [8, 8], strides = [1, 1]} : vector<32x8xf32> to vector<8x8xf32>
    %155 = arith.truncf %154 : vector<8x8xf32> to vector<8x8xbf16>
    %156 = vector.broadcast %69 : vector<1x128xf32> to vector<8x128xf32>
    %157 = arith.mulf %116, %156 : vector<8x128xf32>
    %158 = arith.truncf %157 : vector<8x128xf32> to vector<8x128xbf16>
    %cst_91 = arith.constant dense<0.000000e+00> : vector<8x128xf32>
    %159 = tpu.matmul %155, %158, %cst_91 {dimension_numbers = #tpu.dot_dimension_numbers<[1], [0], [0], [1], [0, 0, 1, 1], [], []>} : vector<8x8xbf16>, vector<8x128xbf16>, vector<8x128xf32> -> vector<8x128xf32>
    %160 = arith.addf %153, %159 : vector<8x128xf32>
    %161 = vector.extract_strided_slice %140 {offsets = [24, 0], sizes = [8, 8], strides = [1, 1]} : vector<32x8xf32> to vector<8x8xf32>
    %162 = arith.truncf %161 : vector<8x8xf32> to vector<8x8xbf16>
    %163 = vector.broadcast %76 : vector<1x128xf32> to vector<8x128xf32>
    %164 = arith.mulf %116, %163 : vector<8x128xf32>
    %165 = arith.truncf %164 : vector<8x128xf32> to vector<8x128xbf16>
    %cst_92 = arith.constant dense<0.000000e+00> : vector<8x128xf32>
    %166 = tpu.matmul %162, %165, %cst_92 {dimension_numbers = #tpu.dot_dimension_numbers<[1], [0], [0], [1], [0, 0, 1, 1], [], []>} : vector<8x8xbf16>, vector<8x128xbf16>, vector<8x128xf32> -> vector<8x128xf32>
    %167 = arith.addf %160, %166 : vector<8x128xf32>
    %c6 = arith.constant 6 : index
    %c0_93 = arith.constant 0 : index
    %168 = vector.load %arg2[%c6, %c0_93] : memref<45x128xf32, #tpu.memory_space<vmem>>, vector<1x128xf32>
    %169 = arith.truncf %167 : vector<8x128xf32> to vector<8x128xbf16>
    %cst_94 = arith.constant dense<0.000000e+00> : vector<8x128xf32>
    %170 = tpu.matmul %169, %100, %cst_94 {dimension_numbers = #tpu.dot_dimension_numbers<[1], [0], [0], [1], [0, 0, 1, 1], [], []>} : vector<8x128xbf16>, vector<128x128xbf16>, vector<8x128xf32> -> vector<8x128xf32>
    %171 = vector.broadcast %168 : vector<1x128xf32> to vector<8x128xf32>
    %172 = arith.addf %170, %171 : vector<8x128xf32>
    %173 = arith.addf %85, %172 : vector<8x128xf32>
    %c7 = arith.constant 7 : index
    %c0_95 = arith.constant 0 : index
    %174 = vector.load %arg2[%c7, %c0_95] : memref<45x128xf32, #tpu.memory_space<vmem>>, vector<1x128xf32>
    %c8 = arith.constant 8 : index
    %c0_96 = arith.constant 0 : index
    %175 = vector.load %arg2[%c8, %c0_96] : memref<45x128xf32, #tpu.memory_space<vmem>>, vector<1x128xf32>
    %cst_97 = arith.constant dense<0.000000e+00> : vector<8xf32>
    %176 = vector.multi_reduction <add>, %173, %cst_97 [1] : vector<8x128xf32> to vector<8xf32>
    %177 = vector.shape_cast %176 : vector<8xf32> to vector<8x1xf32>
    %cst_98 = arith.constant 1.280000e+02 : f32
    %178 = vector.broadcast %cst_98 : f32 to vector<8x1xf32>
    %179 = arith.divf %177, %178 : vector<8x1xf32>
    %180 = vector.broadcast %179 : vector<8x1xf32> to vector<8x128xf32>
    %181 = arith.subf %173, %180 : vector<8x128xf32>
    %182 = arith.mulf %181, %181 : vector<8x128xf32>
    %cst_99 = arith.constant dense<0.000000e+00> : vector<8xf32>
    %183 = vector.multi_reduction <add>, %182, %cst_99 [1] : vector<8x128xf32> to vector<8xf32>
    %184 = vector.shape_cast %183 : vector<8xf32> to vector<8x1xf32>
    %cst_100 = arith.constant 1.280000e+02 : f32
    %185 = vector.broadcast %cst_100 : f32 to vector<8x1xf32>
    %186 = arith.divf %184, %185 : vector<8x1xf32>
    %cst_101 = arith.constant 9.99999974E-6 : f32
    %187 = vector.broadcast %cst_101 : f32 to vector<8x1xf32>
    %188 = arith.addf %186, %187 : vector<8x1xf32>
    %189 = math.rsqrt %188 : vector<8x1xf32>
    %190 = vector.broadcast %189 : vector<8x1xf32> to vector<8x128xf32>
    %191 = arith.mulf %181, %190 : vector<8x128xf32>
    %192 = vector.broadcast %174 : vector<1x128xf32> to vector<8x128xf32>
    %193 = arith.mulf %191, %192 : vector<8x128xf32>
    %194 = vector.broadcast %175 : vector<1x128xf32> to vector<8x128xf32>
    %195 = arith.addf %193, %194 : vector<8x128xf32>
    %c0_i32_102 = arith.constant 0 : i32
    %c0_i32_103 = arith.constant 0 : i32
    %c0_i32_104 = arith.constant 0 : i32
    %c0_i32_105 = arith.constant 0 : i32
    %c0_i32_106 = arith.constant 0 : i32
    %196 = tpu.memref_slice %arg7[%c0_i32_102, %c0_i32_105, %c0_i32_106] : memref<4x256x128xbf16, #tpu.memory_space<any>> -> memref<1x256x128xbf16, #tpu.memory_space<any>>
    %197 = tpu.memref_squeeze %196 : memref<1x256x128xbf16, #tpu.memory_space<any>> -> memref<256x128xbf16, #tpu.memory_space<any>>
    %c0_i32_107 = arith.constant 0 : i32
    %c0_i32_108 = arith.constant 0 : i32
    %198 = tpu.memref_slice %arg11[%c0_i32_103, %c0_i32_107, %c0_i32_108] : memref<4x256x128xbf16, #tpu.memory_space<vmem>> -> memref<1x256x128xbf16, #tpu.memory_space<vmem>>
    %199 = tpu.memref_squeeze %198 : memref<1x256x128xbf16, #tpu.memory_space<vmem>> -> memref<256x128xbf16, #tpu.memory_space<vmem>>
    %200 = tpu.memref_slice %arg14[%c0_i32_104] : memref<4x!tpu.dma_semaphore, #tpu.memory_space<semaphore_mem>> -> memref<1x!tpu.dma_semaphore, #tpu.memory_space<semaphore_mem>>
    %201 = tpu.memref_squeeze %200 : memref<1x!tpu.dma_semaphore, #tpu.memory_space<semaphore_mem>> -> memref<!tpu.dma_semaphore, #tpu.memory_space<semaphore_mem>>
    tpu.wait_dma2 semaphore(%201 : memref<!tpu.dma_semaphore, #tpu.memory_space<semaphore_mem>>) src(%197 : memref<256x128xbf16, #tpu.memory_space<any>>) dst(%199 : memref<256x128xbf16, #tpu.memory_space<vmem>>)
    %c0_109 = arith.constant 0 : index
    %c0_110 = arith.constant 0 : index
    %202 = vector.load %arg3[%c0_109, %c0_110] : memref<4x256xf32, #tpu.memory_space<vmem>>, vector<1x256xf32>
    %203 = arith.truncf %195 : vector<8x128xf32> to vector<8x128xbf16>
    %cst_111 = arith.constant dense<0.000000e+00> : vector<8x256xf32>
    %204 = tpu.matmul %203, %102, %cst_111 {dimension_numbers = #tpu.dot_dimension_numbers<[1], [0], [0], [1], [0, 0, 1, 1], [], []>} : vector<8x128xbf16>, vector<128x256xbf16>, vector<8x256xf32> -> vector<8x256xf32>
    %205 = vector.broadcast %202 : vector<1x256xf32> to vector<8x256xf32>
    %206 = arith.addf %204, %205 : vector<8x256xf32>
    %cst_112 = arith.constant 0.000000e+00 : f32
    %207 = vector.broadcast %cst_112 : f32 to vector<8x256xf32>
    %208 = arith.maximumf %206, %207 : vector<8x256xf32>
    %c0_113 = arith.constant 0 : index
    %c0_114 = arith.constant 0 : index
    %c0_115 = arith.constant 0 : index
    %209 = vector.load %arg11[%c0_113, %c0_114, %c0_115] : memref<4x256x128xbf16, #tpu.memory_space<vmem>>, vector<1x256x128xbf16>
    %210 = vector.shape_cast %209 : vector<1x256x128xbf16> to vector<256x128xbf16>
    %c9 = arith.constant 9 : index
    %c0_116 = arith.constant 0 : index
    %211 = vector.load %arg2[%c9, %c0_116] : memref<45x128xf32, #tpu.memory_space<vmem>>, vector<1x128xf32>
    %212 = arith.truncf %208 : vector<8x256xf32> to vector<8x256xbf16>
    %cst_117 = arith.constant dense<0.000000e+00> : vector<8x128xf32>
    %213 = tpu.matmul %212, %210, %cst_117 {dimension_numbers = #tpu.dot_dimension_numbers<[1], [0], [0], [1], [0, 0, 1, 1], [], []>} : vector<8x256xbf16>, vector<256x128xbf16>, vector<8x128xf32> -> vector<8x128xf32>
    %214 = vector.broadcast %211 : vector<1x128xf32> to vector<8x128xf32>
    %215 = arith.addf %213, %214 : vector<8x128xf32>
    %216 = arith.addf %195, %215 : vector<8x128xf32>
    %c10 = arith.constant 10 : index
    %c0_118 = arith.constant 0 : index
    %217 = vector.load %arg2[%c10, %c0_118] : memref<45x128xf32, #tpu.memory_space<vmem>>, vector<1x128xf32>
    %c11 = arith.constant 11 : index
    %c0_119 = arith.constant 0 : index
    %218 = vector.load %arg2[%c11, %c0_119] : memref<45x128xf32, #tpu.memory_space<vmem>>, vector<1x128xf32>
    %cst_120 = arith.constant dense<0.000000e+00> : vector<8xf32>
    %219 = vector.multi_reduction <add>, %216, %cst_120 [1] : vector<8x128xf32> to vector<8xf32>
    %220 = vector.shape_cast %219 : vector<8xf32> to vector<8x1xf32>
    %cst_121 = arith.constant 1.280000e+02 : f32
    %221 = vector.broadcast %cst_121 : f32 to vector<8x1xf32>
    %222 = arith.divf %220, %221 : vector<8x1xf32>
    %223 = vector.broadcast %222 : vector<8x1xf32> to vector<8x128xf32>
    %224 = arith.subf %216, %223 : vector<8x128xf32>
    %225 = arith.mulf %224, %224 : vector<8x128xf32>
    %cst_122 = arith.constant dense<0.000000e+00> : vector<8xf32>
    %226 = vector.multi_reduction <add>, %225, %cst_122 [1] : vector<8x128xf32> to vector<8xf32>
    %227 = vector.shape_cast %226 : vector<8xf32> to vector<8x1xf32>
    %cst_123 = arith.constant 1.280000e+02 : f32
    %228 = vector.broadcast %cst_123 : f32 to vector<8x1xf32>
    %229 = arith.divf %227, %228 : vector<8x1xf32>
    %cst_124 = arith.constant 9.99999974E-6 : f32
    %230 = vector.broadcast %cst_124 : f32 to vector<8x1xf32>
    %231 = arith.addf %229, %230 : vector<8x1xf32>
    %232 = math.rsqrt %231 : vector<8x1xf32>
    %233 = vector.broadcast %232 : vector<8x1xf32> to vector<8x128xf32>
    %234 = arith.mulf %224, %233 : vector<8x128xf32>
    %235 = vector.broadcast %217 : vector<1x128xf32> to vector<8x128xf32>
    %236 = arith.mulf %234, %235 : vector<8x128xf32>
    %237 = vector.broadcast %218 : vector<1x128xf32> to vector<8x128xf32>
    %238 = arith.addf %236, %237 : vector<8x128xf32>
    %c1_i32_125 = arith.constant 1 : i32
    %c1_i32_126 = arith.constant 1 : i32
    %c1_i32_127 = arith.constant 1 : i32
    %c0_i32_128 = arith.constant 0 : i32
    %c0_i32_129 = arith.constant 0 : i32
    %239 = tpu.memref_slice %arg5[%c1_i32_125, %c0_i32_128, %c0_i32_129] : memref<2x128x768xbf16, #tpu.memory_space<any>> -> memref<1x128x768xbf16, #tpu.memory_space<any>>
    %240 = tpu.memref_squeeze %239 : memref<1x128x768xbf16, #tpu.memory_space<any>> -> memref<128x768xbf16, #tpu.memory_space<any>>
    %c0_i32_130 = arith.constant 0 : i32
    %c0_i32_131 = arith.constant 0 : i32
    %241 = tpu.memref_slice %arg9[%c1_i32_126, %c0_i32_130, %c0_i32_131] : memref<2x128x768xbf16, #tpu.memory_space<vmem>> -> memref<1x128x768xbf16, #tpu.memory_space<vmem>>
    %242 = tpu.memref_squeeze %241 : memref<1x128x768xbf16, #tpu.memory_space<vmem>> -> memref<128x768xbf16, #tpu.memory_space<vmem>>
    %243 = tpu.memref_slice %arg12[%c1_i32_127] : memref<2x!tpu.dma_semaphore, #tpu.memory_space<semaphore_mem>> -> memref<1x!tpu.dma_semaphore, #tpu.memory_space<semaphore_mem>>
    %244 = tpu.memref_squeeze %243 : memref<1x!tpu.dma_semaphore, #tpu.memory_space<semaphore_mem>> -> memref<!tpu.dma_semaphore, #tpu.memory_space<semaphore_mem>>
    tpu.wait_dma2 semaphore(%244 : memref<!tpu.dma_semaphore, #tpu.memory_space<semaphore_mem>>) src(%240 : memref<128x768xbf16, #tpu.memory_space<any>>) dst(%242 : memref<128x768xbf16, #tpu.memory_space<vmem>>)
    %c1_132 = arith.constant 1 : index
    %c0_133 = arith.constant 0 : index
    %c0_134 = arith.constant 0 : index
    %245 = vector.load %arg9[%c1_132, %c0_133, %c0_134] : memref<2x128x768xbf16, #tpu.memory_space<vmem>>, vector<1x128x384xbf16>
    %246 = vector.shape_cast %245 : vector<1x128x384xbf16> to vector<128x384xbf16>
    %c1_135 = arith.constant 1 : index
    %c0_136 = arith.constant 0 : index
    %c384_137 = arith.constant 384 : index
    %247 = vector.load %arg9[%c1_135, %c0_136, %c384_137] : memref<2x128x768xbf16, #tpu.memory_space<vmem>>, vector<1x128x128xbf16>
    %248 = vector.shape_cast %247 : vector<1x128x128xbf16> to vector<128x128xbf16>
    %c1_138 = arith.constant 1 : index
    %c0_139 = arith.constant 0 : index
    %c512_140 = arith.constant 512 : index
    %249 = vector.load %arg9[%c1_138, %c0_139, %c512_140] : memref<2x128x768xbf16, #tpu.memory_space<vmem>>, vector<1x128x256xbf16>
    %250 = vector.shape_cast %249 : vector<1x128x256xbf16> to vector<128x256xbf16>
    %251 = arith.truncf %238 : vector<8x128xf32> to vector<8x128xbf16>
    %cst_141 = arith.constant dense<0.000000e+00> : vector<8x384xf32>
    %252 = tpu.matmul %251, %246, %cst_141 {dimension_numbers = #tpu.dot_dimension_numbers<[1], [0], [0], [1], [0, 0, 1, 1], [], []>} : vector<8x128xbf16>, vector<128x384xbf16>, vector<8x384xf32> -> vector<8x384xf32>
    %253 = vector.extract_strided_slice %252 {offsets = [0, 0], sizes = [8, 128], strides = [1, 1]} : vector<8x384xf32> to vector<8x128xf32>
    %c12 = arith.constant 12 : index
    %c0_142 = arith.constant 0 : index
    %254 = vector.load %arg2[%c12, %c0_142] : memref<45x128xf32, #tpu.memory_space<vmem>>, vector<1x128xf32>
    %255 = vector.broadcast %254 : vector<1x128xf32> to vector<8x128xf32>
    %256 = arith.addf %253, %255 : vector<8x128xf32>
    %257 = vector.extract_strided_slice %252 {offsets = [0, 128], sizes = [8, 128], strides = [1, 1]} : vector<8x384xf32> to vector<8x128xf32>
    %c13 = arith.constant 13 : index
    %c0_143 = arith.constant 0 : index
    %258 = vector.load %arg2[%c13, %c0_143] : memref<45x128xf32, #tpu.memory_space<vmem>>, vector<1x128xf32>
    %259 = vector.broadcast %258 : vector<1x128xf32> to vector<8x128xf32>
    %260 = arith.addf %257, %259 : vector<8x128xf32>
    %261 = vector.extract_strided_slice %252 {offsets = [0, 256], sizes = [8, 128], strides = [1, 1]} : vector<8x384xf32> to vector<8x128xf32>
    %c14 = arith.constant 14 : index
    %c0_144 = arith.constant 0 : index
    %262 = vector.load %arg2[%c14, %c0_144] : memref<45x128xf32, #tpu.memory_space<vmem>>, vector<1x128xf32>
    %263 = vector.broadcast %262 : vector<1x128xf32> to vector<8x128xf32>
    %264 = arith.addf %261, %263 : vector<8x128xf32>
    %265 = vector.broadcast %55 : vector<1x128xf32> to vector<8x128xf32>
    %266 = arith.mulf %256, %265 : vector<8x128xf32>
    %267 = vector.broadcast %62 : vector<1x128xf32> to vector<8x128xf32>
    %268 = arith.mulf %256, %267 : vector<8x128xf32>
    %269 = vector.broadcast %69 : vector<1x128xf32> to vector<8x128xf32>
    %270 = arith.mulf %256, %269 : vector<8x128xf32>
    %271 = vector.broadcast %76 : vector<1x128xf32> to vector<8x128xf32>
    %272 = arith.mulf %256, %271 : vector<8x128xf32>
    %273 = tpu.concatenate %266, %268, %270, %272 in 0 : vector<8x128xf32>, vector<8x128xf32>, vector<8x128xf32>, vector<8x128xf32> -> vector<32x128xf32>
    %274 = arith.truncf %273 : vector<32x128xf32> to vector<32x128xbf16>
    %275 = arith.truncf %260 : vector<8x128xf32> to vector<8x128xbf16>
    %cst_145 = arith.constant dense<0.000000e+00> : vector<32x8xf32>
    %276 = tpu.matmul %274, %275, %cst_145 {dimension_numbers = #tpu.dot_dimension_numbers<[1], [1], [0], [0], [0, 0, 1, 0], [], []>} : vector<32x128xbf16>, vector<8x128xbf16>, vector<32x8xf32> -> vector<32x8xf32>
    %cst_146 = arith.constant 0.176776692 : f32
    %277 = vector.broadcast %cst_146 : f32 to vector<32x8xf32>
    %278 = arith.mulf %276, %277 : vector<32x8xf32>
    %cst_147 = arith.constant dense<0xFF800000> : vector<32xf32>
    %279 = vector.multi_reduction <maximumf>, %278, %cst_147 [1] : vector<32x8xf32> to vector<32xf32>
    %280 = vector.shape_cast %279 : vector<32xf32> to vector<32x1xf32>
    %281 = vector.broadcast %280 : vector<32x1xf32> to vector<32x8xf32>
    %282 = arith.subf %278, %281 : vector<32x8xf32>
    %283 = math.exp %282 : vector<32x8xf32>
    %cst_148 = arith.constant dense<0.000000e+00> : vector<32xf32>
    %284 = vector.multi_reduction <add>, %283, %cst_148 [1] : vector<32x8xf32> to vector<32xf32>
    %285 = vector.shape_cast %284 : vector<32xf32> to vector<32x1xf32>
    %286 = tpu.reciprocal %285 {approx = true} : vector<32x1xf32> -> vector<32x1xf32>
    %287 = vector.broadcast %286 : vector<32x1xf32> to vector<32x8xf32>
    %288 = arith.mulf %283, %287 : vector<32x8xf32>
    %289 = vector.extract_strided_slice %288 {offsets = [0, 0], sizes = [8, 8], strides = [1, 1]} : vector<32x8xf32> to vector<8x8xf32>
    %290 = arith.truncf %289 : vector<8x8xf32> to vector<8x8xbf16>
    %291 = vector.broadcast %55 : vector<1x128xf32> to vector<8x128xf32>
    %292 = arith.mulf %264, %291 : vector<8x128xf32>
    %293 = arith.truncf %292 : vector<8x128xf32> to vector<8x128xbf16>
    %cst_149 = arith.constant dense<0.000000e+00> : vector<8x128xf32>
    %294 = tpu.matmul %290, %293, %cst_149 {dimension_numbers = #tpu.dot_dimension_numbers<[1], [0], [0], [1], [0, 0, 1, 1], [], []>} : vector<8x8xbf16>, vector<8x128xbf16>, vector<8x128xf32> -> vector<8x128xf32>
    %295 = vector.extract_strided_slice %288 {offsets = [8, 0], sizes = [8, 8], strides = [1, 1]} : vector<32x8xf32> to vector<8x8xf32>
    %296 = arith.truncf %295 : vector<8x8xf32> to vector<8x8xbf16>
    %297 = vector.broadcast %62 : vector<1x128xf32> to vector<8x128xf32>
    %298 = arith.mulf %264, %297 : vector<8x128xf32>
    %299 = arith.truncf %298 : vector<8x128xf32> to vector<8x128xbf16>
    %cst_150 = arith.constant dense<0.000000e+00> : vector<8x128xf32>
    %300 = tpu.matmul %296, %299, %cst_150 {dimension_numbers = #tpu.dot_dimension_numbers<[1], [0], [0], [1], [0, 0, 1, 1], [], []>} : vector<8x8xbf16>, vector<8x128xbf16>, vector<8x128xf32> -> vector<8x128xf32>
    %301 = arith.addf %294, %300 : vector<8x128xf32>
    %302 = vector.extract_strided_slice %288 {offsets = [16, 0], sizes = [8, 8], strides = [1, 1]} : vector<32x8xf32> to vector<8x8xf32>
    %303 = arith.truncf %302 : vector<8x8xf32> to vector<8x8xbf16>
    %304 = vector.broadcast %69 : vector<1x128xf32> to vector<8x128xf32>
    %305 = arith.mulf %264, %304 : vector<8x128xf32>
    %306 = arith.truncf %305 : vector<8x128xf32> to vector<8x128xbf16>
    %cst_151 = arith.constant dense<0.000000e+00> : vector<8x128xf32>
    %307 = tpu.matmul %303, %306, %cst_151 {dimension_numbers = #tpu.dot_dimension_numbers<[1], [0], [0], [1], [0, 0, 1, 1], [], []>} : vector<8x8xbf16>, vector<8x128xbf16>, vector<8x128xf32> -> vector<8x128xf32>
    %308 = arith.addf %301, %307 : vector<8x128xf32>
    %309 = vector.extract_strided_slice %288 {offsets = [24, 0], sizes = [8, 8], strides = [1, 1]} : vector<32x8xf32> to vector<8x8xf32>
    %310 = arith.truncf %309 : vector<8x8xf32> to vector<8x8xbf16>
    %311 = vector.broadcast %76 : vector<1x128xf32> to vector<8x128xf32>
    %312 = arith.mulf %264, %311 : vector<8x128xf32>
    %313 = arith.truncf %312 : vector<8x128xf32> to vector<8x128xbf16>
    %cst_152 = arith.constant dense<0.000000e+00> : vector<8x128xf32>
    %314 = tpu.matmul %310, %313, %cst_152 {dimension_numbers = #tpu.dot_dimension_numbers<[1], [0], [0], [1], [0, 0, 1, 1], [], []>} : vector<8x8xbf16>, vector<8x128xbf16>, vector<8x128xf32> -> vector<8x128xf32>
    %315 = arith.addf %308, %314 : vector<8x128xf32>
    %c15 = arith.constant 15 : index
    %c0_153 = arith.constant 0 : index
    %316 = vector.load %arg2[%c15, %c0_153] : memref<45x128xf32, #tpu.memory_space<vmem>>, vector<1x128xf32>
    %317 = arith.truncf %315 : vector<8x128xf32> to vector<8x128xbf16>
    %cst_154 = arith.constant dense<0.000000e+00> : vector<8x128xf32>
    %318 = tpu.matmul %317, %248, %cst_154 {dimension_numbers = #tpu.dot_dimension_numbers<[1], [0], [0], [1], [0, 0, 1, 1], [], []>} : vector<8x128xbf16>, vector<128x128xbf16>, vector<8x128xf32> -> vector<8x128xf32>
    %319 = vector.broadcast %316 : vector<1x128xf32> to vector<8x128xf32>
    %320 = arith.addf %318, %319 : vector<8x128xf32>
    %321 = arith.addf %238, %320 : vector<8x128xf32>
    %c16 = arith.constant 16 : index
    %c0_155 = arith.constant 0 : index
    %322 = vector.load %arg2[%c16, %c0_155] : memref<45x128xf32, #tpu.memory_space<vmem>>, vector<1x128xf32>
    %c17 = arith.constant 17 : index
    %c0_156 = arith.constant 0 : index
    %323 = vector.load %arg2[%c17, %c0_156] : memref<45x128xf32, #tpu.memory_space<vmem>>, vector<1x128xf32>
    %cst_157 = arith.constant dense<0.000000e+00> : vector<8xf32>
    %324 = vector.multi_reduction <add>, %321, %cst_157 [1] : vector<8x128xf32> to vector<8xf32>
    %325 = vector.shape_cast %324 : vector<8xf32> to vector<8x1xf32>
    %cst_158 = arith.constant 1.280000e+02 : f32
    %326 = vector.broadcast %cst_158 : f32 to vector<8x1xf32>
    %327 = arith.divf %325, %326 : vector<8x1xf32>
    %328 = vector.broadcast %327 : vector<8x1xf32> to vector<8x128xf32>
    %329 = arith.subf %321, %328 : vector<8x128xf32>
    %330 = arith.mulf %329, %329 : vector<8x128xf32>
    %cst_159 = arith.constant dense<0.000000e+00> : vector<8xf32>
    %331 = vector.multi_reduction <add>, %330, %cst_159 [1] : vector<8x128xf32> to vector<8xf32>
    %332 = vector.shape_cast %331 : vector<8xf32> to vector<8x1xf32>
    %cst_160 = arith.constant 1.280000e+02 : f32
    %333 = vector.broadcast %cst_160 : f32 to vector<8x1xf32>
    %334 = arith.divf %332, %333 : vector<8x1xf32>
    %cst_161 = arith.constant 9.99999974E-6 : f32
    %335 = vector.broadcast %cst_161 : f32 to vector<8x1xf32>
    %336 = arith.addf %334, %335 : vector<8x1xf32>
    %337 = math.rsqrt %336 : vector<8x1xf32>
    %338 = vector.broadcast %337 : vector<8x1xf32> to vector<8x128xf32>
    %339 = arith.mulf %329, %338 : vector<8x128xf32>
    %340 = vector.broadcast %322 : vector<1x128xf32> to vector<8x128xf32>
    %341 = arith.mulf %339, %340 : vector<8x128xf32>
    %342 = vector.broadcast %323 : vector<1x128xf32> to vector<8x128xf32>
    %343 = arith.addf %341, %342 : vector<8x128xf32>
    %c1_i32_162 = arith.constant 1 : i32
    %c1_i32_163 = arith.constant 1 : i32
    %c1_i32_164 = arith.constant 1 : i32
    %c0_i32_165 = arith.constant 0 : i32
    %c0_i32_166 = arith.constant 0 : i32
    %344 = tpu.memref_slice %arg7[%c1_i32_162, %c0_i32_165, %c0_i32_166] : memref<4x256x128xbf16, #tpu.memory_space<any>> -> memref<1x256x128xbf16, #tpu.memory_space<any>>
    %345 = tpu.memref_squeeze %344 : memref<1x256x128xbf16, #tpu.memory_space<any>> -> memref<256x128xbf16, #tpu.memory_space<any>>
    %c0_i32_167 = arith.constant 0 : i32
    %c0_i32_168 = arith.constant 0 : i32
    %346 = tpu.memref_slice %arg11[%c1_i32_163, %c0_i32_167, %c0_i32_168] : memref<4x256x128xbf16, #tpu.memory_space<vmem>> -> memref<1x256x128xbf16, #tpu.memory_space<vmem>>
    %347 = tpu.memref_squeeze %346 : memref<1x256x128xbf16, #tpu.memory_space<vmem>> -> memref<256x128xbf16, #tpu.memory_space<vmem>>
    %348 = tpu.memref_slice %arg14[%c1_i32_164] : memref<4x!tpu.dma_semaphore, #tpu.memory_space<semaphore_mem>> -> memref<1x!tpu.dma_semaphore, #tpu.memory_space<semaphore_mem>>
    %349 = tpu.memref_squeeze %348 : memref<1x!tpu.dma_semaphore, #tpu.memory_space<semaphore_mem>> -> memref<!tpu.dma_semaphore, #tpu.memory_space<semaphore_mem>>
    tpu.wait_dma2 semaphore(%349 : memref<!tpu.dma_semaphore, #tpu.memory_space<semaphore_mem>>) src(%345 : memref<256x128xbf16, #tpu.memory_space<any>>) dst(%347 : memref<256x128xbf16, #tpu.memory_space<vmem>>)
    %c1_169 = arith.constant 1 : index
    %c0_170 = arith.constant 0 : index
    %350 = vector.load %arg3[%c1_169, %c0_170] : memref<4x256xf32, #tpu.memory_space<vmem>>, vector<1x256xf32>
    %351 = arith.truncf %343 : vector<8x128xf32> to vector<8x128xbf16>
    %cst_171 = arith.constant dense<0.000000e+00> : vector<8x256xf32>
    %352 = tpu.matmul %351, %250, %cst_171 {dimension_numbers = #tpu.dot_dimension_numbers<[1], [0], [0], [1], [0, 0, 1, 1], [], []>} : vector<8x128xbf16>, vector<128x256xbf16>, vector<8x256xf32> -> vector<8x256xf32>
    %353 = vector.broadcast %350 : vector<1x256xf32> to vector<8x256xf32>
    %354 = arith.addf %352, %353 : vector<8x256xf32>
    %cst_172 = arith.constant 0.000000e+00 : f32
    %355 = vector.broadcast %cst_172 : f32 to vector<8x256xf32>
    %356 = arith.maximumf %354, %355 : vector<8x256xf32>
    %c1_173 = arith.constant 1 : index
    %c0_174 = arith.constant 0 : index
    %c0_175 = arith.constant 0 : index
    %357 = vector.load %arg11[%c1_173, %c0_174, %c0_175] : memref<4x256x128xbf16, #tpu.memory_space<vmem>>, vector<1x256x128xbf16>
    %358 = vector.shape_cast %357 : vector<1x256x128xbf16> to vector<256x128xbf16>
    %c18 = arith.constant 18 : index
    %c0_176 = arith.constant 0 : index
    %359 = vector.load %arg2[%c18, %c0_176] : memref<45x128xf32, #tpu.memory_space<vmem>>, vector<1x128xf32>
    %360 = arith.truncf %356 : vector<8x256xf32> to vector<8x256xbf16>
    %cst_177 = arith.constant dense<0.000000e+00> : vector<8x128xf32>
    %361 = tpu.matmul %360, %358, %cst_177 {dimension_numbers = #tpu.dot_dimension_numbers<[1], [0], [0], [1], [0, 0, 1, 1], [], []>} : vector<8x256xbf16>, vector<256x128xbf16>, vector<8x128xf32> -> vector<8x128xf32>
    %362 = vector.broadcast %359 : vector<1x128xf32> to vector<8x128xf32>
    %363 = arith.addf %361, %362 : vector<8x128xf32>
    %364 = arith.addf %343, %363 : vector<8x128xf32>
    %c19 = arith.constant 19 : index
    %c0_178 = arith.constant 0 : index
    %365 = vector.load %arg2[%c19, %c0_178] : memref<45x128xf32, #tpu.memory_space<vmem>>, vector<1x128xf32>
    %c20 = arith.constant 20 : index
    %c0_179 = arith.constant 0 : index
    %366 = vector.load %arg2[%c20, %c0_179] : memref<45x128xf32, #tpu.memory_space<vmem>>, vector<1x128xf32>
    %cst_180 = arith.constant dense<0.000000e+00> : vector<8xf32>
    %367 = vector.multi_reduction <add>, %364, %cst_180 [1] : vector<8x128xf32> to vector<8xf32>
    %368 = vector.shape_cast %367 : vector<8xf32> to vector<8x1xf32>
    %cst_181 = arith.constant 1.280000e+02 : f32
    %369 = vector.broadcast %cst_181 : f32 to vector<8x1xf32>
    %370 = arith.divf %368, %369 : vector<8x1xf32>
    %371 = vector.broadcast %370 : vector<8x1xf32> to vector<8x128xf32>
    %372 = arith.subf %364, %371 : vector<8x128xf32>
    %373 = arith.mulf %372, %372 : vector<8x128xf32>
    %cst_182 = arith.constant dense<0.000000e+00> : vector<8xf32>
    %374 = vector.multi_reduction <add>, %373, %cst_182 [1] : vector<8x128xf32> to vector<8xf32>
    %375 = vector.shape_cast %374 : vector<8xf32> to vector<8x1xf32>
    %cst_183 = arith.constant 1.280000e+02 : f32
    %376 = vector.broadcast %cst_183 : f32 to vector<8x1xf32>
    %377 = arith.divf %375, %376 : vector<8x1xf32>
    %cst_184 = arith.constant 9.99999974E-6 : f32
    %378 = vector.broadcast %cst_184 : f32 to vector<8x1xf32>
    %379 = arith.addf %377, %378 : vector<8x1xf32>
    %380 = math.rsqrt %379 : vector<8x1xf32>
    %381 = vector.broadcast %380 : vector<8x1xf32> to vector<8x128xf32>
    %382 = arith.mulf %372, %381 : vector<8x128xf32>
    %383 = vector.broadcast %365 : vector<1x128xf32> to vector<8x128xf32>
    %384 = arith.mulf %382, %383 : vector<8x128xf32>
    %385 = vector.broadcast %366 : vector<1x128xf32> to vector<8x128xf32>
    %386 = arith.addf %384, %385 : vector<8x128xf32>
    %cst_185 = arith.constant dense<0.000000e+00> : vector<8xf32>
    %387 = vector.multi_reduction <add>, %386, %cst_185 [1] : vector<8x128xf32> to vector<8xf32>
    %388 = vector.shape_cast %387 : vector<8xf32> to vector<8x1xf32>
    %cst_186 = arith.constant 1.280000e+02 : f32
    %389 = vector.broadcast %cst_186 : f32 to vector<8x1xf32>
    %390 = arith.divf %388, %389 : vector<8x1xf32>
    %391 = vector.broadcast %390 : vector<8x1xf32> to vector<8x128xf32>
    %392 = arith.subf %386, %391 : vector<8x128xf32>
    %393 = arith.mulf %392, %392 : vector<8x128xf32>
    %cst_187 = arith.constant dense<0.000000e+00> : vector<8xf32>
    %394 = vector.multi_reduction <add>, %393, %cst_187 [1] : vector<8x128xf32> to vector<8xf32>
    %395 = vector.shape_cast %394 : vector<8xf32> to vector<8x1xf32>
    %cst_188 = arith.constant 1.280000e+02 : f32
    %396 = vector.broadcast %cst_188 : f32 to vector<8x1xf32>
    %397 = arith.divf %395, %396 : vector<8x1xf32>
    %cst_189 = arith.constant 9.99999974E-6 : f32
    %398 = vector.broadcast %cst_189 : f32 to vector<8x1xf32>
    %399 = arith.addf %397, %398 : vector<8x1xf32>
    %400 = math.rsqrt %399 : vector<8x1xf32>
    %401 = vector.broadcast %400 : vector<8x1xf32> to vector<8x128xf32>
    %402 = arith.mulf %392, %401 : vector<8x128xf32>
    %c0_i32_190 = arith.constant 0 : i32
    %c0_i32_191 = arith.constant 0 : i32
    %c0_i32_192 = arith.constant 0 : i32
    %c0_i32_193 = arith.constant 0 : i32
    %c0_i32_194 = arith.constant 0 : i32
    %403 = tpu.memref_slice %arg6[%c0_i32_190, %c0_i32_193, %c0_i32_194] : memref<2x128x896xbf16, #tpu.memory_space<any>> -> memref<1x128x896xbf16, #tpu.memory_space<any>>
    %404 = tpu.memref_squeeze %403 : memref<1x128x896xbf16, #tpu.memory_space<any>> -> memref<128x896xbf16, #tpu.memory_space<any>>
    %c0_i32_195 = arith.constant 0 : i32
    %c0_i32_196 = arith.constant 0 : i32
    %405 = tpu.memref_slice %arg10[%c0_i32_191, %c0_i32_195, %c0_i32_196] : memref<2x128x896xbf16, #tpu.memory_space<vmem>> -> memref<1x128x896xbf16, #tpu.memory_space<vmem>>
    %406 = tpu.memref_squeeze %405 : memref<1x128x896xbf16, #tpu.memory_space<vmem>> -> memref<128x896xbf16, #tpu.memory_space<vmem>>
    %407 = tpu.memref_slice %arg13[%c0_i32_192] : memref<2x!tpu.dma_semaphore, #tpu.memory_space<semaphore_mem>> -> memref<1x!tpu.dma_semaphore, #tpu.memory_space<semaphore_mem>>
    %408 = tpu.memref_squeeze %407 : memref<1x!tpu.dma_semaphore, #tpu.memory_space<semaphore_mem>> -> memref<!tpu.dma_semaphore, #tpu.memory_space<semaphore_mem>>
    tpu.wait_dma2 semaphore(%408 : memref<!tpu.dma_semaphore, #tpu.memory_space<semaphore_mem>>) src(%404 : memref<128x896xbf16, #tpu.memory_space<any>>) dst(%406 : memref<128x896xbf16, #tpu.memory_space<vmem>>)
    %c0_197 = arith.constant 0 : index
    %c0_198 = arith.constant 0 : index
    %c0_199 = arith.constant 0 : index
    %409 = vector.load %arg10[%c0_197, %c0_198, %c0_199] : memref<2x128x896xbf16, #tpu.memory_space<vmem>>, vector<1x128x128xbf16>
    %410 = vector.shape_cast %409 : vector<1x128x128xbf16> to vector<128x128xbf16>
    %c0_200 = arith.constant 0 : index
    %c0_201 = arith.constant 0 : index
    %c128 = arith.constant 128 : index
    %411 = vector.load %arg10[%c0_200, %c0_201, %c128] : memref<2x128x896xbf16, #tpu.memory_space<vmem>>, vector<1x128x128xbf16>
    %412 = vector.shape_cast %411 : vector<1x128x128xbf16> to vector<128x128xbf16>
    %c0_202 = arith.constant 0 : index
    %c0_203 = arith.constant 0 : index
    %c256 = arith.constant 256 : index
    %413 = vector.load %arg10[%c0_202, %c0_203, %c256] : memref<2x128x896xbf16, #tpu.memory_space<vmem>>, vector<1x128x256xbf16>
    %414 = vector.shape_cast %413 : vector<1x128x256xbf16> to vector<128x256xbf16>
    %c0_204 = arith.constant 0 : index
    %c0_205 = arith.constant 0 : index
    %c512_206 = arith.constant 512 : index
    %415 = vector.load %arg10[%c0_204, %c0_205, %c512_206] : memref<2x128x896xbf16, #tpu.memory_space<vmem>>, vector<1x128x128xbf16>
    %416 = vector.shape_cast %415 : vector<1x128x128xbf16> to vector<128x128xbf16>
    %c0_207 = arith.constant 0 : index
    %c0_208 = arith.constant 0 : index
    %c640_209 = arith.constant 640 : index
    %417 = vector.load %arg10[%c0_207, %c0_208, %c640_209] : memref<2x128x896xbf16, #tpu.memory_space<vmem>>, vector<1x128x256xbf16>
    %418 = vector.shape_cast %417 : vector<1x128x256xbf16> to vector<128x256xbf16>
    %c21 = arith.constant 21 : index
    %c0_210 = arith.constant 0 : index
    %419 = vector.load %arg2[%c21, %c0_210] : memref<45x128xf32, #tpu.memory_space<vmem>>, vector<1x128xf32>
    %420 = arith.truncf %90 : vector<1x128xf32> to vector<1x128xbf16>
    %cst_211 = arith.constant dense<0.000000e+00> : vector<1x128xf32>
    %421 = tpu.matmul %420, %410, %cst_211 {dimension_numbers = #tpu.dot_dimension_numbers<[1], [0], [0], [1], [0, 0, 1, 1], [], []>} : vector<1x128xbf16>, vector<128x128xbf16>, vector<1x128xf32> -> vector<1x128xf32>
    %422 = arith.addf %421, %419 : vector<1x128xf32>
    %423 = arith.addf %90, %422 : vector<1x128xf32>
    %c22 = arith.constant 22 : index
    %c0_212 = arith.constant 0 : index
    %424 = vector.load %arg2[%c22, %c0_212] : memref<45x128xf32, #tpu.memory_space<vmem>>, vector<1x128xf32>
    %c23 = arith.constant 23 : index
    %c0_213 = arith.constant 0 : index
    %425 = vector.load %arg2[%c23, %c0_213] : memref<45x128xf32, #tpu.memory_space<vmem>>, vector<1x128xf32>
    %cst_214 = arith.constant dense<0.000000e+00> : vector<1xf32>
    %426 = vector.multi_reduction <add>, %423, %cst_214 [1] : vector<1x128xf32> to vector<1xf32>
    %427 = vector.shape_cast %426 : vector<1xf32> to vector<1x1xf32>
    %cst_215 = arith.constant 1.280000e+02 : f32
    %428 = vector.broadcast %cst_215 : f32 to vector<1x1xf32>
    %429 = arith.divf %427, %428 : vector<1x1xf32>
    %430 = vector.broadcast %429 : vector<1x1xf32> to vector<1x128xf32>
    %431 = arith.subf %423, %430 : vector<1x128xf32>
    %432 = arith.mulf %431, %431 : vector<1x128xf32>
    %cst_216 = arith.constant dense<0.000000e+00> : vector<1xf32>
    %433 = vector.multi_reduction <add>, %432, %cst_216 [1] : vector<1x128xf32> to vector<1xf32>
    %434 = vector.shape_cast %433 : vector<1xf32> to vector<1x1xf32>
    %cst_217 = arith.constant 1.280000e+02 : f32
    %435 = vector.broadcast %cst_217 : f32 to vector<1x1xf32>
    %436 = arith.divf %434, %435 : vector<1x1xf32>
    %cst_218 = arith.constant 9.99999974E-6 : f32
    %437 = vector.broadcast %cst_218 : f32 to vector<1x1xf32>
    %438 = arith.addf %436, %437 : vector<1x1xf32>
    %439 = math.rsqrt %438 : vector<1x1xf32>
    %440 = vector.broadcast %439 : vector<1x1xf32> to vector<1x128xf32>
    %441 = arith.mulf %431, %440 : vector<1x128xf32>
    %442 = arith.mulf %441, %424 : vector<1x128xf32>
    %443 = arith.addf %442, %425 : vector<1x128xf32>
    %c24 = arith.constant 24 : index
    %c0_219 = arith.constant 0 : index
    %444 = vector.load %arg2[%c24, %c0_219] : memref<45x128xf32, #tpu.memory_space<vmem>>, vector<1x128xf32>
    %445 = arith.truncf %443 : vector<1x128xf32> to vector<1x128xbf16>
    %cst_220 = arith.constant dense<0.000000e+00> : vector<1x128xf32>
    %446 = tpu.matmul %445, %412, %cst_220 {dimension_numbers = #tpu.dot_dimension_numbers<[1], [0], [0], [1], [0, 0, 1, 1], [], []>} : vector<1x128xbf16>, vector<128x128xbf16>, vector<1x128xf32> -> vector<1x128xf32>
    %447 = arith.addf %446, %444 : vector<1x128xf32>
    %448 = arith.truncf %402 : vector<8x128xf32> to vector<8x128xbf16>
    %cst_221 = arith.constant dense<0.000000e+00> : vector<8x256xf32>
    %449 = tpu.matmul %448, %414, %cst_221 {dimension_numbers = #tpu.dot_dimension_numbers<[1], [0], [0], [1], [0, 0, 1, 1], [], []>} : vector<8x128xbf16>, vector<128x256xbf16>, vector<8x256xf32> -> vector<8x256xf32>
    %450 = vector.extract_strided_slice %449 {offsets = [0, 0], sizes = [8, 128], strides = [1, 1]} : vector<8x256xf32> to vector<8x128xf32>
    %c25 = arith.constant 25 : index
    %c0_222 = arith.constant 0 : index
    %451 = vector.load %arg2[%c25, %c0_222] : memref<45x128xf32, #tpu.memory_space<vmem>>, vector<1x128xf32>
    %452 = vector.broadcast %451 : vector<1x128xf32> to vector<8x128xf32>
    %453 = arith.addf %450, %452 : vector<8x128xf32>
    %454 = vector.extract_strided_slice %449 {offsets = [0, 128], sizes = [8, 128], strides = [1, 1]} : vector<8x256xf32> to vector<8x128xf32>
    %c26 = arith.constant 26 : index
    %c0_223 = arith.constant 0 : index
    %455 = vector.load %arg2[%c26, %c0_223] : memref<45x128xf32, #tpu.memory_space<vmem>>, vector<1x128xf32>
    %456 = vector.broadcast %455 : vector<1x128xf32> to vector<8x128xf32>
    %457 = arith.addf %454, %456 : vector<8x128xf32>
    %458 = arith.mulf %447, %55 : vector<1x128xf32>
    %459 = arith.mulf %447, %62 : vector<1x128xf32>
    %460 = arith.mulf %447, %69 : vector<1x128xf32>
    %461 = arith.mulf %447, %76 : vector<1x128xf32>
    %462 = tpu.concatenate %458, %459, %460, %461 in 0 : vector<1x128xf32>, vector<1x128xf32>, vector<1x128xf32>, vector<1x128xf32> -> vector<4x128xf32>
    %463 = arith.truncf %462 : vector<4x128xf32> to vector<4x128xbf16>
    %464 = arith.truncf %453 : vector<8x128xf32> to vector<8x128xbf16>
    %cst_224 = arith.constant dense<0.000000e+00> : vector<4x8xf32>
    %465 = tpu.matmul %463, %464, %cst_224 {dimension_numbers = #tpu.dot_dimension_numbers<[1], [1], [0], [0], [0, 0, 1, 0], [], []>} : vector<4x128xbf16>, vector<8x128xbf16>, vector<4x8xf32> -> vector<4x8xf32>
    %cst_225 = arith.constant 0.176776692 : f32
    %466 = vector.broadcast %cst_225 : f32 to vector<4x8xf32>
    %467 = arith.mulf %465, %466 : vector<4x8xf32>
    %cst_226 = arith.constant dense<0xFF800000> : vector<4xf32>
    %468 = vector.multi_reduction <maximumf>, %467, %cst_226 [1] : vector<4x8xf32> to vector<4xf32>
    %469 = vector.shape_cast %468 : vector<4xf32> to vector<4x1xf32>
    %470 = vector.broadcast %469 : vector<4x1xf32> to vector<4x8xf32>
    %471 = arith.subf %467, %470 : vector<4x8xf32>
    %472 = math.exp %471 : vector<4x8xf32>
    %cst_227 = arith.constant dense<0.000000e+00> : vector<4xf32>
    %473 = vector.multi_reduction <add>, %472, %cst_227 [1] : vector<4x8xf32> to vector<4xf32>
    %474 = vector.shape_cast %473 : vector<4xf32> to vector<4x1xf32>
    %475 = tpu.reciprocal %474 {approx = true} : vector<4x1xf32> -> vector<4x1xf32>
    %476 = vector.broadcast %475 : vector<4x1xf32> to vector<4x8xf32>
    %477 = arith.mulf %472, %476 : vector<4x8xf32>
    %478 = vector.extract_strided_slice %477 {offsets = [0, 0], sizes = [1, 8], strides = [1, 1]} : vector<4x8xf32> to vector<1x8xf32>
    %479 = arith.truncf %478 : vector<1x8xf32> to vector<1x8xbf16>
    %480 = vector.broadcast %55 : vector<1x128xf32> to vector<8x128xf32>
    %481 = arith.mulf %457, %480 : vector<8x128xf32>
    %482 = arith.truncf %481 : vector<8x128xf32> to vector<8x128xbf16>
    %cst_228 = arith.constant dense<0.000000e+00> : vector<1x128xf32>
    %483 = tpu.matmul %479, %482, %cst_228 {dimension_numbers = #tpu.dot_dimension_numbers<[1], [0], [0], [1], [0, 0, 1, 1], [], []>} : vector<1x8xbf16>, vector<8x128xbf16>, vector<1x128xf32> -> vector<1x128xf32>
    %484 = vector.extract_strided_slice %477 {offsets = [1, 0], sizes = [1, 8], strides = [1, 1]} : vector<4x8xf32> to vector<1x8xf32>
    %485 = arith.truncf %484 : vector<1x8xf32> to vector<1x8xbf16>
    %486 = vector.broadcast %62 : vector<1x128xf32> to vector<8x128xf32>
    %487 = arith.mulf %457, %486 : vector<8x128xf32>
    %488 = arith.truncf %487 : vector<8x128xf32> to vector<8x128xbf16>
    %cst_229 = arith.constant dense<0.000000e+00> : vector<1x128xf32>
    %489 = tpu.matmul %485, %488, %cst_229 {dimension_numbers = #tpu.dot_dimension_numbers<[1], [0], [0], [1], [0, 0, 1, 1], [], []>} : vector<1x8xbf16>, vector<8x128xbf16>, vector<1x128xf32> -> vector<1x128xf32>
    %490 = arith.addf %483, %489 : vector<1x128xf32>
    %491 = vector.extract_strided_slice %477 {offsets = [2, 0], sizes = [1, 8], strides = [1, 1]} : vector<4x8xf32> to vector<1x8xf32>
    %492 = arith.truncf %491 : vector<1x8xf32> to vector<1x8xbf16>
    %493 = vector.broadcast %69 : vector<1x128xf32> to vector<8x128xf32>
    %494 = arith.mulf %457, %493 : vector<8x128xf32>
    %495 = arith.truncf %494 : vector<8x128xf32> to vector<8x128xbf16>
    %cst_230 = arith.constant dense<0.000000e+00> : vector<1x128xf32>
    %496 = tpu.matmul %492, %495, %cst_230 {dimension_numbers = #tpu.dot_dimension_numbers<[1], [0], [0], [1], [0, 0, 1, 1], [], []>} : vector<1x8xbf16>, vector<8x128xbf16>, vector<1x128xf32> -> vector<1x128xf32>
    %497 = arith.addf %490, %496 : vector<1x128xf32>
    %498 = vector.extract_strided_slice %477 {offsets = [3, 0], sizes = [1, 8], strides = [1, 1]} : vector<4x8xf32> to vector<1x8xf32>
    %499 = arith.truncf %498 : vector<1x8xf32> to vector<1x8xbf16>
    %500 = vector.broadcast %76 : vector<1x128xf32> to vector<8x128xf32>
    %501 = arith.mulf %457, %500 : vector<8x128xf32>
    %502 = arith.truncf %501 : vector<8x128xf32> to vector<8x128xbf16>
    %cst_231 = arith.constant dense<0.000000e+00> : vector<1x128xf32>
    %503 = tpu.matmul %499, %502, %cst_231 {dimension_numbers = #tpu.dot_dimension_numbers<[1], [0], [0], [1], [0, 0, 1, 1], [], []>} : vector<1x8xbf16>, vector<8x128xbf16>, vector<1x128xf32> -> vector<1x128xf32>
    %504 = arith.addf %497, %503 : vector<1x128xf32>
    %c27 = arith.constant 27 : index
    %c0_232 = arith.constant 0 : index
    %505 = vector.load %arg2[%c27, %c0_232] : memref<45x128xf32, #tpu.memory_space<vmem>>, vector<1x128xf32>
    %506 = arith.truncf %504 : vector<1x128xf32> to vector<1x128xbf16>
    %cst_233 = arith.constant dense<0.000000e+00> : vector<1x128xf32>
    %507 = tpu.matmul %506, %416, %cst_233 {dimension_numbers = #tpu.dot_dimension_numbers<[1], [0], [0], [1], [0, 0, 1, 1], [], []>} : vector<1x128xbf16>, vector<128x128xbf16>, vector<1x128xf32> -> vector<1x128xf32>
    %508 = arith.addf %507, %505 : vector<1x128xf32>
    %509 = arith.addf %443, %508 : vector<1x128xf32>
    %c28 = arith.constant 28 : index
    %c0_234 = arith.constant 0 : index
    %510 = vector.load %arg2[%c28, %c0_234] : memref<45x128xf32, #tpu.memory_space<vmem>>, vector<1x128xf32>
    %c29 = arith.constant 29 : index
    %c0_235 = arith.constant 0 : index
    %511 = vector.load %arg2[%c29, %c0_235] : memref<45x128xf32, #tpu.memory_space<vmem>>, vector<1x128xf32>
    %cst_236 = arith.constant dense<0.000000e+00> : vector<1xf32>
    %512 = vector.multi_reduction <add>, %509, %cst_236 [1] : vector<1x128xf32> to vector<1xf32>
    %513 = vector.shape_cast %512 : vector<1xf32> to vector<1x1xf32>
    %cst_237 = arith.constant 1.280000e+02 : f32
    %514 = vector.broadcast %cst_237 : f32 to vector<1x1xf32>
    %515 = arith.divf %513, %514 : vector<1x1xf32>
    %516 = vector.broadcast %515 : vector<1x1xf32> to vector<1x128xf32>
    %517 = arith.subf %509, %516 : vector<1x128xf32>
    %518 = arith.mulf %517, %517 : vector<1x128xf32>
    %cst_238 = arith.constant dense<0.000000e+00> : vector<1xf32>
    %519 = vector.multi_reduction <add>, %518, %cst_238 [1] : vector<1x128xf32> to vector<1xf32>
    %520 = vector.shape_cast %519 : vector<1xf32> to vector<1x1xf32>
    %cst_239 = arith.constant 1.280000e+02 : f32
    %521 = vector.broadcast %cst_239 : f32 to vector<1x1xf32>
    %522 = arith.divf %520, %521 : vector<1x1xf32>
    %cst_240 = arith.constant 9.99999974E-6 : f32
    %523 = vector.broadcast %cst_240 : f32 to vector<1x1xf32>
    %524 = arith.addf %522, %523 : vector<1x1xf32>
    %525 = math.rsqrt %524 : vector<1x1xf32>
    %526 = vector.broadcast %525 : vector<1x1xf32> to vector<1x128xf32>
    %527 = arith.mulf %517, %526 : vector<1x128xf32>
    %528 = arith.mulf %527, %510 : vector<1x128xf32>
    %529 = arith.addf %528, %511 : vector<1x128xf32>
    %c2_i32_241 = arith.constant 2 : i32
    %c2_i32_242 = arith.constant 2 : i32
    %c2_i32_243 = arith.constant 2 : i32
    %c0_i32_244 = arith.constant 0 : i32
    %c0_i32_245 = arith.constant 0 : i32
    %530 = tpu.memref_slice %arg7[%c2_i32_241, %c0_i32_244, %c0_i32_245] : memref<4x256x128xbf16, #tpu.memory_space<any>> -> memref<1x256x128xbf16, #tpu.memory_space<any>>
    %531 = tpu.memref_squeeze %530 : memref<1x256x128xbf16, #tpu.memory_space<any>> -> memref<256x128xbf16, #tpu.memory_space<any>>
    %c0_i32_246 = arith.constant 0 : i32
    %c0_i32_247 = arith.constant 0 : i32
    %532 = tpu.memref_slice %arg11[%c2_i32_242, %c0_i32_246, %c0_i32_247] : memref<4x256x128xbf16, #tpu.memory_space<vmem>> -> memref<1x256x128xbf16, #tpu.memory_space<vmem>>
    %533 = tpu.memref_squeeze %532 : memref<1x256x128xbf16, #tpu.memory_space<vmem>> -> memref<256x128xbf16, #tpu.memory_space<vmem>>
    %534 = tpu.memref_slice %arg14[%c2_i32_243] : memref<4x!tpu.dma_semaphore, #tpu.memory_space<semaphore_mem>> -> memref<1x!tpu.dma_semaphore, #tpu.memory_space<semaphore_mem>>
    %535 = tpu.memref_squeeze %534 : memref<1x!tpu.dma_semaphore, #tpu.memory_space<semaphore_mem>> -> memref<!tpu.dma_semaphore, #tpu.memory_space<semaphore_mem>>
    tpu.wait_dma2 semaphore(%535 : memref<!tpu.dma_semaphore, #tpu.memory_space<semaphore_mem>>) src(%531 : memref<256x128xbf16, #tpu.memory_space<any>>) dst(%533 : memref<256x128xbf16, #tpu.memory_space<vmem>>)
    %c2 = arith.constant 2 : index
    %c0_248 = arith.constant 0 : index
    %536 = vector.load %arg3[%c2, %c0_248] : memref<4x256xf32, #tpu.memory_space<vmem>>, vector<1x256xf32>
    %537 = arith.truncf %529 : vector<1x128xf32> to vector<1x128xbf16>
    %cst_249 = arith.constant dense<0.000000e+00> : vector<1x256xf32>
    %538 = tpu.matmul %537, %418, %cst_249 {dimension_numbers = #tpu.dot_dimension_numbers<[1], [0], [0], [1], [0, 0, 1, 1], [], []>} : vector<1x128xbf16>, vector<128x256xbf16>, vector<1x256xf32> -> vector<1x256xf32>
    %539 = arith.addf %538, %536 : vector<1x256xf32>
    %cst_250 = arith.constant 0.000000e+00 : f32
    %540 = vector.broadcast %cst_250 : f32 to vector<1x256xf32>
    %541 = arith.maximumf %539, %540 : vector<1x256xf32>
    %c2_251 = arith.constant 2 : index
    %c0_252 = arith.constant 0 : index
    %c0_253 = arith.constant 0 : index
    %542 = vector.load %arg11[%c2_251, %c0_252, %c0_253] : memref<4x256x128xbf16, #tpu.memory_space<vmem>>, vector<1x256x128xbf16>
    %543 = vector.shape_cast %542 : vector<1x256x128xbf16> to vector<256x128xbf16>
    %c30 = arith.constant 30 : index
    %c0_254 = arith.constant 0 : index
    %544 = vector.load %arg2[%c30, %c0_254] : memref<45x128xf32, #tpu.memory_space<vmem>>, vector<1x128xf32>
    %545 = arith.truncf %541 : vector<1x256xf32> to vector<1x256xbf16>
    %cst_255 = arith.constant dense<0.000000e+00> : vector<1x128xf32>
    %546 = tpu.matmul %545, %543, %cst_255 {dimension_numbers = #tpu.dot_dimension_numbers<[1], [0], [0], [1], [0, 0, 1, 1], [], []>} : vector<1x256xbf16>, vector<256x128xbf16>, vector<1x128xf32> -> vector<1x128xf32>
    %547 = arith.addf %546, %544 : vector<1x128xf32>
    %548 = arith.addf %529, %547 : vector<1x128xf32>
    %c31 = arith.constant 31 : index
    %c0_256 = arith.constant 0 : index
    %549 = vector.load %arg2[%c31, %c0_256] : memref<45x128xf32, #tpu.memory_space<vmem>>, vector<1x128xf32>
    %c32 = arith.constant 32 : index
    %c0_257 = arith.constant 0 : index
    %550 = vector.load %arg2[%c32, %c0_257] : memref<45x128xf32, #tpu.memory_space<vmem>>, vector<1x128xf32>
    %cst_258 = arith.constant dense<0.000000e+00> : vector<1xf32>
    %551 = vector.multi_reduction <add>, %548, %cst_258 [1] : vector<1x128xf32> to vector<1xf32>
    %552 = vector.shape_cast %551 : vector<1xf32> to vector<1x1xf32>
    %cst_259 = arith.constant 1.280000e+02 : f32
    %553 = vector.broadcast %cst_259 : f32 to vector<1x1xf32>
    %554 = arith.divf %552, %553 : vector<1x1xf32>
    %555 = vector.broadcast %554 : vector<1x1xf32> to vector<1x128xf32>
    %556 = arith.subf %548, %555 : vector<1x128xf32>
    %557 = arith.mulf %556, %556 : vector<1x128xf32>
    %cst_260 = arith.constant dense<0.000000e+00> : vector<1xf32>
    %558 = vector.multi_reduction <add>, %557, %cst_260 [1] : vector<1x128xf32> to vector<1xf32>
    %559 = vector.shape_cast %558 : vector<1xf32> to vector<1x1xf32>
    %cst_261 = arith.constant 1.280000e+02 : f32
    %560 = vector.broadcast %cst_261 : f32 to vector<1x1xf32>
    %561 = arith.divf %559, %560 : vector<1x1xf32>
    %cst_262 = arith.constant 9.99999974E-6 : f32
    %562 = vector.broadcast %cst_262 : f32 to vector<1x1xf32>
    %563 = arith.addf %561, %562 : vector<1x1xf32>
    %564 = math.rsqrt %563 : vector<1x1xf32>
    %565 = vector.broadcast %564 : vector<1x1xf32> to vector<1x128xf32>
    %566 = arith.mulf %556, %565 : vector<1x128xf32>
    %567 = arith.mulf %566, %549 : vector<1x128xf32>
    %568 = arith.addf %567, %550 : vector<1x128xf32>
    %c1_i32_263 = arith.constant 1 : i32
    %c1_i32_264 = arith.constant 1 : i32
    %c1_i32_265 = arith.constant 1 : i32
    %c0_i32_266 = arith.constant 0 : i32
    %c0_i32_267 = arith.constant 0 : i32
    %569 = tpu.memref_slice %arg6[%c1_i32_263, %c0_i32_266, %c0_i32_267] : memref<2x128x896xbf16, #tpu.memory_space<any>> -> memref<1x128x896xbf16, #tpu.memory_space<any>>
    %570 = tpu.memref_squeeze %569 : memref<1x128x896xbf16, #tpu.memory_space<any>> -> memref<128x896xbf16, #tpu.memory_space<any>>
    %c0_i32_268 = arith.constant 0 : i32
    %c0_i32_269 = arith.constant 0 : i32
    %571 = tpu.memref_slice %arg10[%c1_i32_264, %c0_i32_268, %c0_i32_269] : memref<2x128x896xbf16, #tpu.memory_space<vmem>> -> memref<1x128x896xbf16, #tpu.memory_space<vmem>>
    %572 = tpu.memref_squeeze %571 : memref<1x128x896xbf16, #tpu.memory_space<vmem>> -> memref<128x896xbf16, #tpu.memory_space<vmem>>
    %573 = tpu.memref_slice %arg13[%c1_i32_265] : memref<2x!tpu.dma_semaphore, #tpu.memory_space<semaphore_mem>> -> memref<1x!tpu.dma_semaphore, #tpu.memory_space<semaphore_mem>>
    %574 = tpu.memref_squeeze %573 : memref<1x!tpu.dma_semaphore, #tpu.memory_space<semaphore_mem>> -> memref<!tpu.dma_semaphore, #tpu.memory_space<semaphore_mem>>
    tpu.wait_dma2 semaphore(%574 : memref<!tpu.dma_semaphore, #tpu.memory_space<semaphore_mem>>) src(%570 : memref<128x896xbf16, #tpu.memory_space<any>>) dst(%572 : memref<128x896xbf16, #tpu.memory_space<vmem>>)
    %c1_270 = arith.constant 1 : index
    %c0_271 = arith.constant 0 : index
    %c0_272 = arith.constant 0 : index
    %575 = vector.load %arg10[%c1_270, %c0_271, %c0_272] : memref<2x128x896xbf16, #tpu.memory_space<vmem>>, vector<1x128x128xbf16>
    %576 = vector.shape_cast %575 : vector<1x128x128xbf16> to vector<128x128xbf16>
    %c1_273 = arith.constant 1 : index
    %c0_274 = arith.constant 0 : index
    %c128_275 = arith.constant 128 : index
    %577 = vector.load %arg10[%c1_273, %c0_274, %c128_275] : memref<2x128x896xbf16, #tpu.memory_space<vmem>>, vector<1x128x128xbf16>
    %578 = vector.shape_cast %577 : vector<1x128x128xbf16> to vector<128x128xbf16>
    %c1_276 = arith.constant 1 : index
    %c0_277 = arith.constant 0 : index
    %c256_278 = arith.constant 256 : index
    %579 = vector.load %arg10[%c1_276, %c0_277, %c256_278] : memref<2x128x896xbf16, #tpu.memory_space<vmem>>, vector<1x128x256xbf16>
    %580 = vector.shape_cast %579 : vector<1x128x256xbf16> to vector<128x256xbf16>
    %c1_279 = arith.constant 1 : index
    %c0_280 = arith.constant 0 : index
    %c512_281 = arith.constant 512 : index
    %581 = vector.load %arg10[%c1_279, %c0_280, %c512_281] : memref<2x128x896xbf16, #tpu.memory_space<vmem>>, vector<1x128x128xbf16>
    %582 = vector.shape_cast %581 : vector<1x128x128xbf16> to vector<128x128xbf16>
    %c1_282 = arith.constant 1 : index
    %c0_283 = arith.constant 0 : index
    %c640_284 = arith.constant 640 : index
    %583 = vector.load %arg10[%c1_282, %c0_283, %c640_284] : memref<2x128x896xbf16, #tpu.memory_space<vmem>>, vector<1x128x256xbf16>
    %584 = vector.shape_cast %583 : vector<1x128x256xbf16> to vector<128x256xbf16>
    %c33 = arith.constant 33 : index
    %c0_285 = arith.constant 0 : index
    %585 = vector.load %arg2[%c33, %c0_285] : memref<45x128xf32, #tpu.memory_space<vmem>>, vector<1x128xf32>
    %586 = arith.truncf %568 : vector<1x128xf32> to vector<1x128xbf16>
    %cst_286 = arith.constant dense<0.000000e+00> : vector<1x128xf32>
    %587 = tpu.matmul %586, %576, %cst_286 {dimension_numbers = #tpu.dot_dimension_numbers<[1], [0], [0], [1], [0, 0, 1, 1], [], []>} : vector<1x128xbf16>, vector<128x128xbf16>, vector<1x128xf32> -> vector<1x128xf32>
    %588 = arith.addf %587, %585 : vector<1x128xf32>
    %589 = arith.addf %568, %588 : vector<1x128xf32>
    %c34 = arith.constant 34 : index
    %c0_287 = arith.constant 0 : index
    %590 = vector.load %arg2[%c34, %c0_287] : memref<45x128xf32, #tpu.memory_space<vmem>>, vector<1x128xf32>
    %c35 = arith.constant 35 : index
    %c0_288 = arith.constant 0 : index
    %591 = vector.load %arg2[%c35, %c0_288] : memref<45x128xf32, #tpu.memory_space<vmem>>, vector<1x128xf32>
    %cst_289 = arith.constant dense<0.000000e+00> : vector<1xf32>
    %592 = vector.multi_reduction <add>, %589, %cst_289 [1] : vector<1x128xf32> to vector<1xf32>
    %593 = vector.shape_cast %592 : vector<1xf32> to vector<1x1xf32>
    %cst_290 = arith.constant 1.280000e+02 : f32
    %594 = vector.broadcast %cst_290 : f32 to vector<1x1xf32>
    %595 = arith.divf %593, %594 : vector<1x1xf32>
    %596 = vector.broadcast %595 : vector<1x1xf32> to vector<1x128xf32>
    %597 = arith.subf %589, %596 : vector<1x128xf32>
    %598 = arith.mulf %597, %597 : vector<1x128xf32>
    %cst_291 = arith.constant dense<0.000000e+00> : vector<1xf32>
    %599 = vector.multi_reduction <add>, %598, %cst_291 [1] : vector<1x128xf32> to vector<1xf32>
    %600 = vector.shape_cast %599 : vector<1xf32> to vector<1x1xf32>
    %cst_292 = arith.constant 1.280000e+02 : f32
    %601 = vector.broadcast %cst_292 : f32 to vector<1x1xf32>
    %602 = arith.divf %600, %601 : vector<1x1xf32>
    %cst_293 = arith.constant 9.99999974E-6 : f32
    %603 = vector.broadcast %cst_293 : f32 to vector<1x1xf32>
    %604 = arith.addf %602, %603 : vector<1x1xf32>
    %605 = math.rsqrt %604 : vector<1x1xf32>
    %606 = vector.broadcast %605 : vector<1x1xf32> to vector<1x128xf32>
    %607 = arith.mulf %597, %606 : vector<1x128xf32>
    %608 = arith.mulf %607, %590 : vector<1x128xf32>
    %609 = arith.addf %608, %591 : vector<1x128xf32>
    %c36 = arith.constant 36 : index
    %c0_294 = arith.constant 0 : index
    %610 = vector.load %arg2[%c36, %c0_294] : memref<45x128xf32, #tpu.memory_space<vmem>>, vector<1x128xf32>
    %611 = arith.truncf %609 : vector<1x128xf32> to vector<1x128xbf16>
    %cst_295 = arith.constant dense<0.000000e+00> : vector<1x128xf32>
    %612 = tpu.matmul %611, %578, %cst_295 {dimension_numbers = #tpu.dot_dimension_numbers<[1], [0], [0], [1], [0, 0, 1, 1], [], []>} : vector<1x128xbf16>, vector<128x128xbf16>, vector<1x128xf32> -> vector<1x128xf32>
    %613 = arith.addf %612, %610 : vector<1x128xf32>
    %614 = arith.truncf %402 : vector<8x128xf32> to vector<8x128xbf16>
    %cst_296 = arith.constant dense<0.000000e+00> : vector<8x256xf32>
    %615 = tpu.matmul %614, %580, %cst_296 {dimension_numbers = #tpu.dot_dimension_numbers<[1], [0], [0], [1], [0, 0, 1, 1], [], []>} : vector<8x128xbf16>, vector<128x256xbf16>, vector<8x256xf32> -> vector<8x256xf32>
    %616 = vector.extract_strided_slice %615 {offsets = [0, 0], sizes = [8, 128], strides = [1, 1]} : vector<8x256xf32> to vector<8x128xf32>
    %c37 = arith.constant 37 : index
    %c0_297 = arith.constant 0 : index
    %617 = vector.load %arg2[%c37, %c0_297] : memref<45x128xf32, #tpu.memory_space<vmem>>, vector<1x128xf32>
    %618 = vector.broadcast %617 : vector<1x128xf32> to vector<8x128xf32>
    %619 = arith.addf %616, %618 : vector<8x128xf32>
    %620 = vector.extract_strided_slice %615 {offsets = [0, 128], sizes = [8, 128], strides = [1, 1]} : vector<8x256xf32> to vector<8x128xf32>
    %c38 = arith.constant 38 : index
    %c0_298 = arith.constant 0 : index
    %621 = vector.load %arg2[%c38, %c0_298] : memref<45x128xf32, #tpu.memory_space<vmem>>, vector<1x128xf32>
    %622 = vector.broadcast %621 : vector<1x128xf32> to vector<8x128xf32>
    %623 = arith.addf %620, %622 : vector<8x128xf32>
    %624 = arith.mulf %613, %55 : vector<1x128xf32>
    %625 = arith.mulf %613, %62 : vector<1x128xf32>
    %626 = arith.mulf %613, %69 : vector<1x128xf32>
    %627 = arith.mulf %613, %76 : vector<1x128xf32>
    %628 = tpu.concatenate %624, %625, %626, %627 in 0 : vector<1x128xf32>, vector<1x128xf32>, vector<1x128xf32>, vector<1x128xf32> -> vector<4x128xf32>
    %629 = arith.truncf %628 : vector<4x128xf32> to vector<4x128xbf16>
    %630 = arith.truncf %619 : vector<8x128xf32> to vector<8x128xbf16>
    %cst_299 = arith.constant dense<0.000000e+00> : vector<4x8xf32>
    %631 = tpu.matmul %629, %630, %cst_299 {dimension_numbers = #tpu.dot_dimension_numbers<[1], [1], [0], [0], [0, 0, 1, 0], [], []>} : vector<4x128xbf16>, vector<8x128xbf16>, vector<4x8xf32> -> vector<4x8xf32>
    %cst_300 = arith.constant 0.176776692 : f32
    %632 = vector.broadcast %cst_300 : f32 to vector<4x8xf32>
    %633 = arith.mulf %631, %632 : vector<4x8xf32>
    %cst_301 = arith.constant dense<0xFF800000> : vector<4xf32>
    %634 = vector.multi_reduction <maximumf>, %633, %cst_301 [1] : vector<4x8xf32> to vector<4xf32>
    %635 = vector.shape_cast %634 : vector<4xf32> to vector<4x1xf32>
    %636 = vector.broadcast %635 : vector<4x1xf32> to vector<4x8xf32>
    %637 = arith.subf %633, %636 : vector<4x8xf32>
    %638 = math.exp %637 : vector<4x8xf32>
    %cst_302 = arith.constant dense<0.000000e+00> : vector<4xf32>
    %639 = vector.multi_reduction <add>, %638, %cst_302 [1] : vector<4x8xf32> to vector<4xf32>
    %640 = vector.shape_cast %639 : vector<4xf32> to vector<4x1xf32>
    %641 = tpu.reciprocal %640 {approx = true} : vector<4x1xf32> -> vector<4x1xf32>
    %642 = vector.broadcast %641 : vector<4x1xf32> to vector<4x8xf32>
    %643 = arith.mulf %638, %642 : vector<4x8xf32>
    %644 = vector.extract_strided_slice %643 {offsets = [0, 0], sizes = [1, 8], strides = [1, 1]} : vector<4x8xf32> to vector<1x8xf32>
    %645 = arith.truncf %644 : vector<1x8xf32> to vector<1x8xbf16>
    %646 = vector.broadcast %55 : vector<1x128xf32> to vector<8x128xf32>
    %647 = arith.mulf %623, %646 : vector<8x128xf32>
    %648 = arith.truncf %647 : vector<8x128xf32> to vector<8x128xbf16>
    %cst_303 = arith.constant dense<0.000000e+00> : vector<1x128xf32>
    %649 = tpu.matmul %645, %648, %cst_303 {dimension_numbers = #tpu.dot_dimension_numbers<[1], [0], [0], [1], [0, 0, 1, 1], [], []>} : vector<1x8xbf16>, vector<8x128xbf16>, vector<1x128xf32> -> vector<1x128xf32>
    %650 = vector.extract_strided_slice %643 {offsets = [1, 0], sizes = [1, 8], strides = [1, 1]} : vector<4x8xf32> to vector<1x8xf32>
    %651 = arith.truncf %650 : vector<1x8xf32> to vector<1x8xbf16>
    %652 = vector.broadcast %62 : vector<1x128xf32> to vector<8x128xf32>
    %653 = arith.mulf %623, %652 : vector<8x128xf32>
    %654 = arith.truncf %653 : vector<8x128xf32> to vector<8x128xbf16>
    %cst_304 = arith.constant dense<0.000000e+00> : vector<1x128xf32>
    %655 = tpu.matmul %651, %654, %cst_304 {dimension_numbers = #tpu.dot_dimension_numbers<[1], [0], [0], [1], [0, 0, 1, 1], [], []>} : vector<1x8xbf16>, vector<8x128xbf16>, vector<1x128xf32> -> vector<1x128xf32>
    %656 = arith.addf %649, %655 : vector<1x128xf32>
    %657 = vector.extract_strided_slice %643 {offsets = [2, 0], sizes = [1, 8], strides = [1, 1]} : vector<4x8xf32> to vector<1x8xf32>
    %658 = arith.truncf %657 : vector<1x8xf32> to vector<1x8xbf16>
    %659 = vector.broadcast %69 : vector<1x128xf32> to vector<8x128xf32>
    %660 = arith.mulf %623, %659 : vector<8x128xf32>
    %661 = arith.truncf %660 : vector<8x128xf32> to vector<8x128xbf16>
    %cst_305 = arith.constant dense<0.000000e+00> : vector<1x128xf32>
    %662 = tpu.matmul %658, %661, %cst_305 {dimension_numbers = #tpu.dot_dimension_numbers<[1], [0], [0], [1], [0, 0, 1, 1], [], []>} : vector<1x8xbf16>, vector<8x128xbf16>, vector<1x128xf32> -> vector<1x128xf32>
    %663 = arith.addf %656, %662 : vector<1x128xf32>
    %664 = vector.extract_strided_slice %643 {offsets = [3, 0], sizes = [1, 8], strides = [1, 1]} : vector<4x8xf32> to vector<1x8xf32>
    %665 = arith.truncf %664 : vector<1x8xf32> to vector<1x8xbf16>
    %666 = vector.broadcast %76 : vector<1x128xf32> to vector<8x128xf32>
    %667 = arith.mulf %623, %666 : vector<8x128xf32>
    %668 = arith.truncf %667 : vector<8x128xf32> to vector<8x128xbf16>
    %cst_306 = arith.constant dense<0.000000e+00> : vector<1x128xf32>
    %669 = tpu.matmul %665, %668, %cst_306 {dimension_numbers = #tpu.dot_dimension_numbers<[1], [0], [0], [1], [0, 0, 1, 1], [], []>} : vector<1x8xbf16>, vector<8x128xbf16>, vector<1x128xf32> -> vector<1x128xf32>
    %670 = arith.addf %663, %669 : vector<1x128xf32>
    %c39 = arith.constant 39 : index
    %c0_307 = arith.constant 0 : index
    %671 = vector.load %arg2[%c39, %c0_307] : memref<45x128xf32, #tpu.memory_space<vmem>>, vector<1x128xf32>
    %672 = arith.truncf %670 : vector<1x128xf32> to vector<1x128xbf16>
    %cst_308 = arith.constant dense<0.000000e+00> : vector<1x128xf32>
    %673 = tpu.matmul %672, %582, %cst_308 {dimension_numbers = #tpu.dot_dimension_numbers<[1], [0], [0], [1], [0, 0, 1, 1], [], []>} : vector<1x128xbf16>, vector<128x128xbf16>, vector<1x128xf32> -> vector<1x128xf32>
    %674 = arith.addf %673, %671 : vector<1x128xf32>
    %675 = arith.addf %609, %674 : vector<1x128xf32>
    %c40 = arith.constant 40 : index
    %c0_309 = arith.constant 0 : index
    %676 = vector.load %arg2[%c40, %c0_309] : memref<45x128xf32, #tpu.memory_space<vmem>>, vector<1x128xf32>
    %c41 = arith.constant 41 : index
    %c0_310 = arith.constant 0 : index
    %677 = vector.load %arg2[%c41, %c0_310] : memref<45x128xf32, #tpu.memory_space<vmem>>, vector<1x128xf32>
    %cst_311 = arith.constant dense<0.000000e+00> : vector<1xf32>
    %678 = vector.multi_reduction <add>, %675, %cst_311 [1] : vector<1x128xf32> to vector<1xf32>
    %679 = vector.shape_cast %678 : vector<1xf32> to vector<1x1xf32>
    %cst_312 = arith.constant 1.280000e+02 : f32
    %680 = vector.broadcast %cst_312 : f32 to vector<1x1xf32>
    %681 = arith.divf %679, %680 : vector<1x1xf32>
    %682 = vector.broadcast %681 : vector<1x1xf32> to vector<1x128xf32>
    %683 = arith.subf %675, %682 : vector<1x128xf32>
    %684 = arith.mulf %683, %683 : vector<1x128xf32>
    %cst_313 = arith.constant dense<0.000000e+00> : vector<1xf32>
    %685 = vector.multi_reduction <add>, %684, %cst_313 [1] : vector<1x128xf32> to vector<1xf32>
    %686 = vector.shape_cast %685 : vector<1xf32> to vector<1x1xf32>
    %cst_314 = arith.constant 1.280000e+02 : f32
    %687 = vector.broadcast %cst_314 : f32 to vector<1x1xf32>
    %688 = arith.divf %686, %687 : vector<1x1xf32>
    %cst_315 = arith.constant 9.99999974E-6 : f32
    %689 = vector.broadcast %cst_315 : f32 to vector<1x1xf32>
    %690 = arith.addf %688, %689 : vector<1x1xf32>
    %691 = math.rsqrt %690 : vector<1x1xf32>
    %692 = vector.broadcast %691 : vector<1x1xf32> to vector<1x128xf32>
    %693 = arith.mulf %683, %692 : vector<1x128xf32>
    %694 = arith.mulf %693, %676 : vector<1x128xf32>
    %695 = arith.addf %694, %677 : vector<1x128xf32>
    %c3_i32_316 = arith.constant 3 : i32
    %c3_i32_317 = arith.constant 3 : i32
    %c3_i32_318 = arith.constant 3 : i32
    %c0_i32_319 = arith.constant 0 : i32
    %c0_i32_320 = arith.constant 0 : i32
    %696 = tpu.memref_slice %arg7[%c3_i32_316, %c0_i32_319, %c0_i32_320] : memref<4x256x128xbf16, #tpu.memory_space<any>> -> memref<1x256x128xbf16, #tpu.memory_space<any>>
    %697 = tpu.memref_squeeze %696 : memref<1x256x128xbf16, #tpu.memory_space<any>> -> memref<256x128xbf16, #tpu.memory_space<any>>
    %c0_i32_321 = arith.constant 0 : i32
    %c0_i32_322 = arith.constant 0 : i32
    %698 = tpu.memref_slice %arg11[%c3_i32_317, %c0_i32_321, %c0_i32_322] : memref<4x256x128xbf16, #tpu.memory_space<vmem>> -> memref<1x256x128xbf16, #tpu.memory_space<vmem>>
    %699 = tpu.memref_squeeze %698 : memref<1x256x128xbf16, #tpu.memory_space<vmem>> -> memref<256x128xbf16, #tpu.memory_space<vmem>>
    %700 = tpu.memref_slice %arg14[%c3_i32_318] : memref<4x!tpu.dma_semaphore, #tpu.memory_space<semaphore_mem>> -> memref<1x!tpu.dma_semaphore, #tpu.memory_space<semaphore_mem>>
    %701 = tpu.memref_squeeze %700 : memref<1x!tpu.dma_semaphore, #tpu.memory_space<semaphore_mem>> -> memref<!tpu.dma_semaphore, #tpu.memory_space<semaphore_mem>>
    tpu.wait_dma2 semaphore(%701 : memref<!tpu.dma_semaphore, #tpu.memory_space<semaphore_mem>>) src(%697 : memref<256x128xbf16, #tpu.memory_space<any>>) dst(%699 : memref<256x128xbf16, #tpu.memory_space<vmem>>)
    %c3_323 = arith.constant 3 : index
    %c0_324 = arith.constant 0 : index
    %702 = vector.load %arg3[%c3_323, %c0_324] : memref<4x256xf32, #tpu.memory_space<vmem>>, vector<1x256xf32>
    %703 = arith.truncf %695 : vector<1x128xf32> to vector<1x128xbf16>
    %cst_325 = arith.constant dense<0.000000e+00> : vector<1x256xf32>
    %704 = tpu.matmul %703, %584, %cst_325 {dimension_numbers = #tpu.dot_dimension_numbers<[1], [0], [0], [1], [0, 0, 1, 1], [], []>} : vector<1x128xbf16>, vector<128x256xbf16>, vector<1x256xf32> -> vector<1x256xf32>
    %705 = arith.addf %704, %702 : vector<1x256xf32>
    %cst_326 = arith.constant 0.000000e+00 : f32
    %706 = vector.broadcast %cst_326 : f32 to vector<1x256xf32>
    %707 = arith.maximumf %705, %706 : vector<1x256xf32>
    %c3_327 = arith.constant 3 : index
    %c0_328 = arith.constant 0 : index
    %c0_329 = arith.constant 0 : index
    %708 = vector.load %arg11[%c3_327, %c0_328, %c0_329] : memref<4x256x128xbf16, #tpu.memory_space<vmem>>, vector<1x256x128xbf16>
    %709 = vector.shape_cast %708 : vector<1x256x128xbf16> to vector<256x128xbf16>
    %c42 = arith.constant 42 : index
    %c0_330 = arith.constant 0 : index
    %710 = vector.load %arg2[%c42, %c0_330] : memref<45x128xf32, #tpu.memory_space<vmem>>, vector<1x128xf32>
    %711 = arith.truncf %707 : vector<1x256xf32> to vector<1x256xbf16>
    %cst_331 = arith.constant dense<0.000000e+00> : vector<1x128xf32>
    %712 = tpu.matmul %711, %709, %cst_331 {dimension_numbers = #tpu.dot_dimension_numbers<[1], [0], [0], [1], [0, 0, 1, 1], [], []>} : vector<1x256xbf16>, vector<256x128xbf16>, vector<1x128xf32> -> vector<1x128xf32>
    %713 = arith.addf %712, %710 : vector<1x128xf32>
    %714 = arith.addf %695, %713 : vector<1x128xf32>
    %c43 = arith.constant 43 : index
    %c0_332 = arith.constant 0 : index
    %715 = vector.load %arg2[%c43, %c0_332] : memref<45x128xf32, #tpu.memory_space<vmem>>, vector<1x128xf32>
    %c44 = arith.constant 44 : index
    %c0_333 = arith.constant 0 : index
    %716 = vector.load %arg2[%c44, %c0_333] : memref<45x128xf32, #tpu.memory_space<vmem>>, vector<1x128xf32>
    %cst_334 = arith.constant dense<0.000000e+00> : vector<1xf32>
    %717 = vector.multi_reduction <add>, %714, %cst_334 [1] : vector<1x128xf32> to vector<1xf32>
    %718 = vector.shape_cast %717 : vector<1xf32> to vector<1x1xf32>
    %cst_335 = arith.constant 1.280000e+02 : f32
    %719 = vector.broadcast %cst_335 : f32 to vector<1x1xf32>
    %720 = arith.divf %718, %719 : vector<1x1xf32>
    %721 = vector.broadcast %720 : vector<1x1xf32> to vector<1x128xf32>
    %722 = arith.subf %714, %721 : vector<1x128xf32>
    %723 = arith.mulf %722, %722 : vector<1x128xf32>
    %cst_336 = arith.constant dense<0.000000e+00> : vector<1xf32>
    %724 = vector.multi_reduction <add>, %723, %cst_336 [1] : vector<1x128xf32> to vector<1xf32>
    %725 = vector.shape_cast %724 : vector<1xf32> to vector<1x1xf32>
    %cst_337 = arith.constant 1.280000e+02 : f32
    %726 = vector.broadcast %cst_337 : f32 to vector<1x1xf32>
    %727 = arith.divf %725, %726 : vector<1x1xf32>
    %cst_338 = arith.constant 9.99999974E-6 : f32
    %728 = vector.broadcast %cst_338 : f32 to vector<1x1xf32>
    %729 = arith.addf %727, %728 : vector<1x1xf32>
    %730 = math.rsqrt %729 : vector<1x1xf32>
    %731 = vector.broadcast %730 : vector<1x1xf32> to vector<1x128xf32>
    %732 = arith.mulf %722, %731 : vector<1x128xf32>
    %733 = arith.mulf %732, %715 : vector<1x128xf32>
    %734 = arith.addf %733, %716 : vector<1x128xf32>
    %cst_339 = arith.constant dense<0.000000e+00> : vector<1xf32>
    %735 = vector.multi_reduction <add>, %734, %cst_339 [1] : vector<1x128xf32> to vector<1xf32>
    %736 = vector.shape_cast %735 : vector<1xf32> to vector<1x1xf32>
    %cst_340 = arith.constant 1.280000e+02 : f32
    %737 = vector.broadcast %cst_340 : f32 to vector<1x1xf32>
    %738 = arith.divf %736, %737 : vector<1x1xf32>
    %739 = vector.broadcast %738 : vector<1x1xf32> to vector<1x128xf32>
    %740 = arith.subf %734, %739 : vector<1x128xf32>
    %741 = arith.mulf %740, %740 : vector<1x128xf32>
    %cst_341 = arith.constant dense<0.000000e+00> : vector<1xf32>
    %742 = vector.multi_reduction <add>, %741, %cst_341 [1] : vector<1x128xf32> to vector<1xf32>
    %743 = vector.shape_cast %742 : vector<1xf32> to vector<1x1xf32>
    %cst_342 = arith.constant 1.280000e+02 : f32
    %744 = vector.broadcast %cst_342 : f32 to vector<1x1xf32>
    %745 = arith.divf %743, %744 : vector<1x1xf32>
    %cst_343 = arith.constant 9.99999974E-6 : f32
    %746 = vector.broadcast %cst_343 : f32 to vector<1x1xf32>
    %747 = arith.addf %745, %746 : vector<1x1xf32>
    %748 = math.rsqrt %747 : vector<1x1xf32>
    %749 = vector.broadcast %748 : vector<1x1xf32> to vector<1x128xf32>
    %750 = arith.mulf %740, %749 : vector<1x128xf32>
    %c2_344 = arith.constant 2 : index
    %c0_345 = arith.constant 0 : index
    %751 = vector.load %arg2[%c2_344, %c0_345] : memref<45x128xf32, #tpu.memory_space<vmem>>, vector<1x128xf32>
    %752 = arith.truncf %750 : vector<1x128xf32> to vector<1x128xbf16>
    %cst_346 = arith.constant dense<0.000000e+00> : vector<1x128xf32>
    %753 = tpu.matmul %752, %79, %cst_346 {dimension_numbers = #tpu.dot_dimension_numbers<[1], [0], [0], [1], [0, 0, 1, 1], [], []>} : vector<1x128xbf16>, vector<128x128xbf16>, vector<1x128xf32> -> vector<1x128xf32>
    %754 = arith.addf %753, %751 : vector<1x128xf32>
    %c0_347 = arith.constant 0 : index
    %c0_348 = arith.constant 0 : index
    %755 = vector.load %arg8[%c0_347, %c0_348] : memref<1x128xf32, #tpu.memory_space<vmem>>, vector<1x128xf32>
    tpu.vector_store %arg8[%c0_347, %c0_348], %754 {strides = array<i32>} : memref<1x128xf32, #tpu.memory_space<vmem>>, vector<1x128xf32>,
    return
  }
}

</mosaic_0001>

<bundles_post_ra>
// kernel: transformer_pointing_classifier.1
= control target key start
LH: loop header
LB: loop body
LE: loop exit
PB: predicated region body
PF: predicated region fallthrough
CT: control target
= control target key end

     0   :  { %13 = vsyncpa [#allocation9], 0  ;;  %s5833_s0 = inlined_call_operand.hbm [shape: f32[8,640], index: 0, kind: input, shape index: {}]   ;;  %s5834_s1 = inlined_call_operand.vmem [shape: f32[1,128], index: 1, kind: input, shape index: {}]   ;;  %s5835_s2 = inlined_call_operand.hbm [shape: f32[45,128], index: 2, kind: input, shape index: {}]   ;;  %s5836_s3 = inlined_call_operand.vmem [shape: f32[4,256], index: 3, kind: input, shape index: {}]   ;;  %s5837_s4 = inlined_call_operand.hbm [shape: bf16[896,128], index: 4, kind: input, shape index: {}]   ;;  %s5838_s5 = inlined_call_operand.hbm [shape: bf16[2,128,768], index: 5, kind: input, shape index: {}]   ;;  %s5839_s6 = inlined_call_operand.hbm [shape: bf16[2,128,896], index: 6, kind: input, shape index: {}]   ;;  %s5840_s7 = inlined_call_operand.hbm [shape: bf16[4,256,128], index: 7, kind: input, shape index: {}]   ;;  %s5841_s8 = inlined_call_operand.vmem [shape: f32[1,128], index: 8, kind: output, shape index: {}]  }
   0x1   :  { %14 = vsyncpa [#allocation11], 0  ;;  %s4901_s27 = smov [#allocation10]   ;;  %s4718_s9 = scalar_lea.hbm %s5835_s2, 768 }
   0x2   :  { %s32_s28 = sshll.u32 %s4901_s27, 4  ;;  %p4719_p0 = scmp.ne.s32.totalorder %s5835_s2, %s4718_s9  ;;  %s33_s28 = int_to_ptr.vmem [resolvable:$true] %s32_s28 }
   0x3   :  { %p4722_p1 = scmp.lt.u32.totalorder %s4718_s9, %s5835_s2 }
   0x5   :  { %p4724_p2 = pnand %p4722_p1, %p4719_p0 }
   0x7   :  { %4727 = shalt.err (!%p4724_p2)
}
   0x8   :  { %s4728_s14 = scalar_lea.vmem %s33_s28, 768  ;;  %p4733_p4 = scmp.lt.s32.totalorder %s33_s28, %s33_s28 }
   0x9   :  { %p4729_p3 = scmp.ne.s32.totalorder %s33_s28, %s4728_s14  ;;  %p4734_p5 = scmp.lt.s32.totalorder %s4728_s14, %s4728_s14 }
   0xb   :  { %p4735_p6 = por %p4734_p5, %p4733_p4 }
   0xd   :  { %p4736_p7 = pnand %p4735_p6, %p4729_p3 }
   0xf   :  { %4739 = shalt.err (!%p4736_p7)
}
  0x10   :  { %s4902_s15 = smov 128   ;;  %s4903_s16 = smov 8  }
  0x11   :  { %38 = dma.hbm_to_vmem [thread:$0]  %s5835_s2, 768, %s33_s28, [#allocation11], %s4902_s15, %s4902_s15, %s4903_s16  }
  0x12   :  { %s4904_s19 = smov [#allocation8]   ;;  %s4905_s21 = smov [#allocation12]  }
  0x13   :  { %s21_s20 = sshll.u32 %s4904_s19, 4  ;;  %s46_s22 = sshll.u32 %s4905_s21, 4  ;;  %s22_s20 = int_to_ptr.vmem [resolvable:$true] %s21_s20  ;;  %s47_s22 = int_to_ptr.vmem [resolvable:$true] %s46_s22 }
  0x14   :  { %s4740_s25 = scalar_lea.hbm %s5833_s0, 640 }
  0x15   :  { %p4741_p8 = scmp.ne.s32.totalorder %s5833_s0, %s4740_s25  ;;  %p4744_p9 = scmp.lt.u32.totalorder %s4740_s25, %s5833_s0 }
  0x17   :  { %p4746_p10 = pnand %p4744_p9, %p4741_p8 }
  0x19   :  { %4749 = shalt.err (!%p4746_p10)
}
  0x1a   :  { %s4750_s2 = scalar_lea.vmem %s22_s20, 640  ;;  %p4755_p12 = scmp.lt.s32.totalorder %s22_s20, %s22_s20 }
  0x1b   :  { %p4751_p11 = scmp.ne.s32.totalorder %s22_s20, %s4750_s2  ;;  %p4756_p13 = scmp.lt.s32.totalorder %s4750_s2, %s4750_s2 }
  0x1d   :  { %p4757_p0 = por %p4756_p13, %p4755_p12 }
  0x1f   :  { %p4758_p1 = pnand %p4757_p0, %p4751_p11 }
  0x21   :  { %4761 = shalt.err (!%p4758_p1)
}
  0x22   :  { %24 = dma.hbm_to_vmem [thread:$0]  %s5833_s0, 640, %s22_s20, [#allocation9]  }
  0x23   :  { %s4762_s12 = scalar_lea.hbm %s5837_s4, 7168 }
  0x24   :  { %p4763_p2 = scmp.ne.s32.totalorder %s5837_s4, %s4762_s12  ;;  %p4766_p3 = scmp.lt.u32.totalorder %s4762_s12, %s5837_s4 }
  0x26   :  { %p4768_p4 = pnand %p4766_p3, %p4763_p2 }
  0x28   :  { %4771 = shalt.err (!%p4768_p4)
}
  0x29   :  { %s4772_s18 = scalar_lea.vmem %s47_s22, 7168  ;;  %p4777_p6 = scmp.lt.s32.totalorder %s47_s22, %s47_s22 }
  0x2a   :  { %p4773_p5 = scmp.ne.s32.totalorder %s47_s22, %s4772_s18  ;;  %p4778_p7 = scmp.lt.s32.totalorder %s4772_s18, %s4772_s18 }
  0x2c   :  { %p4779_p8 = por %p4778_p7, %p4777_p6 }
  0x2e   :  { %p4780_p9 = pnand %p4779_p8, %p4773_p5 }
  0x30   :  { %4783 = shalt.err (!%p4780_p9)
}
  0x31   :  { %s4906_s0 = smov 64   ;;  %s4907_s19 = smov 4  }
  0x32   :  { %52 = dma.hbm_to_vmem [thread:$0]  %s5837_s4, 7168, %s47_s22, [#allocation11], %s4906_s0, %s4906_s0, %s4907_s19  }
  0x33   :  { %4881 = dma.done.wait [#allocation9], 640  }
  0x34   :  { %4882 = vsyncadd [#allocation9], 4294966656 }
  0x35   :  { %4883 = dma.done.wait [#allocation11], 7936  }
  0x36   :  { %4884 = vsyncadd [#allocation11], 4294959360  ;;  %v259_v0 = vlaneseq  ;;  %s5020_s23 = sld [smem:[#allocation0]]   ;;  %s4908_s24 = smov 768   ;;  %v4911_v2 = vmov 0.0  }
  0x37   :  { %79 = sst [smem:[#allocation14]] %s4908_s24  ;;  %s4909_s25 = smov 6  }
  0x38   :  { %81 = sst [smem:[#allocation14 + $0x1]] %s4908_s24  ;;  %v260_v1 = vand.u32 127, %v259_v0  ;;  %s4910_s4 = smov [#allocation2]  }
  0x39   :  { %83 = sst [smem:[#allocation14 + $0x2]] %s4909_s25  ;;  %s75_s22 = sshll.u32 %s4910_s4, 4  ;;  %s76_s22 = int_to_ptr.vmem [resolvable:$true] %s75_s22 }
  0x3a   :  { %85 = sst [smem:[#allocation14 + $0x3]] %s4906_s0  ;;  %vm262_vm0 = vcmp.lt.s32.totalorder %v260_v1, 32  ;;  %vm266_vm1 = vcmp.ge.s32.totalorder %v260_v1, 32  ;;  %vm267_vm2 = vcmp.lt.s32.totalorder %v260_v1, 64  ;;  %vm271_vm3 = vcmp.ge.s32.totalorder %v260_v1, 64  ;;  %s4912_s26 = smov 2  }
  0x3b   :  { %87 = sst [smem:[#allocation14 + $0x4]] %s4902_s15  ;;  %v5029_v3 = vsel %vm262_vm0, 1.0, %v4911_v2  ;;  %vm268_vm4 = vmand %vm266_vm1, %vm267_vm2  ;;  %vm272_vm5 = vcmp.lt.s32.totalorder %v260_v1, 96  ;;  %vm276_vm6 = vcmp.ge.s32.totalorder %v260_v1, 96  ;;  %s4913_s29 = smov 384  }
  0x3c   :  { %89 = sst [smem:[#allocation14 + $0x5]] %s4912_s26  ;;  %v5033_v4 = vsel %vm268_vm4, 1.0, %v4911_v2  ;;  %vm273_vm7 = vmand %vm271_vm3, %vm272_vm5  ;;  %v5036_v5 = vsel %vm276_vm6, 1.0, %v4911_v2  ;;  %s3739_s27 = sshll.u32 %s5020_s23, 26 }
  0x3d   :  { %91 = sst [smem:[#allocation14 + $0x6]] %s4913_s29  ;;  %v5040_v6 = vsel %vm273_vm7, 1.0, %v4911_v2  ;;  %s5042_s30 = sadd.s32 134217728, %s3739_s27 }
  0x3e   :  { %93 = sst [smem:[#allocation14 + $0x7]] %s4906_s0  ;;  %s4914_s2 = smov [#allocation5]  }
  0x3f   :  { %95 = sst [smem:[#allocation14 + $0x8]] %s4907_s19  ;;  %s4915_s28 = smov [#allocation13]  }
  0x40   :  { %97 = dma.general %s5838_s5, 6144, %s76_s22, %s4914_s2, %s4915_s28, [#allocation14], %s5042_s30, 0  }
  0x41   :  { %127 = sst [smem:[#allocation20]] %s4908_s24  ;;  %s4916_s11 = smov [#allocation4]  }
  0x42   :  { %s105_s12 = sshll.u32 %s4916_s11, 4  ;;  %129 = sst [smem:[#allocation20 + $0x1]] %s4908_s24  ;;  %s5052_s12 = int_to_ptr.vmem [resolvable:$true] %s105_s12 }
  0x43   :  { %131 = sst [smem:[#allocation20 + $0x2]] %s4909_s25  ;;  %s109_s16 = scalar_lea.hbm %s5838_s5, 6144 }
  0x44   :  { %133 = sst [smem:[#allocation20 + $0x3]] %s4906_s0  ;;  %s4917_s17 = smov [#allocation2 + $0x180]  }
  0x45   :  { %135 = sst [smem:[#allocation20 + $0x4]] %s4902_s15  ;;  %s5060_s18 = sshll.u32 %s4917_s17, 4  ;;  %s124_s18 = int_to_ptr.vmem [resolvable:$true] %s5060_s18 }
  0x46   :  { %137 = sst [smem:[#allocation20 + $0x5]] %s4912_s26  ;;  %s5069_s23 = scalar_lea.hbm %s5840_s7, 2048 }
  0x47   :  { %139 = sst [smem:[#allocation20 + $0x6]] %s4913_s29  ;;  %p4785_p10 = scmp.ne.s32.totalorder %s5840_s7, %s5069_s23 }
  0x48   :  { %141 = sst [smem:[#allocation20 + $0x7]] %s4906_s0  ;;  %s5078_s27 = scalar_lea.hbm %s5840_s7, 8192 }
  0x49   :  { %143 = sst [smem:[#allocation20 + $0x8]] %s4907_s19  ;;  %p4787_p11 = scmp.lt.u32.totalorder %s5078_s27, %s5069_s23 }
  0x4a   :  { %p4788_p12 = scmp.lt.u32.totalorder %s5069_s23, %s5840_s7 }
  0x4c   :  { %p4789_p13 = por %p4788_p12, %p4787_p11 }
  0x4e   :  { %p4790_p0 = pnand %p4789_p13, %p4785_p10 }
  0x50   :  { %4793 = shalt.err (!%p4790_p0)  }
  0x51   :  { %s4794_s10 = scalar_lea.vmem %s5052_s12, 2048  ;;  %s5094_s11 = scalar_lea.vmem %s5052_s12, 8192 }
  0x52   :  { %p4795_p1 = scmp.ne.s32.totalorder %s5052_s12, %s4794_s10  ;;  %p4799_p2 = scmp.lt.s32.totalorder %s5052_s12, %s5052_s12 }
  0x53   :  { %p4800_p3 = scmp.lt.s32.totalorder %s5094_s11, %s4794_s10 }
  0x55   :  { %p4801_p4 = por %p4800_p3, %p4799_p2 }
  0x57   :  { %p4802_p5 = pnand %p4801_p4, %p4795_p1 }
  0x59   :  { %4805 = shalt.err (!%p4802_p5)  }
  0x5a   :  { %108 = dma.hbm_to_vmem [thread:$0]  %s5840_s7, 2048, %s5052_s12, [#allocation7] }
  0x5b   :  { %s4918_s17 = smov [#allocation5 + $0x1]   ;;  %s4919_s20 = smov [#allocation19]  }
  0x5c   :  { %145 = dma.general %s109_s16, 6144, %s124_s18, %s4918_s17, %s4919_s20, [#allocation20], %s5042_s30, 0  }
  0x5d   :  { %s4920_s25 = smov 896   ;;  %s4921_s4 = smov 7  }
  0x5e   :  { %175 = sst [smem:[#allocation24]] %s4920_s25  ;;  %s4922_s22 = smov [#allocation4 + $0x80]  }
  0x5f   :  { %177 = sst [smem:[#allocation24 + $0x1]] %s4920_s25  ;;  %s156_s29 = sshll.u32 %s4922_s22, 4  ;;  %s157_s29 = int_to_ptr.vmem [resolvable:$true] %s156_s29 }
  0x60   :  { %179 = sst [smem:[#allocation24 + $0x2]] %s4921_s4  ;;  %s4923_s5 = smov 448  }
  0x61   :  { %181 = sst [smem:[#allocation24 + $0x3]] %s4906_s0  ;;  %s4924_s16 = smov [#allocation3]  }
  0x62   :  { %183 = sst [smem:[#allocation24 + $0x4]] %s4902_s15  ;;  %s171_s18 = sshll.u32 %s4924_s16, 4  ;;  %s172_s18 = int_to_ptr.vmem [resolvable:$true] %s171_s18 }
  0x63   :  { %185 = sst [smem:[#allocation24 + $0x5]] %s4912_s26  ;;  %s5120_s9 = scalar_lea.hbm %s5840_s7, 4096 }
  0x64   :  { %187 = sst [smem:[#allocation24 + $0x6]] %s4923_s5  ;;  %p4807_p6 = scmp.ne.s32.totalorder %s5069_s23, %s5120_s9 }
  0x65   :  { %189 = sst [smem:[#allocation24 + $0x7]] %s4906_s0  ;;  %p4810_p7 = scmp.lt.u32.totalorder %s5078_s27, %s5120_s9 }
  0x66   :  { %191 = sst [smem:[#allocation24 + $0x8]] %s4907_s19  ;;  %p4812_p9 = scmp.lt.u32.totalorder %s5120_s9, %s5069_s23 }
  0x67   :  { %p4811_p8 = por %p4810_p7, %p4788_p12 }
  0x69   :  { %p4813_p10 = por %p4812_p9, %p4811_p8 }
  0x6b   :  { %p4814_p11 = pnand %p4813_p10, %p4807_p6 }
  0x6d   :  { %4817 = shalt.err (!%p4814_p11)  }
  0x6e   :  { %s4818_s14 = scalar_lea.vmem %s157_s29, 2048  ;;  %p4823_p0 = scmp.lt.s32.totalorder %s157_s29, %s5052_s12 }
  0x6f   :  { %p4819_p13 = scmp.ne.s32.totalorder %s157_s29, %s4818_s14  ;;  %p4824_p1 = scmp.lt.s32.totalorder %s5094_s11, %s4818_s14 }
  0x71   :  { %p4825_p2 = por %p4824_p1, %p4823_p0 }
  0x73   :  { %p4826_p3 = pnand %p4825_p2, %p4819_p13 }
  0x75   :  { %4829 = shalt.err (!%p4826_p3)  }
  0x76   :  { %159 = dma.hbm_to_vmem [thread:$0]  %s5069_s23, 2048, %s157_s29, [#allocation7 + $0x1] }
  0x77   :  { %s4925_s17 = smov [#allocation6]   ;;  %s4926_s20 = smov [#allocation23]  }
  0x78   :  { %193 = dma.general %s5839_s6, 7168, %s172_s18, %s4925_s17, %s4926_s20, [#allocation24], %s5042_s30, 0  }
  0x79   :  { %226 = sst [smem:[#allocation28]] %s4920_s25  ;;  %s4927_s22 = smov [#allocation4 + $0x100]  }
  0x7a   :  { %228 = sst [smem:[#allocation28 + $0x1]] %s4920_s25  ;;  %s204_s16 = sshll.u32 %s4927_s22, 4  ;;  %s205_s16 = int_to_ptr.vmem [resolvable:$true] %s204_s16 }
  0x7b   :  { %230 = sst [smem:[#allocation28 + $0x2]] %s4921_s4  ;;  %s208_s18 = scalar_lea.hbm %s5839_s6, 7168 }
  0x7c   :  { %232 = sst [smem:[#allocation28 + $0x3]] %s4906_s0  ;;  %s4928_s25 = smov [#allocation3 + $0x1c0]  }
  0x7d   :  { %234 = sst [smem:[#allocation28 + $0x4]] %s4902_s15  ;;  %s222_s4 = sshll.u32 %s4928_s25, 4  ;;  %s223_s4 = int_to_ptr.vmem [resolvable:$true] %s222_s4 }
  0x7e   :  { %236 = sst [smem:[#allocation28 + $0x5]] %s4912_s26  ;;  %s5155_s10 = scalar_lea.hbm %s5840_s7, 6144 }
  0x7f   :  { %238 = sst [smem:[#allocation28 + $0x6]] %s4923_s5  ;;  %p4832_p12 = scmp.ne.s32.totalorder %s5120_s9, %s5155_s10 }
  0x80   :  { %240 = sst [smem:[#allocation28 + $0x7]] %s4906_s0  ;;  %p4834_p4 = scmp.lt.u32.totalorder %s5120_s9, %s5840_s7 }
  0x81   :  { %242 = sst [smem:[#allocation28 + $0x8]] %s4907_s19  ;;  %p4835_p5 = scmp.lt.u32.totalorder %s5078_s27, %s5155_s10 }
  0x82   :  { %p4837_p7 = scmp.lt.u32.totalorder %s5155_s10, %s5120_s9 }
  0x83   :  { %p4836_p6 = por %p4835_p5, %p4834_p4 }
  0x85   :  { %p4838_p8 = por %p4837_p7, %p4836_p6 }
  0x87   :  { %p4839_p9 = pnand %p4838_p8, %p4832_p12 }
  0x89   :  { %4842 = shalt.err (!%p4839_p9)  }
  0x8a   :  { %s4843_s0 = scalar_lea.vmem %s205_s16, 2048  ;;  %p4848_p11 = scmp.lt.s32.totalorder %s205_s16, %s5052_s12 }
  0x8b   :  { %p4844_p10 = scmp.ne.s32.totalorder %s205_s16, %s4843_s0  ;;  %p4849_p13 = scmp.lt.s32.totalorder %s5094_s11, %s4843_s0 }
  0x8d   :  { %p4850_p0 = por %p4849_p13, %p4848_p11 }
  0x8f   :  { %p4851_p1 = pnand %p4850_p0, %p4844_p10 }
  0x91   :  { %4854 = shalt.err (!%p4851_p1)  }
  0x92   :  { %207 = dma.hbm_to_vmem [thread:$0]  %s5120_s9, 2048, %s205_s16, [#allocation7 + $0x2]  ;;  %vm4931_vm8 = vmmov 0  }
  0x93   :  { %s4929_s19 = smov [#allocation6 + $0x1]   ;;  %s4930_s5 = smov [#allocation27]  }
  0x94   :  { %244 = dma.general %s208_s18, 7168, %s223_s4, %s4929_s19, %s4930_s5, [#allocation28], %s5042_s30, 0  }
  0x95   :  { %v5178_v7 = vld [vmem:[#allocation12 + $0x180] sm:$0xf]  ;;  %v5180_v8 = vld [vmem:[#allocation12 + $0x184] sm:$0xf]  ;;  %v5182_v9 = vld [vmem:[#allocation12 + $0x188] sm:$0xf]  ;;  %p4857_p2 = scmp.ne.s32.totalorder %s5155_s10, %s5078_s27  ;;  %p4859_p3 = scmp.lt.u32.totalorder %s5155_s10, %s5840_s7 }
  0x96   :  { %v5184_v10 = vld [vmem:[#allocation12 + $0x18c] sm:$0xf]  ;;  %v5186_v11 = vld [vmem:[#allocation12 + $0x190] sm:$0xf]  ;;  %v5188_v12 = vld [vmem:[#allocation12 + $0x194] sm:$0xf]  ;;  %p4860_p12 = scmp.lt.u32.totalorder %s5078_s27, %s5078_s27 }
  0x97   :  { %v5190_v13 = vld [vmem:[#allocation12 + $0x198] sm:$0xf]  ;;  %v5192_v14 = vld [vmem:[#allocation12 + $0x19c] sm:$0xf]  ;;  %v5194_v15 = vld [vmem:[#allocation12 + $0x1a0] sm:$0xf] }
  0x98   :  { %v5196_v16 = vld [vmem:[#allocation12 + $0x1a4] sm:$0xf]  ;;  %v5198_v17 = vld [vmem:[#allocation12 + $0x1a8] sm:$0xf]  ;;  %v5200_v18 = vld [vmem:[#allocation12 + $0x1ac] sm:$0xf]  ;;  %p4861_p4 = por %p4860_p12, %p4859_p3 }
  0x99   :  { %v5202_v19 = vld [vmem:[#allocation12 + $0x1b0] sm:$0xf]  ;;  %v5204_v20 = vld [vmem:[#allocation12 + $0x1b4] sm:$0xf]  ;;  %v5206_v21 = vld [vmem:[#allocation12 + $0x1b8] sm:$0xf] }
  0x9a   :  { %v5208_v22 = vld [vmem:[#allocation12 + $0x1bc] sm:$0xf]  ;;  %v4606_v23 = vld [vmem:[#allocation12 + $0x40] sm:$0xff]   ;;  %v4610_v27 = vld [vmem:[#allocation12 + $0x48] sm:$0xff]   ;;  %s4932_s9 = smov [#allocation4 + $0x180]   ;;  %p4863_p6 = por %p4861_p4, %p4835_p5 }
  0x9b   :  { %v4607_v24 = vld [vmem:[#allocation12 + $0xc0] sm:$0xff]   ;;  %3857 = vmatprep.subr.bf16.mxu0 %v4606_v23  ;;  %v4611_v28 = vld [vmem:[#allocation12 + $0xc8] sm:$0xff]   ;;  %v4614_v31 = vld [vmem:[#allocation12 + $0x50] sm:$0xff]   ;;  %s255_s17 = sshll.u32 %s4932_s9, 4  ;;  %s256_s17 = int_to_ptr.vmem [resolvable:$true] %s255_s17 }
  0x9c   :  { %v4608_v25 = vld [vmem:[#allocation12] sm:$0xff]   ;;  %3879 = vmatprep.subr.bf16.mxu1 %v4607_v24  ;;  %v4612_v29 = vld [vmem:[#allocation12 + $0x8] sm:$0xff]   ;;  %v4615_v32 = vld [vmem:[#allocation12 + $0xd0] sm:$0xff]   ;;  %p4864_p7 = pnand %p4863_p6, %p4857_p2 }
  0x9d   :  { %v4609_v26 = vld [vmem:[#allocation12 + $0x80] sm:$0xff]   ;;  %3858 = vmatpush3.bf16.msra.mxu0 %v4608_v25  ;;  %v4613_v30 = vld [vmem:[#allocation12 + $0x88] sm:$0xff]   ;;  %v4616_v33 = vld [vmem:[#allocation12 + $0x10] sm:$0xff]  }
  0x9e   :  { %3880 = vmatpush3.bf16.msra.mxu1 %v4609_v26  ;;  %3859 = vmatprep.subr.bf16.mxu0 %v4610_v27  ;;  %v4617_v34 = vld [vmem:[#allocation12 + $0x90] sm:$0xff]   ;;  %v4618_v35 = vld [vmem:[#allocation12 + $0x58] sm:$0xff]   ;;  %v4622_v39 = vld [vmem:[#allocation12 + $0x60] sm:$0xff]  }
  0x9f   :  { %3881 = vmatprep.subr.bf16.mxu1 %v4611_v28  ;;  %v4619_v36 = vld [vmem:[#allocation12 + $0xd8] sm:$0xff]   ;;  %v4623_v40 = vld [vmem:[#allocation12 + $0xe0] sm:$0xff]   ;;  %v4626_v43 = vld [vmem:[#allocation12 + $0x68] sm:$0xff]  }
  0xa0   :  { %v4620_v37 = vld [vmem:[#allocation12 + $0x18] sm:$0xff]   ;;  %v4624_v41 = vld [vmem:[#allocation12 + $0x20] sm:$0xff]   ;;  %v4627_v44 = vld [vmem:[#allocation12 + $0xe8] sm:$0xff]  }
  0xa1   :  { %3860 = vmatpush3.bf16.msra.mxu0 %v4612_v29  ;;  %v4621_v38 = vld [vmem:[#allocation12 + $0x98] sm:$0xff]   ;;  %v4625_v42 = vld [vmem:[#allocation12 + $0xa0] sm:$0xff]   ;;  %v4628_v45 = vld [vmem:[#allocation12 + $0x28] sm:$0xff]  }
  0xa2   :  { %3882 = vmatpush3.bf16.msra.mxu1 %v4613_v30  ;;  %3861 = vmatprep.subr.bf16.mxu0 %v4614_v31  ;;  %v4629_v46 = vld [vmem:[#allocation12 + $0xa8] sm:$0xff]   ;;  %v4630_v47 = vld [vmem:[#allocation12 + $0x70] sm:$0xff]   ;;  %v4634_v51 = vld [vmem:[#allocation12 + $0x78] sm:$0xff]  }
  0xa3   :  { %3883 = vmatprep.subr.bf16.mxu1 %v4615_v32  ;;  %v4631_v48 = vld [vmem:[#allocation12 + $0xf0] sm:$0xff]   ;;  %v4635_v52 = vld [vmem:[#allocation12 + $0xf8] sm:$0xff]   ;;  %v396_v56 = vld [vmem:[#allocation8 + $0x18] sm:$0xff] }
  0xa4   :  { %v4632_v49 = vld [vmem:[#allocation12 + $0x30] sm:$0xff]   ;;  %v4636_v53 = vld [vmem:[#allocation12 + $0x38] sm:$0xff]   ;;  %v402_v58 = vpack.c.bf16 %v396_v56, %v396_v56  ;;  %v393_v59 = vld [vmem:[#allocation8] sm:$0xff] }
  0xa5   :  { %3862 = vmatpush3.bf16.msra.mxu0 %v4616_v33  ;;  %v4633_v50 = vld [vmem:[#allocation12 + $0xb0] sm:$0xff]   ;;  %v4637_v54 = vld [vmem:[#allocation12 + $0xb8] sm:$0xff]   ;;  %v399_v61 = vpack.c.bf16 %v393_v59, %v393_v59  ;;  %v4638_v63 = vld [vmem:[#allocation12 + $0x100] sm:$0xff]  }
  0xa6   :  { %3884 = vmatpush3.bf16.msra.mxu1 %v4617_v34  ;;  %3863 = vmatprep.subr.bf16.mxu0 %v4618_v35  ;;  %v394_v55 = vld [vmem:[#allocation8 + $0x8] sm:$0xff]  ;;  %v395_v60 = vld [vmem:[#allocation8 + $0x10] sm:$0xff]  ;;  %v4639_v1 = vld [vmem:[#allocation12 + $0x140] sm:$0xff]  }
  0xa7   :  { %3885 = vmatprep.subr.bf16.mxu1 %v4619_v36  ;;  %v400_v57 = vpack.c.bf16 %v394_v55, %v394_v55  ;;  %v401_v62 = vpack.c.bf16 %v395_v60, %v395_v60  ;;  %720 = vmatprep.mubr.bf16.mxu1 %v402_v58  ;;  %v4640_v23 = vld [vmem:[#allocation12 + $0x108] sm:$0xff]   ;;  %v4642_v25 = vld [vmem:[#allocation12 + $0x110] sm:$0xff]   ;;  %v4644_v27 = vld [vmem:[#allocation12 + $0x118] sm:$0xff]  }
  0xa8   :  { %v4641_v24 = vld [vmem:[#allocation12 + $0x148] sm:$0xff]   ;;  %v4643_v26 = vld [vmem:[#allocation12 + $0x150] sm:$0xff]   ;;  %v4645_v28 = vld [vmem:[#allocation12 + $0x158] sm:$0xff]  }
  0xa9   :  { %3864 = vmatpush3.bf16.msra.mxu0 %v4620_v37  ;;  %680 = vmatprep.mubr.bf16.mxu0 %v400_v57  ;;  %v4646_v29 = vld [vmem:[#allocation12 + $0x120] sm:$0xff]   ;;  %v4648_v31 = vld [vmem:[#allocation12 + $0x128] sm:$0xff]   ;;  %v4650_v33 = vld [vmem:[#allocation12 + $0x130] sm:$0xff]  }
  0xaa   :  { %3886 = vmatpush3.bf16.msra.mxu1 %v4621_v38  ;;  %3865 = vmatprep.subr.bf16.mxu0 %v4622_v39  ;;  %v4647_v30 = vld [vmem:[#allocation12 + $0x160] sm:$0xff]   ;;  %v4649_v32 = vld [vmem:[#allocation12 + $0x168] sm:$0xff]   ;;  %v4651_v34 = vld [vmem:[#allocation12 + $0x170] sm:$0xff]  }
  0xab   :  { %3887 = vmatprep.subr.bf16.mxu1 %v4623_v40  ;;  %v4652_v35 = vld [vmem:[#allocation12 + $0x138] sm:$0xff]   ;;  %v397_v36 = vld [vmem:[#allocation8 + $0x20] sm:$0xff] }
  0xac   :  { %v4653_v37 = vld [vmem:[#allocation12 + $0x178] sm:$0xff]   ;;  %v768_v38 = vld [vmem:[%s5834_s1] sm:$0x1]  ;;  %v403_v39 = vpack.c.bf16 %v397_v36, %v397_v36 }
  0xad   :  { %3866 = vmatpush3.bf16.msra.mxu0 %v4624_v41  ;;  %v770_v40 = vpack.c.bf16 %v768_v38, %v768_v38 }
  0xae   :  { %3888 = vmatpush3.bf16.msra.mxu1 %v4625_v42  ;;  %3867 = vmatprep.subr.bf16.mxu0 %v4626_v43 }
  0xaf   :  { %3889 = vmatprep.subr.bf16.mxu1 %v4627_v44 }
  0xb1   :  { %3868 = vmatpush3.bf16.msra.mxu0 %v4628_v45 }
  0xb2   :  { %3890 = vmatpush3.bf16.msra.mxu1 %v4629_v46  ;;  %3869 = vmatprep.subr.bf16.mxu0 %v4630_v47 }
  0xb3   :  { %3891 = vmatprep.subr.bf16.mxu1 %v4631_v48 }
  0xb5   :  { %3870 = vmatpush3.bf16.msra.mxu0 %v4632_v49 }
  0xb6   :  { %3892 = vmatpush3.bf16.msra.mxu1 %v4633_v50  ;;  %3871 = vmatprep.subr.bf16.mxu0 %v4634_v51 }
  0xb7   :  { %3893 = vmatprep.subr.bf16.mxu1 %v4635_v52 }
  0xb9   :  { %3872 = vmatpush3.bf16.msra.mxu0 %v4636_v53 }
  0xba   :  { %3894 = vmatpush3.bf16.msra.mxu1 %v4637_v54  ;;  %4148 = vmatprep.subr.bf16.mxu0 %v4911_v2 }
  0xbb   :  { %4168 = vmatprep.subr.bf16.mxu1 %v4911_v2 }
  0xbc   :  { %681 = vmatmul.mubr.bf16.vlgmr.msra.gmra.mrb[0].mxu0 %v399_v61 }
  0xbd   :  { %721 = vmatmul.mubr.bf16.vlgmr.msra.gmra.mrb[0].mxu1 %v401_v62  ;;  %4149 = vmatpush3.bf16.msra.mxu0 %v4638_v63 }
  0xbe   :  { %4169 = vmatpush3.bf16.msra.mxu1 %v4639_v1  ;;  %4150 = vmatprep.subr.bf16.mxu0 %v4911_v2 }
  0xbf   :  { %4170 = vmatprep.subr.bf16.mxu1 %v4911_v2  ;;  %4164 = vmatprep.mubr.msk.bf16.mxu0 %vm4931_vm8, %v4911_v2 }
  0xc0   :  { %4184 = vmatprep.mubr.msk.bf16.mxu1 %vm4931_vm8, %v4911_v2 }
  0xc1   :  { %4151 = vmatpush3.bf16.msra.mxu0 %v4640_v23 }
  0xc2   :  { %4171 = vmatpush3.bf16.msra.mxu1 %v4641_v24  ;;  %4152 = vmatprep.subr.bf16.mxu0 %v4911_v2 }
  0xc3   :  { %4172 = vmatprep.subr.bf16.mxu1 %v4911_v2 }
  0xc5   :  { %4153 = vmatpush3.bf16.msra.mxu0 %v4642_v25 }
  0xc6   :  { %4173 = vmatpush3.bf16.msra.mxu1 %v4643_v26  ;;  %4154 = vmatprep.subr.bf16.mxu0 %v4911_v2 }
  0xc7   :  { %4174 = vmatprep.subr.bf16.mxu1 %v4911_v2 }
  0xc9   :  { %4155 = vmatpush3.bf16.msra.mxu0 %v4644_v27 }
  0xca   :  { %4175 = vmatpush3.bf16.msra.mxu1 %v4645_v28  ;;  %4156 = vmatprep.subr.bf16.mxu0 %v4911_v2 }
  0xcb   :  { %4176 = vmatprep.subr.bf16.mxu1 %v4911_v2 }
  0xcd   :  { %4157 = vmatpush3.bf16.msra.mxu0 %v4646_v29 }
  0xce   :  { %4177 = vmatpush3.bf16.msra.mxu1 %v4647_v30  ;;  %4158 = vmatprep.subr.bf16.mxu0 %v4911_v2 }
  0xcf   :  { %4178 = vmatprep.subr.bf16.mxu1 %v4911_v2 }
  0xd1   :  { %4159 = vmatpush3.bf16.msra.mxu0 %v4648_v31 }
  0xd2   :  { %4179 = vmatpush3.bf16.msra.mxu1 %v4649_v32  ;;  %4160 = vmatprep.subr.bf16.mxu0 %v4911_v2 }
  0xd3   :  { %4180 = vmatprep.subr.bf16.mxu1 %v4911_v2 }
  0xd5   :  { %4161 = vmatpush3.bf16.msra.mxu0 %v4650_v33 }
  0xd6   :  { %4181 = vmatpush3.bf16.msra.mxu1 %v4651_v34  ;;  %4162 = vmatprep.subr.bf16.mxu0 %v4911_v2 }
  0xd7   :  { %4182 = vmatprep.subr.bf16.mxu1 %v4911_v2 }
  0xd9   :  { %4163 = vmatpush3.bf16.msra.mxu0 %v4652_v35 }
  0xda   :  { %4183 = vmatpush3.bf16.msra.mxu1 %v4653_v37 }
  0xdc   :  { %4165 = vmatmul.mubr.bf16.vlgmr.msra.gmra.mrb[4].mxu0 %v403_v39 }
  0xdd   :  { %4185 = vmatmul.mubr.bf16.vlgmr.msra.gmra.mrb[4].mxu1 %v770_v40 }
  0xde   :  { %4867 = shalt.err (!%p4864_p7)  }
  0xdf   :  { %s4868_s1 = scalar_lea.vmem %s256_s17, 2048  ;;  %p4873_p9 = scmp.lt.s32.totalorder %s256_s17, %s5052_s12 }
  0xe0   :  { %p4869_p8 = scmp.ne.s32.totalorder %s256_s17, %s4868_s1  ;;  %p4874_p10 = scmp.lt.s32.totalorder %s5094_s11, %s4868_s1 }
  0xe2   :  { %p4875_p11 = por %p4874_p10, %p4873_p9 }
  0xe4   :  { %p4876_p13 = pnand %p4875_p11, %p4869_p8 }
  0xe6   :  { %4879 = shalt.err (!%p4876_p13)  }
  0xe7   :  { %258 = dma.hbm_to_vmem [thread:$0]  %s5155_s10, 2048, %s256_s17, [#allocation7 + $0x3]  ;;  %v3751_v43 = vld [vmem:[#allocation10] ss:$0 sm:$0xff]  ;;  %v769_v54 = vld [vmem:[#allocation10 + $0x1] sm:$0x1] }
 0x18f   :  { %v3873_v41 = vpop.f32.mrb[0].mxu0 }
 0x190   :  { %v3895_v42 = vpop.f32.mrb[0].mxu1  ;;  %v3874_v44 = vpop.f32.mrb[1].mxu0 }
 0x191   :  { %v3875_v45 = vadd.f32 %v3874_v44, %v3873_v41  ;;  %v3896_v46 = vpop.f32.mrb[1].mxu1  ;;  %v3876_v47 = vpop.f32.mrb[2].mxu0 }
 0x192   :  { %v3897_v48 = vadd.f32 %v3896_v46, %v3895_v42  ;;  %v3898_v49 = vpop.f32.mrb[2].mxu1  ;;  %v3877_v50 = vpop.f32.mrb[3].mxu0 }
 0x193   :  { %v683_v51 = vadd.f32 %v3875_v45, %v3751_v43  ;;  %v3899_v52 = vpop.f32.mrb[3].mxu1 }
 0x195   :  { %v723_v53 = vadd.f32 %v3897_v48, %v683_v51 }
 0x1af   :  { %v762_v55 = vpop.f32.mrb[4].mxu0 }
 0x1b0   :  { %v5247_v56 = vadd.f32 %v762_v55, %v723_v53  ;;  %v853_v57 = vpop.f32.mrb[4].mxu1  ;;  %v4166_v58 = vpop.f32.mrb[5].mxu0 }
 0x1b1   :  { %v5249_v59 = vadd.f32 %v853_v57, %v769_v54  ;;  %v4186_v60 = vpop.f32.mrb[5].mxu1  ;;  %v765_v61 = vpop.f32.mrb[6].mxu0 }
 0x1b2   :  { %v856_v62 = vpop.f32.mrb[6].mxu1  ;;  %v4167_v63 = vpop.f32.mrb[7].mxu0 }
 0x1b3   :  { %v4187_v1 = vpop.f32.mrb[7].mxu1 }
 0x1b4   :  { %4885 = dma.done.wait [#allocation5], 6144 }
 0x1b5   :  { %4886 = vsyncadd [#allocation5], 4294961152  ;;  %4188 = vmatprep.subr.bf16.mxu1 %v4911_v2  ;;  %4204 = vmatprep.mubr.msk.bf16.mxu1 %vm4931_vm8, %v4911_v2  ;;  %v4933_v23 = vmov 0   ;;  %v5255_v24 = vld [vmem:[#allocation2 + $0x20] sm:$0xff]  ;;  %v5257_v25 = vld [vmem:[#allocation2 + $0x28] sm:$0xff]  ;;  %vm1125_vm9 = vcmask 1043456  }
 0x1b6   :  { %944 = vmatprep.mubr.bf16.mxu0 %v4933_v23  ;;  %v5259_v26 = vld [vmem:[#allocation2 + $0x50] sm:$0xff]  ;;  %v5261_v27 = vld [vmem:[#allocation2 + $0x58] sm:$0xff]  ;;  %v5263_v28 = vld [vmem:[#allocation2 + $0x80] sm:$0xff]  ;;  %vm1071_vm10 = vcmask 64512  }
 0x1b7   :  { %v5265_v29 = vld [vmem:[#allocation2 + $0x88] sm:$0xff]  ;;  %v5267_v30 = vld [vmem:[#allocation2 + $0xb0] sm:$0xff]  ;;  %v5269_v31 = vld [vmem:[#allocation2 + $0xb8] sm:$0xff] }
 0x1b8   :  { %v5271_v32 = vld [vmem:[#allocation2 + $0xe0] sm:$0xff]  ;;  %v5273_v33 = vld [vmem:[#allocation2 + $0xe8] sm:$0xff]  ;;  %v5275_v34 = vld [vmem:[#allocation2 + $0x110] sm:$0xff] }
 0x1b9   :  { %v5277_v35 = vld [vmem:[#allocation2 + $0x118] sm:$0xff]  ;;  %v5279_v36 = vld [vmem:[#allocation2 + $0x140] sm:$0xff]  ;;  %v5281_v37 = vld [vmem:[#allocation2 + $0x148] sm:$0xff] }
 0x1ba   :  { %v5283_v38 = vld [vmem:[#allocation2 + $0x170] sm:$0xff]  ;;  %v5285_v39 = vld [vmem:[#allocation2 + $0x178] sm:$0xff]  ;;  %v864_v40 = vld [vmem:[#allocation2 + $0x8] sm:$0xff] }
 0x1bb   :  { %v863_v41 = vld [vmem:[#allocation2] sm:$0xff]  ;;  %912 = vmatprep.subr.bf16.mxu0 %v864_v40  ;;  %v867_v42 = vld [vmem:[#allocation2 + $0x38] sm:$0xff]  ;;  %v866_v43 = vld [vmem:[#allocation2 + $0x30] sm:$0xff]  ;;  %v911_v40 = vpack.c.bf16 %v5247_v56, %v5247_v56 }
 0x1bc   :  { %913 = vmatpush1.bf16.msra.mxu0 %v863_v41  ;;  %v870_v44 = vld [vmem:[#allocation2 + $0x68] sm:$0xff]  ;;  %v865_v45 = vld [vmem:[#allocation2 + $0x10] sm:$0xff]  ;;  %v869_v46 = vld [vmem:[#allocation2 + $0x60] sm:$0xff] }
 0x1bd   :  { %914 = vmatprep.subr.bf16.mxu0 %v867_v42  ;;  %4189 = vmatpush3.bf16.msra.mxu1 %v865_v45  ;;  %v868_v47 = vld [vmem:[#allocation2 + $0x40] sm:$0xff]  ;;  %v873_v48 = vld [vmem:[#allocation2 + $0x98] sm:$0xff]  ;;  %v872_v49 = vld [vmem:[#allocation2 + $0x90] sm:$0xff] }
 0x1be   :  { %4190 = vmatprep.subr.bf16.mxu1 %v4911_v2  ;;  %v871_v50 = vld [vmem:[#allocation2 + $0x70] sm:$0xff]  ;;  %v876_v51 = vld [vmem:[#allocation2 + $0xc8] sm:$0xff]  ;;  %v875_v52 = vld [vmem:[#allocation2 + $0xc0] sm:$0xff] }
 0x1bf   :  { %v874_v53 = vld [vmem:[#allocation2 + $0xa0] sm:$0xff]  ;;  %v879_v54 = vld [vmem:[#allocation2 + $0xf8] sm:$0xff]  ;;  %v878_v55 = vld [vmem:[#allocation2 + $0xf0] sm:$0xff] }
 0x1c0   :  { %915 = vmatpush1.bf16.msra.mxu0 %v866_v43  ;;  %v877_v57 = vld [vmem:[#allocation2 + $0xd0] sm:$0xff]  ;;  %v882_v58 = vld [vmem:[#allocation2 + $0x128] sm:$0xff]  ;;  %v881_v60 = vld [vmem:[#allocation2 + $0x120] sm:$0xff] }
 0x1c1   :  { %916 = vmatprep.subr.bf16.mxu0 %v870_v44  ;;  %4191 = vmatpush3.bf16.msra.mxu1 %v868_v47  ;;  %v880_v61 = vld [vmem:[#allocation2 + $0x100] sm:$0xff]  ;;  %v885_v62 = vld [vmem:[#allocation2 + $0x158] sm:$0xff]  ;;  %v884_v63 = vld [vmem:[#allocation2 + $0x150] sm:$0xff] }
 0x1c2   :  { %4192 = vmatprep.subr.bf16.mxu1 %v4911_v2  ;;  %v883_v1 = vld [vmem:[#allocation2 + $0x130] sm:$0xff]  ;;  %v886_v41 = vld [vmem:[#allocation2 + $0x160] sm:$0xff]  ;;  %v3800_v42 = vld [vmem:[#allocation10 + $0x3] ss:$0 sm:$0xff] }
 0x1c3   :  { %v3801_v43 = vld [vmem:[#allocation10 + $0x4] ss:$0 sm:$0xff] }
 0x1c4   :  { %917 = vmatpush1.bf16.msra.mxu0 %v869_v46 }
 0x1c5   :  { %918 = vmatprep.subr.bf16.mxu0 %v873_v48  ;;  %4193 = vmatpush3.bf16.msra.mxu1 %v871_v50 }
 0x1c6   :  { %4194 = vmatprep.subr.bf16.mxu1 %v4911_v2 }
 0x1c8   :  { %919 = vmatpush1.bf16.msra.mxu0 %v872_v49 }
 0x1c9   :  { %920 = vmatprep.subr.bf16.mxu0 %v876_v51  ;;  %4195 = vmatpush3.bf16.msra.mxu1 %v874_v53 }
 0x1ca   :  { %4196 = vmatprep.subr.bf16.mxu1 %v4911_v2 }
 0x1cc   :  { %921 = vmatpush1.bf16.msra.mxu0 %v875_v52 }
 0x1cd   :  { %922 = vmatprep.subr.bf16.mxu0 %v879_v54  ;;  %4197 = vmatpush3.bf16.msra.mxu1 %v877_v57 }
 0x1ce   :  { %4198 = vmatprep.subr.bf16.mxu1 %v4911_v2 }
 0x1d0   :  { %923 = vmatpush1.bf16.msra.mxu0 %v878_v55 }
 0x1d1   :  { %924 = vmatprep.subr.bf16.mxu0 %v882_v58  ;;  %4199 = vmatpush3.bf16.msra.mxu1 %v880_v61 }
 0x1d2   :  { %4200 = vmatprep.subr.bf16.mxu1 %v4911_v2 }
 0x1d4   :  { %925 = vmatpush1.bf16.msra.mxu0 %v881_v60 }
 0x1d5   :  { %926 = vmatprep.subr.bf16.mxu0 %v885_v62  ;;  %4201 = vmatpush3.bf16.msra.mxu1 %v883_v1 }
 0x1d6   :  { %4202 = vmatprep.subr.bf16.mxu1 %v4911_v2 }
 0x1d8   :  { %927 = vmatpush1.bf16.msra.mxu0 %v884_v63  ;;  %v3802_v63 = vld [vmem:[#allocation10 + $0x5] ss:$0 sm:$0xff] }
 0x1d9   :  { %4238 = vmatprep.subr.bf16.mxu0 %v4911_v2  ;;  %4203 = vmatpush3.bf16.msra.mxu1 %v886_v41 }
 0x1db   :  { %945 = vmatmul.mubr.bf16.vlgmr.msra.gmra.mrb[8].mxu0 %v911_v40 }
 0x1dc   :  { %4254 = vmatprep.mubr.msk.bf16.mxu0 %vm4931_vm8, %v4911_v2  ;;  %4205 = vmatmul.mubr.bf16.vlgmr.msra.gmra.mrb[8].mxu1 %v911_v40 }
 0x2ae   :  { %v946_v44 = vpop.f32.mrb[8].mxu0 }
 0x2af   :  { %v998_v45 = vadd.f32 %v3800_v42, %v946_v44  ;;  %v948_v46 = vpop.f32.mrb[9].mxu0  ;;  %v987_v53 = vpop.f32.mrb[8].mxu1 }
 0x2b0   :  { %v1004_v47 = vadd.f32 %v3801_v43, %v948_v46  ;;  %v950_v48 = vpop.f32.mrb[10].mxu0  ;;  %v4206_v55 = vpop.f32.mrb[9].mxu1  ;;  %v1010_v1 = vadd.f32 %v3802_v63, %v987_v53 }
 0x2b1   :  { %v951_v49 = vpop.f32.mrb[11].mxu0  ;;  %v1011_v50 = vmul.f32 %v5029_v3, %v998_v45  ;;  %v1012_v51 = vmul.f32 %v5033_v4, %v998_v45  ;;  %v990_v57 = vpop.f32.mrb[10].mxu1  ;;  %v1013_v60 = vmul.f32 %v5040_v6, %v998_v45  ;;  %v1014_v61 = vmul.f32 %v5036_v5, %v998_v45 }
 0x2b2   :  { %v1017_v52 = vpack.c.bf16 %v1004_v47, %v1004_v47  ;;  %v4207_v58 = vpop.f32.mrb[11].mxu1  ;;  %v1120_v40 = vmul.f32 %v5033_v4, %v1010_v1  ;;  %v1117_v41 = vmul.f32 %v5029_v3, %v1010_v1  ;;  %v1216_v42 = vmul.f32 %v5040_v6, %v1010_v1 }
 0x2b3   :  { %v1015_v54 = vpack.c.bf16 %v1012_v51, %v1011_v50  ;;  %v1016_v62 = vpack.c.bf16 %v1014_v61, %v1013_v60  ;;  %v1266_v43 = vmul.f32 %v5036_v5, %v1010_v1 }
 0x2b4   :  { %4208 = vmatprep.subr.bf16.mxu1 %v1017_v52  ;;  %v1121_v44 = vpack.c.bf16 %v1120_v40, %v1120_v40  ;;  %v1118_v45 = vpack.c.bf16 %v1117_v41, %v1117_v41  ;;  %v1217_v46 = vpack.c.bf16 %v1216_v42, %v1216_v42 }
 0x2b5   :  { %4209 = vmatpush3.bf16.xpose.msra.mxu1 %v1017_v52  ;;  %4210 = vmatprep.mubr.bf16.mxu1 %v1015_v54  ;;  %v1267_v47 = vpack.c.bf16 %v1266_v43, %v1266_v43 }
 0x2b6   :  { %4214 = vmatprep.subr.bf16.mxu1 %v4911_v2  ;;  %v1127_v48 = vsel %vm1125_vm9, %v1121_v44, 0  ;;  %v5312_v49 = vsel %vm1125_vm9, %v1118_v45, 0  ;;  %v5315_v50 = vsel %vm1125_vm9, %v1217_v46, 0 }
 0x2b7   :  { %v5318_v51 = vsel %vm1125_vm9, %v1267_v47, 0 }
 0x2bc   :  { %4211 = vmatmul.mubr.bf16.vlgmr.msra.gmra.mrb[12].mxu1 %v1016_v62 }
 0x2bd   :  { %4216 = vmatprep.mubr.msk.bf16.mxu1 %vm4931_vm8, %v4911_v2  ;;  %4215 = vmatpush3.bf16.msra.mxu1 %v1127_v48 }
 0x2be   :  { %4220 = vmatprep.subr.bf16.mxu1 %v4911_v2 }
 0x38f   :  { %v4212_v52 = vpop.f32.mrb[12].mxu1 }
 0x390   :  { %v1069_v53 = vmul.f32 0.17677669, %v4212_v52  ;;  %v1052_v54 = vpop.f32.mrb[13].mxu1 }
 0x391   :  { %v4213_v55 = vpop.f32.mrb[14].mxu1  ;;  %v1067_v62 = vmul.f32 0.17677669, %v1052_v54 }
 0x392   :  { %v1070_v57 = vmul.f32 0.17677669, %v4213_v55  ;;  %v1055_v58 = vpop.f32.mrb[15].mxu1  ;;  %v1078_v60 = vsel %vm1071_vm10, %v1069_v53, -inf }
 0x393   :  { %v1068_v61 = vmul.f32 0.17677669, %v1055_v58  ;;  %1079 = vmax.xlane.f32.xlu1 %v1078_v60  ;;  %v1072_v40 = vsel %vm1071_vm10, %v1067_v62, -inf }
 0x394   :  { %v1081_v1 = vsel %vm1071_vm10, %v1070_v57, -inf }
 0x395   :  { %v1075_v63 = vsel %vm1071_vm10, %v1068_v61, -inf }
 0x396   :  { %1076 = vmax.xlane.f32.xlu0 %v1075_v63 }
 0x397   :  { %1082 = vmax.xlane.f32.xlu1 %v1081_v1 }
 0x39a   :  { %1073 = vmax.xlane.f32.xlu0 %v1072_v40 }
 0x420   :  { %v1080_v41 = vpop.xlane.xlu1 %1079 }
 0x421   :  { %v1086_v42 = vsub.f32 %v1069_v53, %v1080_v41 }
 0x423   :  { %v1077_v43 = vpop.xlane.xlu0 %1076  ;;  %v1092_v46 = vmul.f32 1.442695, %v1086_v42  ;;  %v888_v42 = vld [vmem:[#allocation2 + $0x48] sm:$0xff] }
 0x424   :  { %v1085_v44 = vsub.f32 %v1068_v61, %v1077_v43  ;;  %v1083_v45 = vpop.xlane.xlu1 %1082  ;;  %v889_v43 = vld [vmem:[#allocation2 + $0x78] sm:$0xff] }
 0x425   :  { %v1087_v48 = vsub.f32 %v1070_v57, %v1083_v45  ;;  %v891_v45 = vld [vmem:[#allocation2 + $0xd8] sm:$0xff] }
 0x426   :  { %v1090_v47 = vmul.f32 1.442695, %v1085_v44  ;;  %v890_v44 = vld [vmem:[#allocation2 + $0xa8] sm:$0xff] }
 0x427   :  { %v1074_v52 = vpop.xlane.xlu0 %1073  ;;  %v1094_v55 = vmul.f32 1.442695, %v1087_v48 }
 0x428   :  { %4654 = vpow2.f32 %v1090_v47  ;;  %v1084_v54 = vsub.f32 %v1067_v62, %v1074_v52  ;;  %v887_v62 = vld [vmem:[#allocation2 + $0x18] sm:$0xff] }
 0x429   :  { %4656 = vpow2.f32 %v1092_v46  ;;  %4239 = vmatpush3.bf16.msra.mxu0 %v887_v62  ;;  %v892_v46 = vld [vmem:[#allocation2 + $0x108] sm:$0xff]  ;;  %v893_v47 = vld [vmem:[#allocation2 + $0x138] sm:$0xff] }
 0x42a   :  { %v1088_v58 = vmul.f32 1.442695, %v1084_v54  ;;  %4240 = vmatprep.subr.bf16.mxu0 %v4911_v2 }
 0x42c   :  { %4658 = vpow2.f32 %v1088_v58 }
 0x42d   :  { %4660 = vpow2.f32 %v1094_v55  ;;  %4241 = vmatpush3.bf16.msra.mxu0 %v888_v42 }
 0x42e   :  { %4242 = vmatprep.subr.bf16.mxu0 %v4911_v2 }
 0x431   :  { %4243 = vmatpush3.bf16.msra.mxu0 %v889_v43 }
 0x432   :  { %v4655_v60 = vpop.eup %4654  ;;  %4244 = vmatprep.subr.bf16.mxu0 %v4911_v2 }
 0x433   :  { %v1099_v63 = vsel %vm1071_vm10, %v4655_v60, 0.0  ;;  %v4657_v1 = vpop.eup %4656 }
 0x434   :  { %1100 = vadd.xlane.f32.xlu0 %v1099_v63  ;;  %v1102_v61 = vsel %vm1071_vm10, %v4657_v1, 0.0 }
 0x435   :  { %4245 = vmatpush3.bf16.msra.mxu0 %v890_v44  ;;  %v894_v44 = vld [vmem:[#allocation2 + $0x168] sm:$0xff] }
 0x436   :  { %v4659_v53 = vpop.eup %4658  ;;  %4246 = vmatprep.subr.bf16.mxu0 %v4911_v2 }
 0x437   :  { %v1096_v40 = vsel %vm1071_vm10, %v4659_v53, 0.0  ;;  %v4661_v41 = vpop.eup %4660 }
 0x438   :  { %1103 = vadd.xlane.f32.xlu0 %v1102_v61  ;;  %1097 = vadd.xlane.f32.xlu1 %v1096_v40  ;;  %v1105_v57 = vsel %vm1071_vm10, %v4661_v41, 0.0 }
 0x439   :  { %4247 = vmatpush3.bf16.msra.mxu0 %v891_v45 }
 0x43a   :  { %4248 = vmatprep.subr.bf16.mxu0 %v4911_v2 }
 0x43c   :  { %1106 = vadd.xlane.f32.xlu1 %v1105_v57 }
 0x43d   :  { %4249 = vmatpush3.bf16.msra.mxu0 %v892_v46 }
 0x43e   :  { %4250 = vmatprep.subr.bf16.mxu0 %v4911_v2 }
 0x441   :  { %4251 = vmatpush3.bf16.msra.mxu0 %v893_v47 }
 0x442   :  { %4252 = vmatprep.subr.bf16.mxu0 %v4911_v2 }
 0x445   :  { %4253 = vmatpush3.bf16.msra.mxu0 %v894_v44  ;;  %v3809_v44 = vld [vmem:[#allocation10 + $0x8] ss:$0 sm:$0xff] }
 0x4c1   :  { %v1101_v48 = vpop.xlane.xlu0 %1100 }
 0x4c2   :  { %4662 = vrcp.f32 %v1101_v48 }
 0x4c5   :  { %v1098_v52 = vpop.xlane.xlu1 %1097  ;;  %v1104_v63 = vpop.xlane.xlu0 %1103 }
 0x4c6   :  { %4664 = vrcp.f32 %v1098_v52  ;;  %v3807_v52 = vld [vmem:[#allocation10 + $0x6] ss:$0 sm:$0xff] }
 0x4c7   :  { %4666 = vrcp.f32 %v1104_v63 }
 0x4cc   :  { %v4663_v54 = vpop.eup %4662 }
 0x4cd   :  { %v1113_v55 = vmul.f32 %v4663_v54, %v4655_v60  ;;  %v1107_v60 = vpop.xlane.xlu1 %1106 }
 0x4ce   :  { %4668 = vrcp.f32 %v1107_v60 }
 0x4cf   :  { %v1119_v58 = vpack.c.bf16 %v1113_v55, %v1113_v55 }
 0x4d0   :  { %v4665_v61 = vpop.eup %4664 }
 0x4d1   :  { %4217 = vmatmul.mubr.msk.bf16.vlgmr.msra.gmra.mrb[16].mxu1 %vm1071_vm10, %v1119_v58  ;;  %v1112_v40 = vmul.f32 %v4665_v61, %v4659_v53 }
 0x4d2   :  { %4221 = vmatpush3.bf16.msra.mxu1 %v5312_v49  ;;  %4222 = vmatprep.mubr.msk.bf16.mxu1 %vm4931_vm8, %v4911_v2  ;;  %v4667_v49 = vpop.eup %4666 }
 0x4d3   :  { %4226 = vmatprep.subr.bf16.mxu1 %v4911_v2  ;;  %v1116_v57 = vpack.c.bf16 %v1112_v40, %v1112_v40  ;;  %v1114_v62 = vmul.f32 %v4667_v49, %v4657_v1 }
 0x4d5   :  { %v1215_v42 = vpack.c.bf16 %v1114_v62, %v1114_v62 }
 0x4d8   :  { %v4669_v53 = vpop.eup %4668 }
 0x4d9   :  { %v1115_v43 = vmul.f32 %v4669_v53, %v4661_v41 }
 0x4dd   :  { %4223 = vmatmul.mubr.msk.bf16.vlgmr.msra.gmra.mrb[16].mxu1 %vm1071_vm10, %v1116_v57 }
 0x4de   :  { %4227 = vmatpush3.bf16.msra.mxu1 %v5315_v50  ;;  %4228 = vmatprep.mubr.msk.bf16.mxu1 %vm4931_vm8, %v4911_v2  ;;  %v1265_v50 = vpack.c.bf16 %v1115_v43, %v1115_v43  ;;  %v3808_v43 = vld [vmem:[#allocation10 + $0x7] ss:$0 sm:$0xff] }
 0x4df   :  { %4232 = vmatprep.subr.bf16.mxu1 %v4911_v2 }
 0x4e9   :  { %4229 = vmatmul.mubr.msk.bf16.vlgmr.msra.gmra.mrb[16].mxu1 %vm1071_vm10, %v1215_v42 }
 0x4ea   :  { %4233 = vmatpush3.bf16.msra.mxu1 %v5318_v51  ;;  %4234 = vmatprep.mubr.msk.bf16.mxu1 %vm4931_vm8, %v4911_v2 }
 0x4eb   :  { %1403 = vmatprep.subr.bf16.mxu1 %v5257_v25 }
 0x4f5   :  { %4235 = vmatmul.mubr.msk.bf16.vlgmr.msra.gmra.mrb[16].mxu1 %vm1071_vm10, %v1265_v50 }
 0x4f6   :  { %1435 = vmatprep.mubr.bf16.mxu1 %v4933_v23 }
 0x5c8   :  { %v1308_v45 = vpop.f32.mrb[16].mxu1 }
 0x5c9   :  { %v1316_v46 = vpack.c.bf16 %v1308_v45, %v1308_v45  ;;  %v4236_v47 = vpop.f32.mrb[17].mxu1 }
 0x5ca   :  { %v1311_v48 = vpop.f32.mrb[18].mxu1 }
 0x5cb   :  { %v4237_v1 = vpop.f32.mrb[19].mxu1  ;;  %4255 = vmatmul.mubr.bf16.vlgmr.msra.gmra.mrb[12].mxu0 %v1316_v46 }
 0x69e   :  { %v1355_v54 = vpop.f32.mrb[12].mxu0 }
 0x69f   :  { %v1356_v55 = vadd.f32 %v3807_v52, %v1355_v54  ;;  %v4256_v51 = vpop.f32.mrb[13].mxu0 }
 0x6a0   :  { %v1358_v58 = vpop.f32.mrb[14].mxu0 }
 0x6a1   :  { %v1361_v63 = vadd.f32 %v1356_v55, %v5247_v56  ;;  %v4257_v61 = vpop.f32.mrb[15].mxu0 }
 0x6a3   :  { %1364 = vadd.xlane.f32.xlu0 %v1361_v63 }
 0x730   :  { %v1365_v41 = vpop.xlane.xlu0 %1364 }
 0x731   :  { %v1367_v40 = vmul.f32 0.0078125, %v1365_v41 }
 0x733   :  { %v1368_v57 = vsub.f32 %v1361_v63, %v1367_v40 }
 0x735   :  { %v1369_v60 = vmul.f32 %v1368_v57, %v1368_v57 }
 0x737   :  { %1370 = vadd.xlane.f32.xlu1 %v1369_v60 }
 0x7c4   :  { %v1371_v49 = vpop.xlane.xlu1 %1370 }
 0x7c5   :  { %v1372_v62 = vmul.f32 0.0078125, %v1371_v49 }
 0x7c7   :  { %v1373_v42 = vadd.f32 1e-05, %v1372_v62 }
 0x7c9   :  { %4670 = vrsqrt.f32 %v1373_v42 }
 0x7d3   :  { %v4671_v53 = vpop.eup %4670 }
 0x7d4   :  { %v1375_v50 = vmul.f32 %v4671_v53, %v1368_v57 }
 0x7d6   :  { %v1380_v45 = vmul.f32 %v3808_v43, %v1375_v50 }
 0x7d8   :  { %v5352_v46 = vadd.f32 %v3809_v44, %v1380_v45 }
 0x7d9   :  { %4887 = dma.done.wait [#allocation7], 2048 }
 0x7da   :  { %4888 = vsyncadd [#allocation7], 4294965248  ;;  %1404 = vmatpush1.bf16.msra.mxu1 %v5255_v24  ;;  %v1454_v56 = vld [vmem:[#allocation4 + $0x40] sm:$0xff]  ;;  %v1455_v48 = vld [vmem:[#allocation4 + $0x48] sm:$0xff] }
 0x7db   :  { %1405 = vmatprep.subr.bf16.mxu1 %v5261_v27  ;;  %v1446_v47 = vld [vmem:[#allocation4] sm:$0xff]  ;;  %3948 = vmatprep.subr.bf16.mxu0 %v1454_v56  ;;  %v1447_v25 = vld [vmem:[#allocation4 + $0x8] sm:$0xff]  ;;  %v1456_v1 = vld [vmem:[#allocation4 + $0x50] sm:$0xff] }
 0x7dc   :  { %3949 = vmatpush3.bf16.msra.mxu0 %v1446_v47  ;;  %v1448_v24 = vld [vmem:[#allocation4 + $0x10] sm:$0xff]  ;;  %v1449_v27 = vld [vmem:[#allocation4 + $0x18] sm:$0xff]  ;;  %v1390_v52 = vld [vmem:[%s5836_s3] ss:$4 sm:$0x3] }
 0x7dd   :  { %3950 = vmatprep.subr.bf16.mxu0 %v1455_v48  ;;  %v3810_v53 = vld [vmem:[#allocation10 + $0x9] ss:$0 sm:$0xff] }
 0x7de   :  { %1406 = vmatpush1.bf16.msra.mxu1 %v5259_v26  ;;  %v1457_v26 = vld [vmem:[#allocation4 + $0x58] sm:$0xff] }
 0x7df   :  { %1407 = vmatprep.subr.bf16.mxu1 %v5265_v29  ;;  %v1450_v29 = vld [vmem:[#allocation4 + $0x20] sm:$0xff] }
 0x7e0   :  { %3951 = vmatpush3.bf16.msra.mxu0 %v1447_v25 }
 0x7e1   :  { %3952 = vmatprep.subr.bf16.mxu0 %v1456_v1 }
 0x7e2   :  { %1408 = vmatpush1.bf16.msra.mxu1 %v5263_v28  ;;  %v1458_v28 = vld [vmem:[#allocation4 + $0x60] sm:$0xff] }
 0x7e3   :  { %1409 = vmatprep.subr.bf16.mxu1 %v5269_v31  ;;  %v1451_v31 = vld [vmem:[#allocation4 + $0x28] sm:$0xff] }
 0x7e4   :  { %3953 = vmatpush3.bf16.msra.mxu0 %v1448_v24 }
 0x7e5   :  { %3954 = vmatprep.subr.bf16.mxu0 %v1457_v26 }
 0x7e6   :  { %1410 = vmatpush1.bf16.msra.mxu1 %v5267_v30  ;;  %v1459_v30 = vld [vmem:[#allocation4 + $0x68] sm:$0xff] }
 0x7e7   :  { %1411 = vmatprep.subr.bf16.mxu1 %v5273_v33  ;;  %v1460_v33 = vld [vmem:[#allocation4 + $0x70] sm:$0xff] }
 0x7e8   :  { %3955 = vmatpush3.bf16.msra.mxu0 %v1449_v27 }
 0x7e9   :  { %3956 = vmatprep.subr.bf16.mxu0 %v1458_v28 }
 0x7ea   :  { %1412 = vmatpush1.bf16.msra.mxu1 %v5271_v32  ;;  %v1391_v32 = vpack.c.bf16 %v5352_v46, %v5352_v46 }
 0x7eb   :  { %1413 = vmatprep.subr.bf16.mxu1 %v5277_v35  ;;  %v1461_v35 = vld [vmem:[#allocation4 + $0x78] sm:$0xff] }
 0x7ec   :  { %3957 = vmatpush3.bf16.msra.mxu0 %v1450_v29  ;;  %v3811_v29 = vld [vmem:[#allocation10 + $0xa] ss:$0 sm:$0xff] }
 0x7ed   :  { %3958 = vmatprep.subr.bf16.mxu0 %v1459_v30 }
 0x7ee   :  { %1414 = vmatpush1.bf16.msra.mxu1 %v5275_v34  ;;  %v1452_v34 = vld [vmem:[#allocation4 + $0x30] sm:$0xff] }
 0x7ef   :  { %1415 = vmatprep.subr.bf16.mxu1 %v5281_v37  ;;  %v1453_v37 = vld [vmem:[#allocation4 + $0x38] sm:$0xff] }
 0x7f0   :  { %3959 = vmatpush3.bf16.msra.mxu0 %v1451_v31  ;;  %v3812_v31 = vld [vmem:[#allocation10 + $0xb] ss:$0 sm:$0xff] }
 0x7f1   :  { %3960 = vmatprep.subr.bf16.mxu0 %v1460_v33 }
 0x7f2   :  { %1416 = vmatpush1.bf16.msra.mxu1 %v5279_v36  ;;  %v1394_v36 = vshrl.u32 %v259_v0, 7 }
 0x7f3   :  { %1417 = vmatprep.subr.bf16.mxu1 %v5285_v39 }
 0x7f4   :  { %3961 = vmatpush3.bf16.msra.mxu0 %v1452_v34  ;;  %v5374_v39 = vsub.s32 0, %v1394_v36  ;;  %v5379_v54 = vsub.s32 1, %v1394_v36 }
 0x7f5   :  { %3962 = vmatprep.subr.bf16.mxu0 %v1461_v35 }
 0x7f6   :  { %1418 = vmatpush1.bf16.msra.mxu1 %v5283_v38  ;;  %v1396_v38 = vrot.slane %v1390_v52, %v5374_v39  ;;  %v1400_v55 = vrot.slane %v1390_v52, %v5379_v54 }
 0x7f8   :  { %3963 = vmatpush3.bf16.msra.mxu0 %v1453_v37 }
 0x7f9   :  { %1436 = vmatmul.mubr.bf16.vlgmr.msra.gmra.mrb[20].mxu1 %v1391_v32 }
 0x8cc   :  { %v1437_v51 = vpop.f32.mrb[20].mxu1 }
 0x8cd   :  { %v1438_v58 = vadd.f32 %v1437_v51, %v1396_v38  ;;  %v1439_v63 = vpop.f32.mrb[21].mxu1 }
 0x8ce   :  { %v1440_v61 = vadd.f32 %v1439_v63, %v1400_v55  ;;  %v1441_v41 = vpop.f32.mrb[22].mxu1 }
 0x8cf   :  { %v1444_v40 = vmax.f32 %v1438_v58, 0.0  ;;  %v1442_v57 = vpop.f32.mrb[23].mxu1 }
 0x8d0   :  { %v1445_v0 = vmax.f32 %v1440_v61, 0.0 }
 0x8d1   :  { %v1463_v49 = vpack.c.bf16 %v1444_v40, %v1444_v40 }
 0x8d2   :  { %v1464_v60 = vpack.c.bf16 %v1445_v0, %v1445_v0 }
 0x8d4   :  { %1501 = vmatprep.mubr.bf16.mxu0 %v1464_v60 }
 0x8d5   :  { %1502 = vmatmul.mubr.bf16.vlgmr.msra.gmra.mrb[16].mxu0 %v1463_v49 }
 0x9a8   :  { %v3964_v62 = vpop.f32.mrb[16].mxu0 }
 0x9a9   :  { %v3965_v42 = vpop.f32.mrb[17].mxu0 }
 0x9aa   :  { %v3966_v43 = vadd.f32 %v3965_v42, %v3964_v62  ;;  %v3967_v50 = vpop.f32.mrb[18].mxu0 }
 0x9ab   :  { %v3968_v44 = vpop.f32.mrb[19].mxu0 }
 0x9ac   :  { %v1504_v45 = vadd.f32 %v3966_v43, %v3810_v53 }
 0x9ae   :  { %v1509_v56 = vadd.f32 %v1504_v45, %v5352_v46 }
 0x9b0   :  { %1512 = vadd.xlane.f32.xlu0 %v1509_v56 }
 0xa3d   :  { %v1513_v47 = vpop.xlane.xlu0 %1512 }
 0xa3e   :  { %v1514_v48 = vmul.f32 0.0078125, %v1513_v47 }
 0xa40   :  { %v1515_v25 = vsub.f32 %v1509_v56, %v1514_v48 }
 0xa42   :  { %v1516_v1 = vmul.f32 %v1515_v25, %v1515_v25 }
 0xa44   :  { %1517 = vadd.xlane.f32.xlu0 %v1516_v1 }
 0xad1   :  { %v1518_v24 = vpop.xlane.xlu0 %1517 }
 0xad2   :  { %v1519_v26 = vmul.f32 0.0078125, %v1518_v24 }
 0xad4   :  { %v1520_v27 = vadd.f32 1e-05, %v1519_v26 }
 0xad6   :  { %4672 = vrsqrt.f32 %v1520_v27 }
 0xae0   :  { %v4673_v28 = vpop.eup %4672 }
 0xae1   :  { %v1522_v30 = vmul.f32 %v4673_v28, %v1515_v25 }
 0xae3   :  { %v1527_v32 = vmul.f32 %v3811_v29, %v1522_v30 }
 0xae5   :  { %v5384_v33 = vadd.f32 %v3812_v31, %v1527_v32 }
 0xae6   :  { %4889 = dma.done.wait [#allocation5 + $0x1], 6144 }
 0xae7   :  { %4890 = vsyncadd [#allocation5 + $0x1], 4294961152  ;;  %1616 = vmatprep.mubr.bf16.mxu1 %v4933_v23  ;;  %4258 = vmatprep.subr.bf16.mxu0 %v4911_v2  ;;  %v5390_v46 = vld [vmem:[#allocation2 + $0x1a0] sm:$0xff]  ;;  %v5392_v34 = vld [vmem:[#allocation2 + $0x1a8] sm:$0xff]  ;;  %v1583_v27 = vpack.c.bf16 %v5384_v33, %v5384_v33 }
 0xae8   :  { %4274 = vmatprep.mubr.msk.bf16.mxu0 %vm4931_vm8, %v4911_v2  ;;  %v5394_v35 = vld [vmem:[#allocation2 + $0x1d0] sm:$0xff]  ;;  %v5396_v37 = vld [vmem:[#allocation2 + $0x1d8] sm:$0xff]  ;;  %v5398_v36 = vld [vmem:[#allocation2 + $0x200] sm:$0xff] }
 0xae9   :  { %v5400_v52 = vld [vmem:[#allocation2 + $0x208] sm:$0xff]  ;;  %v5402_v38 = vld [vmem:[#allocation2 + $0x230] sm:$0xff]  ;;  %v5404_v55 = vld [vmem:[#allocation2 + $0x238] sm:$0xff] }
 0xaea   :  { %v5406_v51 = vld [vmem:[#allocation2 + $0x260] sm:$0xff]  ;;  %v5408_v58 = vld [vmem:[#allocation2 + $0x268] sm:$0xff]  ;;  %v5410_v63 = vld [vmem:[#allocation2 + $0x290] sm:$0xff] }
 0xaeb   :  { %v5412_v61 = vld [vmem:[#allocation2 + $0x298] sm:$0xff]  ;;  %v5414_v41 = vld [vmem:[#allocation2 + $0x2c0] sm:$0xff]  ;;  %v5416_v40 = vld [vmem:[#allocation2 + $0x2c8] sm:$0xff] }
 0xaec   :  { %v5418_v57 = vld [vmem:[#allocation2 + $0x2f0] sm:$0xff]  ;;  %v5420_v0 = vld [vmem:[#allocation2 + $0x2f8] sm:$0xff]  ;;  %v1536_v60 = vld [vmem:[#allocation2 + $0x188] sm:$0xff] }
 0xaed   :  { %v1535_v49 = vld [vmem:[#allocation2 + $0x180] sm:$0xff]  ;;  %1584 = vmatprep.subr.bf16.mxu1 %v1536_v60  ;;  %v1539_v62 = vld [vmem:[#allocation2 + $0x1b8] sm:$0xff]  ;;  %v1538_v42 = vld [vmem:[#allocation2 + $0x1b0] sm:$0xff] }
 0xaee   :  { %1585 = vmatpush1.bf16.msra.mxu1 %v1535_v49  ;;  %v1542_v53 = vld [vmem:[#allocation2 + $0x1e8] sm:$0xff]  ;;  %v1541_v43 = vld [vmem:[#allocation2 + $0x1e0] sm:$0xff]  ;;  %v1545_v50 = vld [vmem:[#allocation2 + $0x218] sm:$0xff] }
 0xaef   :  { %1586 = vmatprep.subr.bf16.mxu1 %v1539_v62  ;;  %v1544_v44 = vld [vmem:[#allocation2 + $0x210] sm:$0xff]  ;;  %v1548_v45 = vld [vmem:[#allocation2 + $0x248] sm:$0xff]  ;;  %v1547_v56 = vld [vmem:[#allocation2 + $0x240] sm:$0xff] }
 0xaf0   :  { %v1551_v47 = vld [vmem:[#allocation2 + $0x278] sm:$0xff]  ;;  %v1550_v48 = vld [vmem:[#allocation2 + $0x270] sm:$0xff]  ;;  %v1554_v25 = vld [vmem:[#allocation2 + $0x2a8] sm:$0xff] }
 0xaf1   :  { %v1553_v1 = vld [vmem:[#allocation2 + $0x2a0] sm:$0xff]  ;;  %v1557_v24 = vld [vmem:[#allocation2 + $0x2d8] sm:$0xff]  ;;  %v1556_v26 = vld [vmem:[#allocation2 + $0x2d0] sm:$0xff] }
 0xaf2   :  { %1587 = vmatpush1.bf16.msra.mxu1 %v1538_v42  ;;  %v3813_v28 = vld [vmem:[#allocation10 + $0xc] ss:$0 sm:$0xff]  ;;  %v3814_v29 = vld [vmem:[#allocation10 + $0xd] ss:$0 sm:$0xff] }
 0xaf3   :  { %1588 = vmatprep.subr.bf16.mxu1 %v1542_v53 }
 0xaf6   :  { %1589 = vmatpush1.bf16.msra.mxu1 %v1541_v43 }
 0xaf7   :  { %1590 = vmatprep.subr.bf16.mxu1 %v1545_v50 }
 0xafa   :  { %1591 = vmatpush1.bf16.msra.mxu1 %v1544_v44 }
 0xafb   :  { %1592 = vmatprep.subr.bf16.mxu1 %v1548_v45 }
 0xafe   :  { %1593 = vmatpush1.bf16.msra.mxu1 %v1547_v56 }
 0xaff   :  { %1594 = vmatprep.subr.bf16.mxu1 %v1551_v47  ;;  %v1537_v47 = vld [vmem:[#allocation2 + $0x190] sm:$0xff] }
 0xb00   :  { %4259 = vmatpush3.bf16.msra.mxu0 %v1537_v47 }
 0xb01   :  { %4260 = vmatprep.subr.bf16.mxu0 %v4911_v2 }
 0xb02   :  { %1595 = vmatpush1.bf16.msra.mxu1 %v1550_v48  ;;  %v1540_v48 = vld [vmem:[#allocation2 + $0x1c0] sm:$0xff] }
 0xb03   :  { %1596 = vmatprep.subr.bf16.mxu1 %v1554_v25  ;;  %v1543_v25 = vld [vmem:[#allocation2 + $0x1f0] sm:$0xff] }
 0xb04   :  { %4261 = vmatpush3.bf16.msra.mxu0 %v1540_v48 }
 0xb05   :  { %4262 = vmatprep.subr.bf16.mxu0 %v4911_v2 }
 0xb06   :  { %1597 = vmatpush1.bf16.msra.mxu1 %v1553_v1  ;;  %v1546_v1 = vld [vmem:[#allocation2 + $0x220] sm:$0xff] }
 0xb07   :  { %1598 = vmatprep.subr.bf16.mxu1 %v1557_v24  ;;  %v1549_v24 = vld [vmem:[#allocation2 + $0x250] sm:$0xff] }
 0xb08   :  { %4263 = vmatpush3.bf16.msra.mxu0 %v1543_v25 }
 0xb09   :  { %4264 = vmatprep.subr.bf16.mxu0 %v4911_v2 }
 0xb0a   :  { %1599 = vmatpush1.bf16.msra.mxu1 %v1556_v26  ;;  %v1552_v26 = vld [vmem:[#allocation2 + $0x280] sm:$0xff] }
 0xb0c   :  { %4265 = vmatpush3.bf16.msra.mxu0 %v1546_v1 }
 0xb0d   :  { %1617 = vmatmul.mubr.bf16.vlgmr.msra.gmra.mrb[24].mxu1 %v1583_v27  ;;  %4266 = vmatprep.subr.bf16.mxu0 %v4911_v2 }
 0xb10   :  { %4267 = vmatpush3.bf16.msra.mxu0 %v1549_v24 }
 0xb11   :  { %4268 = vmatprep.subr.bf16.mxu0 %v4911_v2 }
 0xb14   :  { %4269 = vmatpush3.bf16.msra.mxu0 %v1552_v26 }
 0xb15   :  { %4270 = vmatprep.subr.bf16.mxu0 %v4911_v2 }
 0xbe0   :  { %v1618_v30 = vpop.f32.mrb[24].mxu1 }
 0xbe1   :  { %v1670_v31 = vadd.f32 %v3813_v28, %v1618_v30  ;;  %v1620_v32 = vpop.f32.mrb[25].mxu1  ;;  %v1555_v28 = vld [vmem:[#allocation2 + $0x2b0] sm:$0xff] }
 0xbe2   :  { %v1676_v60 = vadd.f32 %v3814_v29, %v1620_v32  ;;  %v1622_v49 = vpop.f32.mrb[26].mxu1  ;;  %4271 = vmatpush3.bf16.msra.mxu0 %v1555_v28  ;;  %v1558_v29 = vld [vmem:[#allocation2 + $0x2e0] sm:$0xff] }
 0xbe3   :  { %v1623_v62 = vpop.f32.mrb[27].mxu1  ;;  %v1683_v42 = vmul.f32 %v5029_v3, %v1670_v31  ;;  %v1684_v53 = vmul.f32 %v5033_v4, %v1670_v31  ;;  %v1685_v44 = vmul.f32 %v5040_v6, %v1670_v31  ;;  %v1686_v45 = vmul.f32 %v5036_v5, %v1670_v31  ;;  %4272 = vmatprep.subr.bf16.mxu0 %v4911_v2 }
 0xbe4   :  { %v1689_v43 = vpack.c.bf16 %v1676_v60, %v1676_v60 }
 0xbe5   :  { %v1687_v50 = vpack.c.bf16 %v1684_v53, %v1683_v42  ;;  %v1688_v56 = vpack.c.bf16 %v1686_v45, %v1685_v44 }
 0xbe6   :  { %4278 = vmatprep.subr.bf16.mxu1 %v1689_v43  ;;  %4273 = vmatpush3.bf16.msra.mxu0 %v1558_v29 }
 0xbe7   :  { %4279 = vmatpush3.bf16.xpose.msra.mxu1 %v1689_v43  ;;  %4280 = vmatprep.mubr.bf16.mxu1 %v1687_v50 }
 0xbe8   :  { %4284 = vmatprep.subr.bf16.mxu1 %v4911_v2  ;;  %4290 = vmatprep.subr.bf16.mxu0 %v4911_v2 }
 0xbe9   :  { %4275 = vmatmul.mubr.bf16.vlgmr.msra.gmra.mrb[20].mxu0 %v1583_v27 }
 0xbea   :  { %4292 = vmatprep.mubr.msk.bf16.mxu0 %vm4931_vm8, %v4911_v2 }
 0xbee   :  { %4281 = vmatmul.mubr.bf16.vlgmr.msra.gmra.mrb[28].mxu1 %v1688_v56 }
 0xbef   :  { %4286 = vmatprep.mubr.msk.bf16.mxu1 %vm4931_vm8, %v4911_v2 }
 0xcbc   :  { %v1659_v45 = vpop.f32.mrb[20].mxu0 }
 0xcbd   :  { %v4276_v56 = vpop.f32.mrb[21].mxu0 }
 0xcbe   :  { %v1662_v47 = vpop.f32.mrb[22].mxu0 }
 0xcbf   :  { %v4277_v48 = vpop.f32.mrb[23].mxu0 }
 0xcc1   :  { %v4282_v30 = vpop.f32.mrb[28].mxu1 }
 0xcc2   :  { %v1724_v31 = vpop.f32.mrb[29].mxu1  ;;  %v1741_v62 = vmul.f32 0.17677669, %v4282_v30 }
 0xcc3   :  { %v1739_v32 = vmul.f32 0.17677669, %v1724_v31  ;;  %v4283_v60 = vpop.f32.mrb[30].mxu1 }
 0xcc4   :  { %v1727_v49 = vpop.f32.mrb[31].mxu1  ;;  %v1742_v43 = vmul.f32 0.17677669, %v4283_v60  ;;  %v1749_v44 = vsel %vm1071_vm10, %v1741_v62, -inf }
 0xcc5   :  { %v1740_v42 = vmul.f32 0.17677669, %v1727_v49  ;;  %v1743_v53 = vsel %vm1071_vm10, %v1739_v32, -inf }
 0xcc6   :  { %1744 = vmax.xlane.f32.xlu0 %v1743_v53  ;;  %v1752_v27 = vsel %vm1071_vm10, %v1742_v43, -inf }
 0xcc7   :  { %v1746_v50 = vsel %vm1071_vm10, %v1740_v42, -inf }
 0xcc8   :  { %1747 = vmax.xlane.f32.xlu1 %v1746_v50 }
 0xcca   :  { %1750 = vmax.xlane.f32.xlu0 %v1749_v44 }
 0xccc   :  { %1753 = vmax.xlane.f32.xlu1 %v1752_v27 }
 0xd53   :  { %v1745_v25 = vpop.xlane.xlu0 %1744 }
 0xd54   :  { %v1755_v1 = vsub.f32 %v1739_v32, %v1745_v25 }
 0xd55   :  { %v1748_v24 = vpop.xlane.xlu1 %1747 }
 0xd56   :  { %v1759_v26 = vmul.f32 1.442695, %v1755_v1  ;;  %v1756_v28 = vsub.f32 %v1740_v42, %v1748_v24 }
 0xd57   :  { %v1751_v29 = vpop.xlane.xlu0 %1750 }
 0xd58   :  { %4674 = vpow2.f32 %v1759_v26  ;;  %v1761_v30 = vmul.f32 1.442695, %v1756_v28  ;;  %v1757_v31 = vsub.f32 %v1741_v62, %v1751_v29 }
 0xd59   :  { %v1754_v60 = vpop.xlane.xlu1 %1753 }
 0xd5a   :  { %4676 = vpow2.f32 %v1761_v30  ;;  %v1763_v49 = vmul.f32 1.442695, %v1757_v31  ;;  %v1758_v53 = vsub.f32 %v1742_v43, %v1754_v60  ;;  %v3815_v43 = vld [vmem:[#allocation10 + $0xe] ss:$0 sm:$0xff] }
 0xd5b   :  { %v1682_v25 = vadd.f32 %v3815_v43, %v1659_v45 }
 0xd5c   :  { %4678 = vpow2.f32 %v1763_v49  ;;  %v1765_v50 = vmul.f32 1.442695, %v1758_v53 }
 0xd5d   :  { %v1788_v1 = vmul.f32 %v5029_v3, %v1682_v25  ;;  %v1791_v24 = vmul.f32 %v5033_v4, %v1682_v25  ;;  %v1886_v49 = vmul.f32 %v5040_v6, %v1682_v25 }
 0xd5e   :  { %4680 = vpow2.f32 %v1765_v50 }
 0xd5f   :  { %v1789_v26 = vpack.c.bf16 %v1788_v1, %v1788_v1  ;;  %v1792_v28 = vpack.c.bf16 %v1791_v24, %v1791_v24 }
 0xd61   :  { %v1843_v29 = vsel %vm1125_vm9, %v1789_v26, 0  ;;  %v1797_v30 = vsel %vm1125_vm9, %v1792_v28, 0  ;;  %v1559_v26 = vld [vmem:[#allocation2 + $0x198] sm:$0xff] }
 0xd62   :  { %v4675_v44 = vpop.eup %4674  ;;  %4291 = vmatpush3.bf16.msra.mxu0 %v1843_v29  ;;  %4285 = vmatpush3.bf16.msra.mxu1 %v1797_v30  ;;  %v1560_v29 = vld [vmem:[#allocation2 + $0x1c8] sm:$0xff] }
 0xd63   :  { %v1767_v27 = vsel %vm1071_vm10, %v4675_v44, 0.0  ;;  %4296 = vmatprep.subr.bf16.mxu0 %v4911_v2  ;;  %4308 = vmatprep.subr.bf16.mxu1 %v4911_v2 }
 0xd64   :  { %v4677_v56 = vpop.eup %4676  ;;  %1768 = vadd.xlane.f32.xlu0 %v1767_v27  ;;  %v1887_v27 = vpack.c.bf16 %v1886_v49, %v1886_v49 }
 0xd65   :  { %v1770_v42 = vsel %vm1071_vm10, %v4677_v56, 0.0 }
 0xd66   :  { %v4679_v32 = vpop.eup %4678 }
 0xd67   :  { %v1773_v47 = vsel %vm1071_vm10, %v4679_v32, 0.0 }
 0xd68   :  { %v4681_v48 = vpop.eup %4680  ;;  %1774 = vadd.xlane.f32.xlu1 %v1773_v47  ;;  %1771 = vadd.xlane.f32.xlu0 %v1770_v42 }
 0xd69   :  { %v1776_v62 = vsel %vm1071_vm10, %v4681_v48, 0.0 }
 0xd6c   :  { %1777 = vadd.xlane.f32.xlu1 %v1776_v62  ;;  %v1892_v62 = vsel %vm1125_vm9, %v1887_v27, 0  ;;  %v1564_v27 = vld [vmem:[#allocation2 + $0x288] sm:$0xff] }
 0xdf1   :  { %v1769_v31 = vpop.xlane.xlu0 %1768 }
 0xdf2   :  { %4682 = vrcp.f32 %v1769_v31 }
 0xdf5   :  { %v1772_v60 = vpop.xlane.xlu0 %1771  ;;  %v1775_v45 = vpop.xlane.xlu1 %1774 }
 0xdf6   :  { %4684 = vrcp.f32 %v1772_v60 }
 0xdf7   :  { %4686 = vrcp.f32 %v1775_v45 }
 0xdf9   :  { %v1778_v1 = vpop.xlane.xlu1 %1777 }
 0xdfa   :  { %4688 = vrcp.f32 %v1778_v1 }
 0xdfc   :  { %v4683_v53 = vpop.eup %4682 }
 0xdfd   :  { %v1783_v50 = vmul.f32 %v4683_v53, %v4675_v44  ;;  %v1936_v44 = vmul.f32 %v5036_v5, %v1682_v25  ;;  %v1562_v53 = vld [vmem:[#allocation2 + $0x228] sm:$0xff] }
 0xdff   :  { %v1787_v47 = vpack.c.bf16 %v1783_v50, %v1783_v50  ;;  %v1937_v30 = vpack.c.bf16 %v1936_v44, %v1936_v44  ;;  %v1563_v50 = vld [vmem:[#allocation2 + $0x258] sm:$0xff] }
 0xe00   :  { %v4685_v42 = vpop.eup %4684 }
 0xe01   :  { %4293 = vmatmul.mubr.msk.bf16.vlgmr.msra.gmra.mrb[24].mxu0 %vm1071_vm10, %v1787_v47  ;;  %v1784_v43 = vmul.f32 %v4685_v42, %v4677_v56  ;;  %v4687_v28 = vpop.eup %4686  ;;  %v1942_v60 = vsel %vm1125_vm9, %v1937_v30, 0  ;;  %v1566_v47 = vld [vmem:[#allocation2 + $0x2e8] sm:$0xff]  ;;  %v3820_v30 = vld [vmem:[#allocation10 + $0xf] ss:$0 sm:$0xff] }
 0xe02   :  { %4297 = vmatpush3.bf16.msra.mxu0 %v1892_v62  ;;  %4298 = vmatprep.mubr.msk.bf16.mxu0 %vm4931_vm8, %v4911_v2  ;;  %v1785_v56 = vmul.f32 %v4687_v28, %v4679_v32  ;;  %v1561_v32 = vld [vmem:[#allocation2 + $0x1f8] sm:$0xff] }
 0xe03   :  { %v1790_v24 = vpack.c.bf16 %v1784_v43, %v1784_v43  ;;  %4302 = vmatprep.subr.bf16.mxu0 %v4911_v2 }
 0xe04   :  { %v1885_v31 = vpack.c.bf16 %v1785_v56, %v1785_v56  ;;  %v4689_v25 = vpop.eup %4688 }
 0xe05   :  { %4287 = vmatmul.mubr.msk.bf16.vlgmr.msra.gmra.mrb[32].mxu1 %vm1071_vm10, %v1790_v24  ;;  %v1786_v45 = vmul.f32 %v4689_v25, %v4681_v48  ;;  %v1565_v48 = vld [vmem:[#allocation2 + $0x2b8] sm:$0xff] }
 0xe06   :  { %4309 = vmatpush3.bf16.msra.mxu1 %v1559_v26  ;;  %4324 = vmatprep.mubr.msk.bf16.mxu1 %vm4931_vm8, %v4911_v2 }
 0xe07   :  { %4310 = vmatprep.subr.bf16.mxu1 %v4911_v2  ;;  %v1935_v49 = vpack.c.bf16 %v1786_v45, %v1786_v45 }
 0xe0a   :  { %4311 = vmatpush3.bf16.msra.mxu1 %v1560_v29 }
 0xe0b   :  { %4312 = vmatprep.subr.bf16.mxu1 %v4911_v2 }
 0xe0d   :  { %4299 = vmatmul.mubr.msk.bf16.vlgmr.msra.gmra.mrb[24].mxu0 %vm1071_vm10, %v1885_v31 }
 0xe0e   :  { %4303 = vmatpush3.bf16.msra.mxu0 %v1942_v60  ;;  %4304 = vmatprep.mubr.msk.bf16.mxu0 %vm4931_vm8, %v4911_v2 }
 0xe0f   :  { %4313 = vmatpush3.bf16.msra.mxu1 %v1561_v32  ;;  %2071 = vmatprep.subr.bf16.mxu0 %v5392_v34 }
 0xe10   :  { %4314 = vmatprep.subr.bf16.mxu1 %v4911_v2 }
 0xe13   :  { %4315 = vmatpush3.bf16.msra.mxu1 %v1562_v53 }
 0xe14   :  { %4316 = vmatprep.subr.bf16.mxu1 %v4911_v2 }
 0xe17   :  { %4317 = vmatpush3.bf16.msra.mxu1 %v1563_v50 }
 0xe18   :  { %4318 = vmatprep.subr.bf16.mxu1 %v4911_v2 }
 0xe19   :  { %4305 = vmatmul.mubr.msk.bf16.vlgmr.msra.gmra.mrb[24].mxu0 %vm1071_vm10, %v1935_v49 }
 0xe1a   :  { %2103 = vmatprep.mubr.bf16.mxu0 %v4933_v23 }
 0xe1b   :  { %4319 = vmatpush3.bf16.msra.mxu1 %v1564_v27 }
 0xe1c   :  { %4320 = vmatprep.subr.bf16.mxu1 %v4911_v2 }
 0xe1f   :  { %4321 = vmatpush3.bf16.msra.mxu1 %v1565_v48 }
 0xe20   :  { %4322 = vmatprep.subr.bf16.mxu1 %v4911_v2 }
 0xe23   :  { %4323 = vmatpush3.bf16.msra.mxu1 %v1566_v47 }
 0xed8   :  { %v1833_v42 = vpop.f32.mrb[32].mxu1 }
 0xed9   :  { %v4288_v62 = vpop.f32.mrb[33].mxu1 }
 0xeda   :  { %v1836_v43 = vpop.f32.mrb[34].mxu1 }
 0xedb   :  { %v4289_v1 = vpop.f32.mrb[35].mxu1 }
 0xedc   :  { %v3821_v1 = vld [vmem:[#allocation10 + $0x10] ss:$0 sm:$0xff] }
 0xeec   :  { %v1978_v24 = vpop.f32.mrb[24].mxu0 }
 0xeed   :  { %v4528_v26 = vadd.f32 %v1978_v24, %v1833_v42  ;;  %v4306_v28 = vpop.f32.mrb[25].mxu0 }
 0xeee   :  { %v1981_v44 = vpop.f32.mrb[26].mxu0 }
 0xeef   :  { %v1986_v56 = vpack.c.bf16 %v4528_v26, %v4528_v26  ;;  %v4307_v29 = vpop.f32.mrb[27].mxu0  ;;  %v3822_v26 = vld [vmem:[#allocation10 + $0x11] ss:$0 sm:$0xff] }
 0xef1   :  { %4325 = vmatmul.mubr.bf16.vlgmr.msra.gmra.mrb[36].mxu1 %v1986_v56 }
 0xfc4   :  { %v2025_v31 = vpop.f32.mrb[36].mxu1 }
 0xfc5   :  { %v2026_v60 = vadd.f32 %v3820_v30, %v2025_v31  ;;  %v4326_v25 = vpop.f32.mrb[37].mxu1 }
 0xfc6   :  { %v2028_v45 = vpop.f32.mrb[38].mxu1 }
 0xfc7   :  { %v2031_v49 = vadd.f32 %v2026_v60, %v5384_v33  ;;  %v4327_v32 = vpop.f32.mrb[39].mxu1 }
 0xfc9   :  { %2034 = vadd.xlane.f32.xlu0 %v2031_v49 }
0x1056   :  { %v2035_v53 = vpop.xlane.xlu0 %2034 }
0x1057   :  { %v2036_v50 = vmul.f32 0.0078125, %v2035_v53 }
0x1059   :  { %v2037_v27 = vsub.f32 %v2031_v49, %v2036_v50 }
0x105b   :  { %v2038_v48 = vmul.f32 %v2037_v27, %v2037_v27 }
0x105d   :  { %2039 = vadd.xlane.f32.xlu1 %v2038_v48 }
0x10ea   :  { %v2040_v47 = vpop.xlane.xlu1 %2039 }
0x10eb   :  { %v2041_v42 = vmul.f32 0.0078125, %v2040_v47 }
0x10ed   :  { %v2042_v62 = vadd.f32 1e-05, %v2041_v42 }
0x10ef   :  { %4690 = vrsqrt.f32 %v2042_v62 }
0x10f9   :  { %v4691_v43 = vpop.eup %4690 }
0x10fa   :  { %v2044_v24 = vmul.f32 %v4691_v43, %v2037_v27 }
0x10fc   :  { %v2049_v28 = vmul.f32 %v3821_v1, %v2044_v24 }
0x10fe   :  { %v5478_v44 = vadd.f32 %v3822_v26, %v2049_v28 }
0x10ff   :  { %4891 = dma.done.wait [#allocation7 + $0x1], 2048 }
0x1100   :  { %4892 = vsyncadd [#allocation7 + $0x1], 4294965248  ;;  %2072 = vmatpush1.bf16.msra.mxu0 %v5390_v46  ;;  %v2122_v33 = vld [vmem:[#allocation4 + $0xc0] sm:$0xff]  ;;  %v2123_v29 = vld [vmem:[#allocation4 + $0xc8] sm:$0xff] }
0x1101   :  { %2073 = vmatprep.subr.bf16.mxu0 %v5396_v37  ;;  %v2114_v56 = vld [vmem:[#allocation4 + $0x80] sm:$0xff]  ;;  %3999 = vmatprep.subr.bf16.mxu1 %v2122_v33  ;;  %v2115_v34 = vld [vmem:[#allocation4 + $0x88] sm:$0xff]  ;;  %v2124_v30 = vld [vmem:[#allocation4 + $0xd0] sm:$0xff] }
0x1102   :  { %4000 = vmatpush3.bf16.msra.mxu1 %v2114_v56  ;;  %v2116_v46 = vld [vmem:[#allocation4 + $0x90] sm:$0xff]  ;;  %v2117_v37 = vld [vmem:[#allocation4 + $0x98] sm:$0xff] }
0x1103   :  { %4001 = vmatprep.subr.bf16.mxu1 %v2123_v29  ;;  %v3824_v62 = vld [vmem:[#allocation10 + $0x12] ss:$0 sm:$0xff] }
0x1104   :  { %2074 = vmatpush1.bf16.msra.mxu0 %v5394_v35  ;;  %v2125_v35 = vld [vmem:[#allocation4 + $0xd8] sm:$0xff] }
0x1105   :  { %2075 = vmatprep.subr.bf16.mxu0 %v5400_v52  ;;  %v2118_v52 = vld [vmem:[#allocation4 + $0xa0] sm:$0xff] }
0x1106   :  { %4002 = vmatpush3.bf16.msra.mxu1 %v2115_v34 }
0x1107   :  { %4003 = vmatprep.subr.bf16.mxu1 %v2124_v30 }
0x1108   :  { %2076 = vmatpush1.bf16.msra.mxu0 %v5398_v36  ;;  %v2126_v36 = vld [vmem:[#allocation4 + $0xe0] sm:$0xff] }
0x1109   :  { %2077 = vmatprep.subr.bf16.mxu0 %v5404_v55  ;;  %v2119_v55 = vld [vmem:[#allocation4 + $0xa8] sm:$0xff] }
0x110a   :  { %4004 = vmatpush3.bf16.msra.mxu1 %v2116_v46 }
0x110b   :  { %4005 = vmatprep.subr.bf16.mxu1 %v2125_v35 }
0x110c   :  { %2078 = vmatpush1.bf16.msra.mxu0 %v5402_v38  ;;  %v2127_v38 = vld [vmem:[#allocation4 + $0xe8] sm:$0xff] }
0x110d   :  { %2079 = vmatprep.subr.bf16.mxu0 %v5408_v58  ;;  %v2128_v58 = vld [vmem:[#allocation4 + $0xf0] sm:$0xff] }
0x110e   :  { %4006 = vmatpush3.bf16.msra.mxu1 %v2117_v37 }
0x110f   :  { %4007 = vmatprep.subr.bf16.mxu1 %v2126_v36  ;;  %v3825_v36 = vld [vmem:[#allocation10 + $0x13] ss:$0 sm:$0xff] }
0x1110   :  { %2080 = vmatpush1.bf16.msra.mxu0 %v5406_v51  ;;  %v2059_v51 = vpack.c.bf16 %v5478_v44, %v5478_v44 }
0x1111   :  { %2081 = vmatprep.subr.bf16.mxu0 %v5412_v61  ;;  %v2129_v61 = vld [vmem:[#allocation4 + $0xf8] sm:$0xff] }
0x1112   :  { %4008 = vmatpush3.bf16.msra.mxu1 %v2118_v52 }
0x1113   :  { %4009 = vmatprep.subr.bf16.mxu1 %v2127_v38  ;;  %v3826_v38 = vld [vmem:[#allocation10 + $0x14] ss:$0 sm:$0xff] }
0x1114   :  { %2082 = vmatpush1.bf16.msra.mxu0 %v5410_v63  ;;  %v2120_v63 = vld [vmem:[#allocation4 + $0xb0] sm:$0xff] }
0x1115   :  { %2083 = vmatprep.subr.bf16.mxu0 %v5416_v40  ;;  %v2121_v40 = vld [vmem:[#allocation4 + $0xb8] sm:$0xff] }
0x1116   :  { %4010 = vmatpush3.bf16.msra.mxu1 %v2119_v55 }
0x1117   :  { %4011 = vmatprep.subr.bf16.mxu1 %v2128_v58 }
0x1118   :  { %2084 = vmatpush1.bf16.msra.mxu0 %v5414_v41  ;;  %v3823_v41 = vld [vmem:[%s5836_s3 + $0x1] ss:$4 sm:$0x3] }
0x1119   :  { %2085 = vmatprep.subr.bf16.mxu0 %v5420_v0  ;;  %v2064_v0 = vrot.slane %v3823_v41, %v5374_v39  ;;  %v2068_v31 = vrot.slane %v3823_v41, %v5379_v54 }
0x111a   :  { %4012 = vmatpush3.bf16.msra.mxu1 %v2120_v63 }
0x111b   :  { %4013 = vmatprep.subr.bf16.mxu1 %v2129_v61 }
0x111c   :  { %2086 = vmatpush1.bf16.msra.mxu0 %v5418_v57 }
0x111e   :  { %4014 = vmatpush3.bf16.msra.mxu1 %v2121_v40 }
0x111f   :  { %2104 = vmatmul.mubr.bf16.vlgmr.msra.gmra.mrb[28].mxu0 %v2059_v51 }
0x11f2   :  { %v2105_v60 = vpop.f32.mrb[28].mxu0 }
0x11f3   :  { %v2106_v57 = vadd.f32 %v2105_v60, %v2064_v0  ;;  %v2107_v25 = vpop.f32.mrb[29].mxu0 }
0x11f4   :  { %v2108_v45 = vadd.f32 %v2107_v25, %v2068_v31  ;;  %v2109_v49 = vpop.f32.mrb[30].mxu0 }
0x11f5   :  { %v2112_v32 = vmax.f32 %v2106_v57, 0.0  ;;  %v2110_v53 = vpop.f32.mrb[31].mxu0 }
0x11f6   :  { %v2113_v50 = vmax.f32 %v2108_v45, 0.0 }
0x11f7   :  { %v2131_v48 = vpack.c.bf16 %v2112_v32, %v2112_v32 }
0x11f8   :  { %v2132_v27 = vpack.c.bf16 %v2113_v50, %v2113_v50 }
0x11fa   :  { %2169 = vmatprep.mubr.bf16.mxu1 %v2132_v27 }
0x11fb   :  { %2170 = vmatmul.mubr.bf16.vlgmr.msra.gmra.mrb[40].mxu1 %v2131_v48 }
0x12ce   :  { %v4015_v47 = vpop.f32.mrb[40].mxu1 }
0x12cf   :  { %v4016_v42 = vpop.f32.mrb[41].mxu1 }
0x12d0   :  { %v4017_v43 = vadd.f32 %v4016_v42, %v4015_v47  ;;  %v4018_v1 = vpop.f32.mrb[42].mxu1 }
0x12d1   :  { %v4019_v24 = vpop.f32.mrb[43].mxu1 }
0x12d2   :  { %v2172_v26 = vadd.f32 %v4017_v43, %v3824_v62 }
0x12d4   :  { %v2177_v28 = vadd.f32 %v2172_v26, %v5478_v44 }
0x12d6   :  { %2180 = vadd.xlane.f32.xlu0 %v2177_v28 }
0x1363   :  { %v2181_v33 = vpop.xlane.xlu0 %2180 }
0x1364   :  { %v2182_v56 = vmul.f32 0.0078125, %v2181_v33 }
0x1366   :  { %v2183_v29 = vsub.f32 %v2177_v28, %v2182_v56 }
0x1368   :  { %v2184_v34 = vmul.f32 %v2183_v29, %v2183_v29 }
0x136a   :  { %2185 = vadd.xlane.f32.xlu0 %v2184_v34 }
0x13f7   :  { %v2186_v30 = vpop.xlane.xlu0 %2185 }
0x13f8   :  { %v2187_v46 = vmul.f32 0.0078125, %v2186_v30 }
0x13fa   :  { %v2188_v35 = vadd.f32 1e-05, %v2187_v46 }
0x13fc   :  { %4692 = vrsqrt.f32 %v2188_v35 }
0x1406   :  { %v4693_v37 = vpop.eup %4692 }
0x1407   :  { %v2190_v52 = vmul.f32 %v4693_v37, %v2183_v29 }
0x1409   :  { %v2195_v55 = vmul.f32 %v3825_v36, %v2190_v52 }
0x140b   :  { %v2200_v51 = vadd.f32 %v3826_v38, %v2195_v55 }
0x140d   :  { %2201 = vadd.xlane.f32.xlu1 %v2200_v51 }
0x149a   :  { %v2202_v58 = vpop.xlane.xlu1 %2201 }
0x149b   :  { %v2203_v63 = vmul.f32 0.0078125, %v2202_v58 }
0x149d   :  { %v2204_v44 = vsub.f32 %v2200_v51, %v2203_v63 }
0x149f   :  { %v2205_v61 = vmul.f32 %v2204_v44, %v2204_v44 }
0x14a1   :  { %2206 = vadd.xlane.f32.xlu1 %v2205_v61 }
0x152e   :  { %v2207_v40 = vpop.xlane.xlu1 %2206 }
0x152f   :  { %v2208_v41 = vmul.f32 0.0078125, %v2207_v40 }
0x1531   :  { %v2209_v0 = vadd.f32 1e-05, %v2208_v41 }
0x1533   :  { %4694 = vrsqrt.f32 %v2209_v0 }
0x153d   :  { %v4695_v31 = vpop.eup %4694 }
0x153e   :  { %v5505_v60 = vmul.f32 %v4695_v31, %v2204_v44 }
0x153f   :  { %4893 = dma.done.wait [#allocation6], 7168 }
0x1540   :  { %4894 = vsyncadd [#allocation6], 4294960128  ;;  %4328 = vmatprep.subr.bf16.mxu0 %v4911_v2  ;;  %4344 = vmatprep.mubr.msk.bf16.mxu0 %vm4931_vm8, %v4911_v2  ;;  %v5513_v57 = vld [vmem:[#allocation3 + $0x28] sm:$0xff]  ;;  %v5515_v25 = vld [vmem:[#allocation3 + $0x30] sm:$0xff]  ;;  %v2272_v37 = vpack.c.bf16 %v5249_v59, %v5249_v59  ;;  %vm2316_vm11 = vcmask 1040384   ;;  %vm2442_vm12 = vcmask 1041408  }
0x1541   :  { %4348 = vmatprep.subr.bf16.mxu1 %v4911_v2  ;;  %4364 = vmatprep.mubr.msk.bf16.mxu1 %vm4931_vm8, %v4911_v2  ;;  %v5517_v45 = vld [vmem:[#allocation3 + $0x60] sm:$0xff]  ;;  %v5519_v49 = vld [vmem:[#allocation3 + $0x68] sm:$0xff]  ;;  %v5521_v32 = vld [vmem:[#allocation3 + $0x98] sm:$0xff]  ;;  %vm2444_vm13 = vcmask 1042432   ;;  %vm2489_vm14 = vcmask 60416  }
0x1542   :  { %v5523_v53 = vld [vmem:[#allocation3 + $0xa0] sm:$0xff]  ;;  %v5525_v50 = vld [vmem:[#allocation3 + $0xd0] sm:$0xff]  ;;  %v5527_v27 = vld [vmem:[#allocation3 + $0xd8] sm:$0xff] }
0x1543   :  { %v5529_v48 = vld [vmem:[#allocation3 + $0x108] sm:$0xff]  ;;  %v5531_v47 = vld [vmem:[#allocation3 + $0x110] sm:$0xff]  ;;  %v5533_v42 = vld [vmem:[#allocation3 + $0x140] sm:$0xff] }
0x1544   :  { %v5535_v62 = vld [vmem:[#allocation3 + $0x148] sm:$0xff]  ;;  %v5537_v43 = vld [vmem:[#allocation3 + $0x178] sm:$0xff]  ;;  %v5539_v1 = vld [vmem:[#allocation3 + $0x180] sm:$0xff] }
0x1545   :  { %v5541_v24 = vld [vmem:[#allocation3 + $0x1b0] sm:$0xff]  ;;  %v5543_v26 = vld [vmem:[#allocation3 + $0x1b8] sm:$0xff]  ;;  %v2215_v28 = vld [vmem:[#allocation3] sm:$0xff] }
0x1546   :  { %4329 = vmatpush3.bf16.msra.mxu0 %v2215_v28  ;;  %v2216_v33 = vld [vmem:[#allocation3 + $0x38] sm:$0xff]  ;;  %v2217_v56 = vld [vmem:[#allocation3 + $0x70] sm:$0xff]  ;;  %v2218_v29 = vld [vmem:[#allocation3 + $0xa8] sm:$0xff] }
0x1547   :  { %4330 = vmatprep.subr.bf16.mxu0 %v4911_v2  ;;  %v2219_v34 = vld [vmem:[#allocation3 + $0xe0] sm:$0xff]  ;;  %v2220_v30 = vld [vmem:[#allocation3 + $0x118] sm:$0xff]  ;;  %v2221_v46 = vld [vmem:[#allocation3 + $0x150] sm:$0xff] }
0x1548   :  { %v2222_v35 = vld [vmem:[#allocation3 + $0x188] sm:$0xff]  ;;  %v2271_v36 = vld [vmem:[#allocation10 + $0x15] sm:$0x1]  ;;  %v2231_v40 = vld [vmem:[#allocation3 + $0x10] sm:$0xff] }
0x1549   :  { %v2232_v61 = vld [vmem:[#allocation3 + $0x18] sm:$0xff]  ;;  %v2234_v41 = vld [vmem:[#allocation3 + $0x50] sm:$0xff]  ;;  %v2223_v0 = vld [vmem:[#allocation3 + $0x8] sm:$0xff] }
0x154a   :  { %4331 = vmatpush3.bf16.msra.mxu0 %v2216_v33  ;;  %4349 = vmatpush3.bf16.msra.mxu1 %v2223_v0  ;;  %v2233_v31 = vld [vmem:[#allocation3 + $0x48] sm:$0xff]  ;;  %v2224_v28 = vld [vmem:[#allocation3 + $0x40] sm:$0xff]  ;;  %v2229_v0 = vld [vmem:[#allocation3 + $0x158] sm:$0xff] }
0x154b   :  { %4332 = vmatprep.subr.bf16.mxu0 %v4911_v2  ;;  %4350 = vmatprep.subr.bf16.mxu1 %v4911_v2  ;;  %v2236_v33 = vld [vmem:[#allocation3 + $0x88] sm:$0xff] }
0x154e   :  { %4333 = vmatpush3.bf16.msra.mxu0 %v2217_v56  ;;  %4351 = vmatpush3.bf16.msra.mxu1 %v2224_v28  ;;  %v2238_v56 = vld [vmem:[#allocation3 + $0xc0] sm:$0xff]  ;;  %v5566_v28 = vpack.c.bf16 %v5505_v60, %v5505_v60 }
0x154f   :  { %4334 = vmatprep.subr.bf16.mxu0 %v4911_v2  ;;  %4352 = vmatprep.subr.bf16.mxu1 %v4911_v2 }
0x1552   :  { %4335 = vmatpush3.bf16.msra.mxu0 %v2218_v29 }
0x1553   :  { %4336 = vmatprep.subr.bf16.mxu0 %v4911_v2 }
0x1556   :  { %4337 = vmatpush3.bf16.msra.mxu0 %v2219_v34 }
0x1557   :  { %4338 = vmatprep.subr.bf16.mxu0 %v4911_v2 }
0x155a   :  { %4339 = vmatpush3.bf16.msra.mxu0 %v2220_v30 }
0x155b   :  { %4340 = vmatprep.subr.bf16.mxu0 %v4911_v2 }
0x155e   :  { %4341 = vmatpush3.bf16.msra.mxu0 %v2221_v46 }
0x155f   :  { %4342 = vmatprep.subr.bf16.mxu0 %v4911_v2 }
0x1562   :  { %4343 = vmatpush3.bf16.msra.mxu0 %v2222_v35 }
0x1563   :  { %2375 = vmatprep.subr.bf16.mxu0 %v2232_v61  ;;  %v2228_v61 = vld [vmem:[#allocation3 + $0x120] sm:$0xff] }
0x1565   :  { %4345 = vmatmul.mubr.bf16.vlgmr.msra.gmra.mrb[32].mxu0 %v2272_v37  ;;  %v2225_v37 = vld [vmem:[#allocation3 + $0x78] sm:$0xff] }
0x1566   :  { %2407 = vmatprep.mubr.bf16.mxu0 %v4933_v23  ;;  %2376 = vmatpush1.bf16.msra.mxu0 %v2231_v40  ;;  %v2243_v40 = vld [vmem:[#allocation3 + $0x160] sm:$0xff] }
0x1567   :  { %2377 = vmatprep.subr.bf16.mxu0 %v2234_v41  ;;  %4353 = vmatpush3.bf16.msra.mxu1 %v2225_v37  ;;  %v2246_v41 = vld [vmem:[#allocation3 + $0x1a0] sm:$0xff] }
0x1568   :  { %4354 = vmatprep.subr.bf16.mxu1 %v4911_v2 }
0x156a   :  { %2378 = vmatpush1.bf16.msra.mxu0 %v2233_v31  ;;  %v2245_v31 = vld [vmem:[#allocation3 + $0x198] sm:$0xff] }
0x156b   :  { %2379 = vmatprep.subr.bf16.mxu0 %v2236_v33  ;;  %v2230_v33 = vld [vmem:[#allocation3 + $0x190] sm:$0xff] }
0x1638   :  { %v2307_v52 = vpop.f32.mrb[32].mxu0 }
0x1639   :  { %v2308_v38 = vadd.f32 %v2307_v52, %v2271_v36  ;;  %v4346_v55 = vpop.f32.mrb[33].mxu0  ;;  %v2237_v36 = vld [vmem:[#allocation3 + $0xb8] sm:$0xff] }
0x163a   :  { %v2310_v51 = vpop.f32.mrb[34].mxu0  ;;  %v2240_v52 = vld [vmem:[#allocation3 + $0xf8] sm:$0xff]  ;;  %v2239_v55 = vld [vmem:[#allocation3 + $0xf0] sm:$0xff] }
0x163b   :  { %v2313_v58 = vadd.f32 %v2308_v38, %v5249_v59  ;;  %v4347_v63 = vpop.f32.mrb[35].mxu0  ;;  %v2235_v59 = vld [vmem:[#allocation3 + $0x80] sm:$0xff]  ;;  %v2226_v38 = vld [vmem:[#allocation3 + $0xb0] sm:$0xff] }
0x163c   :  { %2380 = vmatpush1.bf16.msra.mxu0 %v2235_v59  ;;  %4355 = vmatpush3.bf16.msra.mxu1 %v2226_v38  ;;  %v2242_v51 = vld [vmem:[#allocation3 + $0x130] sm:$0xff]  ;;  %v2241_v63 = vld [vmem:[#allocation3 + $0x128] sm:$0xff]  ;;  %v3827_v38 = vld [vmem:[#allocation10 + $0x19] ss:$0 sm:$0xff] }
0x163d   :  { %v2317_v44 = vsel %vm2316_vm11, %v2313_v58, 0.0  ;;  %2381 = vmatprep.subr.bf16.mxu0 %v2238_v56  ;;  %4356 = vmatprep.subr.bf16.mxu1 %v4911_v2 }
0x163e   :  { %2318 = vadd.xlane.f32.xlu0 %v2317_v44  ;;  %v2244_v44 = vld [vmem:[#allocation3 + $0x168] sm:$0xff] }
0x1640   :  { %2382 = vmatpush1.bf16.msra.mxu0 %v2237_v36 }
0x1641   :  { %2383 = vmatprep.subr.bf16.mxu0 %v2240_v52 }
0x1644   :  { %2384 = vmatpush1.bf16.msra.mxu0 %v2239_v55 }
0x1645   :  { %2385 = vmatprep.subr.bf16.mxu0 %v2242_v51 }
0x1648   :  { %2386 = vmatpush1.bf16.msra.mxu0 %v2241_v63 }
0x1649   :  { %2387 = vmatprep.subr.bf16.mxu0 %v2244_v44 }
0x164c   :  { %2388 = vmatpush1.bf16.msra.mxu0 %v2243_v40  ;;  %v2332_v40 = vld [vmem:[#allocation10 + $0x18] sm:$0x1] }
0x164d   :  { %2389 = vmatprep.subr.bf16.mxu0 %v2246_v41 }
0x1650   :  { %2390 = vmatpush1.bf16.msra.mxu0 %v2245_v31 }
0x1651   :  { %4398 = vmatprep.subr.bf16.mxu0 %v4911_v2 }
0x1653   :  { %2408 = vmatmul.mubr.bf16.vlgmr.msra.gmra.mrb[36].mxu0 %v5566_v28 }
0x1654   :  { %4414 = vmatprep.mubr.msk.bf16.mxu0 %vm4931_vm8, %v4911_v2 }
0x16cb   :  { %v2319_v29 = vpop.xlane.xlu0 %2318 }
0x16cc   :  { %v2320_v34 = vmul.f32 0.0078125, %v2319_v29 }
0x16ce   :  { %v2321_v30 = vsub.f32 %v2313_v58, %v2320_v34  ;;  %v2227_v58 = vld [vmem:[#allocation3 + $0xe8] sm:$0xff]  ;;  %v2314_v34 = vld [vmem:[#allocation10 + $0x16] sm:$0x1] }
0x16cf   :  { %4357 = vmatpush3.bf16.msra.mxu1 %v2227_v58 }
0x16d0   :  { %v2322_v46 = vmul.f32 %v2321_v30, %v2321_v30  ;;  %4358 = vmatprep.subr.bf16.mxu1 %v4911_v2 }
0x16d2   :  { %v2323_v35 = vsel %vm2316_vm11, %v2322_v46, 0.0 }
0x16d3   :  { %2324 = vadd.xlane.f32.xlu0 %v2323_v35  ;;  %4359 = vmatpush3.bf16.msra.mxu1 %v2228_v61  ;;  %v2315_v35 = vld [vmem:[#allocation10 + $0x17] sm:$0x1] }
0x16d4   :  { %4360 = vmatprep.subr.bf16.mxu1 %v4911_v2 }
0x16d7   :  { %4361 = vmatpush3.bf16.msra.mxu1 %v2229_v0 }
0x16d8   :  { %4362 = vmatprep.subr.bf16.mxu1 %v4911_v2 }
0x16db   :  { %4363 = vmatpush3.bf16.msra.mxu1 %v2230_v33 }
0x16dc   :  { %4368 = vmatprep.subr.bf16.mxu1 %v4911_v2 }
0x1726   :  { %v2409_v55 = vpop.f32.mrb[36].mxu0 }
0x1727   :  { %v2421_v51 = vadd.f32 %v3827_v38, %v2409_v55  ;;  %v2411_v58 = vpop.f32.mrb[37].mxu0 }
0x1728   :  { %v2413_v63 = vpop.f32.mrb[38].mxu0 }
0x1729   :  { %v2447_v44 = vpack.c.bf16 %v2421_v51, %v2421_v51  ;;  %v2414_v61 = vpop.f32.mrb[39].mxu0 }
0x1760   :  { %v2325_v59 = vpop.xlane.xlu0 %2324 }
0x1761   :  { %v2326_v56 = vmul.f32 0.0078125, %v2325_v59 }
0x1763   :  { %v2327_v29 = vadd.f32 1e-05, %v2326_v56 }
0x1765   :  { %4696 = vrsqrt.f32 %v2327_v29 }
0x176f   :  { %v4697_v60 = vpop.eup %4696 }
0x1770   :  { %v2329_v46 = vmul.f32 %v4697_v60, %v2321_v30  ;;  %v3828_v30 = vld [vmem:[#allocation10 + $0x1a] ss:$0 sm:$0xff] }
0x1771   :  { %v5581_v41 = vadd.f32 %v3828_v30, %v2411_v58 }
0x1772   :  { %v2330_v37 = vmul.f32 %v2329_v46, %v2314_v34 }
0x1773   :  { %v2504_v46 = vmul.f32 %v5033_v4, %v5581_v41 }
0x1774   :  { %v5574_v36 = vadd.f32 %v2330_v37, %v2315_v35 }
0x1775   :  { %v2505_v58 = vpack.c.bf16 %v2504_v46, %v2504_v46 }
0x1776   :  { %v2333_v52 = vpack.c.bf16 %v5574_v36, %v5574_v36 }
0x1777   :  { %v2513_v61 = vsel %vm1125_vm9, %v2505_v58, 0  ;;  %v2253_v58 = vld [vmem:[#allocation3 + $0x170] sm:$0xff] }
0x1778   :  { %4365 = vmatmul.mubr.bf16.vlgmr.msra.gmra.mrb[44].mxu1 %v2333_v52 }
0x1779   :  { %4370 = vmatprep.mubr.msk.bf16.mxu1 %vm4931_vm8, %v4911_v2  ;;  %4369 = vmatpush3.bf16.xpose.msra.mxu1 %v2447_v44 }
0x177a   :  { %4374 = vmatprep.subr.bf16.mxu1 %v4911_v2 }
0x184b   :  { %v2368_v0 = vpop.f32.mrb[44].mxu1 }
0x184c   :  { %v2369_v31 = vadd.f32 %v2368_v0, %v2332_v40  ;;  %v4366_v33 = vpop.f32.mrb[45].mxu1 }
0x184d   :  { %v2371_v59 = vpop.f32.mrb[46].mxu1 }
0x184e   :  { %v2429_v56 = vmul.f32 %v5033_v4, %v2369_v31  ;;  %v2430_v29 = vmul.f32 %v5040_v6, %v2369_v31  ;;  %v2431_v60 = vmul.f32 %v5036_v5, %v2369_v31  ;;  %v4367_v34 = vpop.f32.mrb[47].mxu1  ;;  %v2428_v35 = vmul.f32 %v5029_v3, %v2369_v31 }
0x1850   :  { %v2433_v37 = vrot.slane %v2429_v56, 7  ;;  %v2436_v52 = vrot.slane %v2430_v29, 6  ;;  %v2439_v38 = vrot.slane %v2431_v60, 5 }
0x1852   :  { %v2441_v55 = vsel %vm2316_vm11, %v2428_v35, %v2433_v37  ;;  %v2247_v35 = vld [vmem:[#allocation3 + $0x20] sm:$0xff]  ;;  %v2248_v37 = vld [vmem:[#allocation3 + $0x58] sm:$0xff] }
0x1853   :  { %v2443_v51 = vsel %vm2442_vm12, %v2441_v55, %v2436_v52  ;;  %4399 = vmatpush3.bf16.msra.mxu0 %v2247_v35  ;;  %v2249_v52 = vld [vmem:[#allocation3 + $0x90] sm:$0xff]  ;;  %v2251_v55 = vld [vmem:[#allocation3 + $0x100] sm:$0xff] }
0x1854   :  { %v2445_v63 = vsel %vm2444_vm13, %v2443_v51, %v2439_v38  ;;  %4400 = vmatprep.subr.bf16.mxu0 %v4911_v2  ;;  %v2250_v38 = vld [vmem:[#allocation3 + $0xc8] sm:$0xff]  ;;  %v2252_v51 = vld [vmem:[#allocation3 + $0x138] sm:$0xff] }
0x1855   :  { %v2446_v44 = vpack.c.bf16 %v2445_v63, %v2445_v63 }
0x1857   :  { %4371 = vmatmul.mubr.bf16.vlgmr.msra.gmra.mrb[48].mxu1 %v2446_v44  ;;  %4401 = vmatpush3.bf16.msra.mxu0 %v2248_v37  ;;  %v2502_v44 = vmul.f32 %v5029_v3, %v5581_v41 }
0x1858   :  { %4375 = vmatpush3.bf16.msra.mxu1 %v2513_v61  ;;  %4376 = vmatprep.mubr.msk.bf16.mxu1 %vm4931_vm8, %v4911_v2 }
0x1859   :  { %4380 = vmatprep.subr.bf16.mxu1 %v4911_v2  ;;  %4402 = vmatprep.subr.bf16.mxu0 %v4911_v2 }
0x185b   :  { %4403 = vmatpush3.bf16.msra.mxu0 %v2249_v52  ;;  %v2254_v52 = vld [vmem:[#allocation3 + $0x1a8] sm:$0xff] }
0x185c   :  { %4404 = vmatprep.subr.bf16.mxu0 %v4911_v2 }
0x185f   :  { %4405 = vmatpush3.bf16.msra.mxu0 %v2250_v38 }
0x1860   :  { %4406 = vmatprep.subr.bf16.mxu0 %v4911_v2 }
0x1863   :  { %4407 = vmatpush3.bf16.msra.mxu0 %v2251_v55 }
0x1864   :  { %4408 = vmatprep.subr.bf16.mxu0 %v4911_v2 }
0x1867   :  { %4409 = vmatpush3.bf16.msra.mxu0 %v2252_v51 }
0x1868   :  { %4410 = vmatprep.subr.bf16.mxu0 %v4911_v2 }
0x186b   :  { %4411 = vmatpush3.bf16.msra.mxu0 %v2253_v58 }
0x186c   :  { %4412 = vmatprep.subr.bf16.mxu0 %v4911_v2 }
0x186f   :  { %4413 = vmatpush3.bf16.msra.mxu0 %v2254_v52 }
0x192a   :  { %v2482_v30 = vpop.f32.mrb[48].mxu1 }
0x192b   :  { %v2488_v40 = vmul.f32 0.17677669, %v2482_v30  ;;  %v4372_v0 = vpop.f32.mrb[49].mxu1 }
0x192c   :  { %v2485_v31 = vpop.f32.mrb[50].mxu1  ;;  %v2503_v0 = vpack.c.bf16 %v2502_v44, %v2502_v44 }
0x192d   :  { %v4373_v33 = vpop.f32.mrb[51].mxu1  ;;  %v2490_v59 = vsel %vm2489_vm14, %v2488_v40, -inf }
0x192e   :  { %2491 = vmax.xlane.f32.xlu1 %v2490_v59  ;;  %v2558_v33 = vsel %vm1125_vm9, %v2503_v0, 0  ;;  %v2600_v59 = vmul.f32 %v5040_v6, %v5581_v41 }
0x19bb   :  { %v2492_v56 = vpop.xlane.xlu1 %2491 }
0x19bc   :  { %v2493_v29 = vsub.f32 %v2488_v40, %v2492_v56  ;;  %v2601_v56 = vpack.c.bf16 %v2600_v59, %v2600_v59 }
0x19be   :  { %v2494_v60 = vmul.f32 1.442695, %v2493_v29  ;;  %v2608_v29 = vsel %vm1125_vm9, %v2601_v56, 0 }
0x19c0   :  { %4698 = vpow2.f32 %v2494_v60  ;;  %v2651_v60 = vmul.f32 %v5036_v5, %v5581_v41 }
0x19ca   :  { %v4699_v34 = vpop.eup %4698 }
0x19cb   :  { %v2496_v46 = vsel %vm2489_vm14, %v4699_v34, 0.0 }
0x19cc   :  { %2497 = vadd.xlane.f32.xlu1 %v2496_v46 }
0x1a59   :  { %v2498_v63 = vpop.xlane.xlu1 %2497 }
0x1a5a   :  { %4700 = vrcp.f32 %v2498_v63  ;;  %v2701_v63 = vld [vmem:[#allocation10 + $0x1b] sm:$0x1] }
0x1a64   :  { %v4701_v61 = vpop.eup %4700 }
0x1a65   :  { %v2500_v30 = vmul.f32 %v4701_v61, %v4699_v34  ;;  %v2652_v34 = vpack.c.bf16 %v2651_v60, %v2651_v60 }
0x1a67   :  { %v2501_v40 = vpack.c.bf16 %v2500_v30, %v2500_v30  ;;  %v2658_v35 = vsel %vm1125_vm9, %v2652_v34, 0 }
0x1a69   :  { %v2507_v31 = vshrl.u32 %v2501_v40, 16  ;;  %v2603_v46 = vrot.slane %v2501_v40, 1 }
0x1a6b   :  { %4377 = vmatmul.mubr.msk.bf16.vlgmr.msra.gmra.mrb[52].mxu1 %vm1071_vm10, %v2507_v31  ;;  %v2653_v37 = vrot.slane %v2507_v31, 1 }
0x1a6c   :  { %4381 = vmatpush3.bf16.msra.mxu1 %v2558_v33  ;;  %4382 = vmatprep.mubr.msk.bf16.mxu1 %vm4931_vm8, %v4911_v2 }
0x1a6d   :  { %4386 = vmatprep.subr.bf16.mxu1 %v4911_v2 }
0x1a77   :  { %4383 = vmatmul.mubr.msk.bf16.vlgmr.msra.gmra.mrb[52].mxu1 %vm1071_vm10, %v2501_v40 }
0x1a78   :  { %4387 = vmatpush3.bf16.msra.mxu1 %v2608_v29  ;;  %4388 = vmatprep.mubr.msk.bf16.mxu1 %vm4931_vm8, %v4911_v2 }
0x1a79   :  { %4392 = vmatprep.subr.bf16.mxu1 %v4911_v2 }
0x1a83   :  { %4389 = vmatmul.mubr.msk.bf16.vlgmr.msra.gmra.mrb[52].mxu1 %vm1071_vm10, %v2603_v46 }
0x1a84   :  { %4393 = vmatpush3.bf16.msra.mxu1 %v2658_v35  ;;  %4394 = vmatprep.mubr.msk.bf16.mxu1 %vm4931_vm8, %v4911_v2 }
0x1a85   :  { %2777 = vmatprep.subr.bf16.mxu1 %v5515_v25 }
0x1a8f   :  { %4395 = vmatmul.mubr.msk.bf16.vlgmr.msra.gmra.mrb[52].mxu1 %vm1071_vm10, %v2653_v37 }
0x1a90   :  { %2809 = vmatprep.mubr.bf16.mxu1 %v4933_v23 }
0x1b62   :  { %v2694_v38 = vpop.f32.mrb[52].mxu1 }
0x1b63   :  { %v2702_v55 = vpack.c.bf16 %v2694_v38, %v2694_v38  ;;  %v4396_v51 = vpop.f32.mrb[53].mxu1  ;;  %v2744_v38 = vld [vmem:[#allocation10 + $0x1c] sm:$0x1] }
0x1b64   :  { %v2697_v58 = vpop.f32.mrb[54].mxu1  ;;  %v2745_v51 = vld [vmem:[#allocation10 + $0x1d] sm:$0x1] }
0x1b65   :  { %v4397_v41 = vpop.f32.mrb[55].mxu1  ;;  %4415 = vmatmul.mubr.bf16.vlgmr.msra.gmra.mrb[40].mxu0 %v2702_v55 }
0x1c38   :  { %v2737_v44 = vpop.f32.mrb[40].mxu0 }
0x1c39   :  { %v2738_v61 = vadd.f32 %v2737_v44, %v2701_v63  ;;  %v4416_v30 = vpop.f32.mrb[41].mxu0 }
0x1c3a   :  { %v2740_v40 = vpop.f32.mrb[42].mxu0 }
0x1c3b   :  { %v4417_v0 = vpop.f32.mrb[43].mxu0  ;;  %v2743_v33 = vadd.f32 %v2738_v61, %v5574_v36 }
0x1c3d   :  { %v2746_v31 = vsel %vm2316_vm11, %v2743_v33, 0.0 }
0x1c3e   :  { %2747 = vadd.xlane.f32.xlu0 %v2746_v31 }
0x1ccb   :  { %v2748_v59 = vpop.xlane.xlu0 %2747 }
0x1ccc   :  { %v2749_v56 = vmul.f32 0.0078125, %v2748_v59 }
0x1cce   :  { %v2750_v29 = vsub.f32 %v2743_v33, %v2749_v56 }
0x1cd0   :  { %v2751_v60 = vmul.f32 %v2750_v29, %v2750_v29 }
0x1cd2   :  { %v2752_v34 = vsel %vm2316_vm11, %v2751_v60, 0.0 }
0x1cd3   :  { %2753 = vadd.xlane.f32.xlu1 %v2752_v34 }
0x1d60   :  { %v2754_v46 = vpop.xlane.xlu1 %2753 }
0x1d61   :  { %v2755_v35 = vmul.f32 0.0078125, %v2754_v46 }
0x1d63   :  { %v2756_v37 = vadd.f32 1e-05, %v2755_v35 }
0x1d65   :  { %4702 = vrsqrt.f32 %v2756_v37 }
0x1d6f   :  { %v4703_v52 = vpop.eup %4702 }
0x1d70   :  { %v2758_v55 = vmul.f32 %v4703_v52, %v2750_v29 }
0x1d72   :  { %v2759_v58 = vmul.f32 %v2758_v55, %v2744_v38 }
0x1d74   :  { %v5629_v36 = vadd.f32 %v2759_v58, %v2745_v51 }
0x1d75   :  { %4895 = dma.done.wait [#allocation7 + $0x2], 2048 }
0x1d76   :  { %4896 = vsyncadd [#allocation7 + $0x2], 4294965248  ;;  %2778 = vmatpush1.bf16.msra.mxu1 %v5513_v57  ;;  %v2828_v41 = vld [vmem:[#allocation4 + $0x140] sm:$0xff]  ;;  %v2829_v44 = vld [vmem:[#allocation4 + $0x148] sm:$0xff] }
0x1d77   :  { %2779 = vmatprep.subr.bf16.mxu1 %v5519_v49  ;;  %v2820_v63 = vld [vmem:[#allocation4 + $0x100] sm:$0xff]  ;;  %4058 = vmatprep.subr.bf16.mxu0 %v2828_v41  ;;  %v2821_v25 = vld [vmem:[#allocation4 + $0x108] sm:$0xff]  ;;  %v2830_v61 = vld [vmem:[#allocation4 + $0x150] sm:$0xff] }
0x1d78   :  { %4059 = vmatpush3.bf16.msra.mxu0 %v2820_v63  ;;  %v2822_v57 = vld [vmem:[#allocation4 + $0x110] sm:$0xff]  ;;  %v2823_v49 = vld [vmem:[#allocation4 + $0x118] sm:$0xff]  ;;  %v2836_v37 = vld [vmem:[#allocation10 + $0x1e] sm:$0x1] }
0x1d79   :  { %4060 = vmatprep.subr.bf16.mxu0 %v2829_v44 }
0x1d7a   :  { %2780 = vmatpush1.bf16.msra.mxu1 %v5517_v45  ;;  %v2831_v45 = vld [vmem:[#allocation4 + $0x158] sm:$0xff] }
0x1d7b   :  { %2781 = vmatprep.subr.bf16.mxu1 %v5523_v53  ;;  %v2824_v53 = vld [vmem:[#allocation4 + $0x120] sm:$0xff] }
0x1d7c   :  { %4061 = vmatpush3.bf16.msra.mxu0 %v2821_v25 }
0x1d7d   :  { %4062 = vmatprep.subr.bf16.mxu0 %v2830_v61 }
0x1d7e   :  { %2782 = vmatpush1.bf16.msra.mxu1 %v5521_v32  ;;  %v2832_v32 = vld [vmem:[#allocation4 + $0x160] sm:$0xff] }
0x1d7f   :  { %2783 = vmatprep.subr.bf16.mxu1 %v5527_v27  ;;  %v2825_v27 = vld [vmem:[#allocation4 + $0x128] sm:$0xff] }
0x1d80   :  { %4063 = vmatpush3.bf16.msra.mxu0 %v2822_v57 }
0x1d81   :  { %4064 = vmatprep.subr.bf16.mxu0 %v2831_v45 }
0x1d82   :  { %2784 = vmatpush1.bf16.msra.mxu1 %v5525_v50  ;;  %v2833_v50 = vld [vmem:[#allocation4 + $0x168] sm:$0xff] }
0x1d83   :  { %2785 = vmatprep.subr.bf16.mxu1 %v5531_v47  ;;  %v2834_v47 = vld [vmem:[#allocation4 + $0x170] sm:$0xff] }
0x1d84   :  { %4065 = vmatpush3.bf16.msra.mxu0 %v2823_v49 }
0x1d85   :  { %4066 = vmatprep.subr.bf16.mxu0 %v2832_v32 }
0x1d86   :  { %2786 = vmatpush1.bf16.msra.mxu1 %v5529_v48  ;;  %v2765_v48 = vpack.c.bf16 %v5629_v36, %v5629_v36 }
0x1d87   :  { %2787 = vmatprep.subr.bf16.mxu1 %v5535_v62  ;;  %v2835_v62 = vld [vmem:[#allocation4 + $0x178] sm:$0xff] }
0x1d88   :  { %4067 = vmatpush3.bf16.msra.mxu0 %v2824_v53 }
0x1d89   :  { %4068 = vmatprep.subr.bf16.mxu0 %v2833_v50  ;;  %v2880_v50 = vld [vmem:[#allocation10 + $0x1f] sm:$0x1] }
0x1d8a   :  { %2788 = vmatpush1.bf16.msra.mxu1 %v5533_v42  ;;  %v2826_v42 = vld [vmem:[#allocation4 + $0x130] sm:$0xff] }
0x1d8b   :  { %2789 = vmatprep.subr.bf16.mxu1 %v5539_v1  ;;  %v2827_v1 = vld [vmem:[#allocation4 + $0x138] sm:$0xff] }
0x1d8c   :  { %4069 = vmatpush3.bf16.msra.mxu0 %v2825_v27 }
0x1d8d   :  { %4070 = vmatprep.subr.bf16.mxu0 %v2834_v47 }
0x1d8e   :  { %2790 = vmatpush1.bf16.msra.mxu1 %v5537_v43  ;;  %v3833_v43 = vld [vmem:[%s5836_s3 + $0x2] ss:$4 sm:$0x3] }
0x1d8f   :  { %2791 = vmatprep.subr.bf16.mxu1 %v5543_v26  ;;  %v2770_v26 = vrot.slane %v3833_v43, %v5374_v39  ;;  %v2774_v30 = vrot.slane %v3833_v43, %v5379_v54 }
0x1d90   :  { %4071 = vmatpush3.bf16.msra.mxu0 %v2826_v42 }
0x1d91   :  { %4072 = vmatprep.subr.bf16.mxu0 %v2835_v62 }
0x1d92   :  { %2792 = vmatpush1.bf16.msra.mxu1 %v5541_v24 }
0x1d94   :  { %4073 = vmatpush3.bf16.msra.mxu0 %v2827_v1 }
0x1d95   :  { %2810 = vmatmul.mubr.bf16.vlgmr.msra.gmra.mrb[56].mxu1 %v2765_v48  ;;  %v2881_v48 = vld [vmem:[#allocation10 + $0x20] sm:$0x1] }
0x1e68   :  { %v2811_v40 = vpop.f32.mrb[56].mxu1 }
0x1e69   :  { %v2812_v24 = vadd.f32 %v2811_v40, %v2770_v26  ;;  %v2813_v0 = vpop.f32.mrb[57].mxu1 }
0x1e6a   :  { %v2814_v33 = vadd.f32 %v2813_v0, %v2774_v30  ;;  %v2815_v31 = vpop.f32.mrb[58].mxu1 }
0x1e6b   :  { %v2818_v59 = vmax.f32 %v2812_v24, 0.0  ;;  %v2816_v56 = vpop.f32.mrb[59].mxu1 }
0x1e6c   :  { %v2819_v29 = vmax.f32 %v2814_v33, 0.0 }
0x1e6d   :  { %v2837_v34 = vpack.c.bf16 %v2818_v59, %v2818_v59 }
0x1e6e   :  { %v2838_v60 = vpack.c.bf16 %v2819_v29, %v2819_v29 }
0x1e70   :  { %2871 = vmatprep.mubr.bf16.mxu0 %v2838_v60 }
0x1e71   :  { %2872 = vmatmul.mubr.bf16.vlgmr.msra.gmra.mrb[44].mxu0 %v2837_v34 }
0x1f44   :  { %v4074_v46 = vpop.f32.mrb[44].mxu0 }
0x1f45   :  { %v4075_v35 = vpop.f32.mrb[45].mxu0 }
0x1f46   :  { %v4076_v52 = vadd.f32 %v4075_v35, %v4074_v46  ;;  %v4077_v38 = vpop.f32.mrb[46].mxu0 }
0x1f47   :  { %v4078_v55 = vpop.f32.mrb[47].mxu0 }
0x1f48   :  { %v2874_v51 = vadd.f32 %v4076_v52, %v2836_v37 }
0x1f4a   :  { %v2879_v58 = vadd.f32 %v2874_v51, %v5629_v36 }
0x1f4c   :  { %v2882_v41 = vsel %vm2316_vm11, %v2879_v58, 0.0 }
0x1f4d   :  { %2883 = vadd.xlane.f32.xlu0 %v2882_v41 }
0x1fda   :  { %v2884_v63 = vpop.xlane.xlu0 %2883 }
0x1fdb   :  { %v2885_v44 = vmul.f32 0.0078125, %v2884_v63 }
0x1fdd   :  { %v2886_v25 = vsub.f32 %v2879_v58, %v2885_v44 }
0x1fdf   :  { %v2887_v61 = vmul.f32 %v2886_v25, %v2886_v25 }
0x1fe1   :  { %v2888_v57 = vsel %vm2316_vm11, %v2887_v61, 0.0 }
0x1fe2   :  { %2889 = vadd.xlane.f32.xlu0 %v2888_v57 }
0x206f   :  { %v2890_v45 = vpop.xlane.xlu0 %2889 }
0x2070   :  { %v2891_v49 = vmul.f32 0.0078125, %v2890_v45 }
0x2072   :  { %v2892_v32 = vadd.f32 1e-05, %v2891_v49 }
0x2074   :  { %4704 = vrsqrt.f32 %v2892_v32 }
0x207e   :  { %v4705_v53 = vpop.eup %4704 }
0x207f   :  { %v2894_v27 = vmul.f32 %v4705_v53, %v2886_v25 }
0x2081   :  { %v2895_v47 = vmul.f32 %v2894_v27, %v2880_v50 }
0x2083   :  { %v2896_v36 = vadd.f32 %v2895_v47, %v2881_v48 }
0x2084   :  { %4897 = dma.done.wait [#allocation6 + $0x1], 7168 }
0x2085   :  { %4898 = vsyncadd [#allocation6 + $0x1], 4294960128  ;;  %4418 = vmatprep.subr.bf16.mxu1 %v4911_v2  ;;  %4434 = vmatprep.mubr.msk.bf16.mxu1 %vm4931_vm8, %v4911_v2  ;;  %v5664_v42 = vld [vmem:[#allocation3 + $0x1e8] sm:$0xff]  ;;  %v5666_v62 = vld [vmem:[#allocation3 + $0x1f0] sm:$0xff]  ;;  %v2956_v41 = vpack.c.bf16 %v2896_v36, %v2896_v36 }
0x2086   :  { %4438 = vmatprep.subr.bf16.mxu0 %v4911_v2  ;;  %4454 = vmatprep.mubr.msk.bf16.mxu0 %vm4931_vm8, %v4911_v2  ;;  %v5668_v1 = vld [vmem:[#allocation3 + $0x220] sm:$0xff]  ;;  %v5670_v43 = vld [vmem:[#allocation3 + $0x228] sm:$0xff]  ;;  %v5672_v26 = vld [vmem:[#allocation3 + $0x258] sm:$0xff] }
0x2087   :  { %v5674_v30 = vld [vmem:[#allocation3 + $0x260] sm:$0xff]  ;;  %v5676_v40 = vld [vmem:[#allocation3 + $0x290] sm:$0xff]  ;;  %v5678_v24 = vld [vmem:[#allocation3 + $0x298] sm:$0xff] }
0x2088   :  { %v5680_v0 = vld [vmem:[#allocation3 + $0x2c8] sm:$0xff]  ;;  %v5682_v33 = vld [vmem:[#allocation3 + $0x2d0] sm:$0xff]  ;;  %v5684_v31 = vld [vmem:[#allocation3 + $0x300] sm:$0xff] }
0x2089   :  { %v5686_v59 = vld [vmem:[#allocation3 + $0x308] sm:$0xff]  ;;  %v5688_v56 = vld [vmem:[#allocation3 + $0x338] sm:$0xff]  ;;  %v5690_v29 = vld [vmem:[#allocation3 + $0x340] sm:$0xff] }
0x208a   :  { %v5692_v60 = vld [vmem:[#allocation3 + $0x370] sm:$0xff]  ;;  %v5694_v34 = vld [vmem:[#allocation3 + $0x378] sm:$0xff]  ;;  %v2899_v46 = vld [vmem:[#allocation3 + $0x1c0] sm:$0xff] }
0x208b   :  { %4419 = vmatpush3.bf16.msra.mxu1 %v2899_v46  ;;  %v2900_v35 = vld [vmem:[#allocation3 + $0x1f8] sm:$0xff]  ;;  %v2901_v37 = vld [vmem:[#allocation3 + $0x230] sm:$0xff]  ;;  %v2902_v52 = vld [vmem:[#allocation3 + $0x268] sm:$0xff] }
0x208c   :  { %4420 = vmatprep.subr.bf16.mxu1 %v4911_v2  ;;  %v2903_v38 = vld [vmem:[#allocation3 + $0x2a0] sm:$0xff]  ;;  %v2904_v55 = vld [vmem:[#allocation3 + $0x2d8] sm:$0xff]  ;;  %v2905_v51 = vld [vmem:[#allocation3 + $0x310] sm:$0xff] }
0x208d   :  { %v2906_v58 = vld [vmem:[#allocation3 + $0x348] sm:$0xff]  ;;  %v2916_v53 = vld [vmem:[#allocation3 + $0x1d8] sm:$0xff]  ;;  %v2915_v50 = vld [vmem:[#allocation3 + $0x1d0] sm:$0xff] }
0x208e   :  { %v2955_v63 = vld [vmem:[#allocation10 + $0x21] sm:$0x1]  ;;  %v2918_v27 = vld [vmem:[#allocation3 + $0x210] sm:$0xff]  ;;  %v2908_v46 = vld [vmem:[#allocation3 + $0x200] sm:$0xff] }
0x208f   :  { %4421 = vmatpush3.bf16.msra.mxu1 %v2900_v35  ;;  %v2907_v48 = vld [vmem:[#allocation3 + $0x1c8] sm:$0xff] }
0x2090   :  { %4422 = vmatprep.subr.bf16.mxu1 %v4911_v2  ;;  %4439 = vmatpush3.bf16.msra.mxu0 %v2907_v48  ;;  %v2917_v47 = vld [vmem:[#allocation3 + $0x208] sm:$0xff]  ;;  %v2913_v48 = vld [vmem:[#allocation3 + $0x318] sm:$0xff] }
0x2091   :  { %4440 = vmatprep.subr.bf16.mxu0 %v4911_v2  ;;  %v2920_v35 = vld [vmem:[#allocation3 + $0x248] sm:$0xff] }
0x2093   :  { %4423 = vmatpush3.bf16.msra.mxu1 %v2901_v37  ;;  %v2922_v37 = vld [vmem:[#allocation3 + $0x280] sm:$0xff] }
0x2094   :  { %4424 = vmatprep.subr.bf16.mxu1 %v4911_v2  ;;  %4441 = vmatpush3.bf16.msra.mxu0 %v2908_v46  ;;  %v2914_v46 = vld [vmem:[#allocation3 + $0x350] sm:$0xff] }
0x2095   :  { %4442 = vmatprep.subr.bf16.mxu0 %v4911_v2 }
0x2097   :  { %4425 = vmatpush3.bf16.msra.mxu1 %v2902_v52 }
0x2098   :  { %4426 = vmatprep.subr.bf16.mxu1 %v4911_v2 }
0x209b   :  { %4427 = vmatpush3.bf16.msra.mxu1 %v2903_v38 }
0x209c   :  { %4428 = vmatprep.subr.bf16.mxu1 %v4911_v2 }
0x209f   :  { %4429 = vmatpush3.bf16.msra.mxu1 %v2904_v55 }
0x20a0   :  { %4430 = vmatprep.subr.bf16.mxu1 %v4911_v2 }
0x20a3   :  { %4431 = vmatpush3.bf16.msra.mxu1 %v2905_v51 }
0x20a4   :  { %4432 = vmatprep.subr.bf16.mxu1 %v4911_v2 }
0x20a7   :  { %4433 = vmatpush3.bf16.msra.mxu1 %v2906_v58 }
0x20a8   :  { %3057 = vmatprep.subr.bf16.mxu1 %v2916_v53  ;;  %v2912_v53 = vld [vmem:[#allocation3 + $0x2e0] sm:$0xff] }
0x20aa   :  { %4435 = vmatmul.mubr.bf16.vlgmr.msra.gmra.mrb[60].mxu1 %v2956_v41  ;;  %v2909_v41 = vld [vmem:[#allocation3 + $0x238] sm:$0xff] }
0x20ab   :  { %3089 = vmatprep.mubr.bf16.mxu1 %v4933_v23  ;;  %3058 = vmatpush1.bf16.msra.mxu1 %v2915_v50  ;;  %v2927_v50 = vld [vmem:[#allocation3 + $0x320] sm:$0xff] }
0x20ac   :  { %3059 = vmatprep.subr.bf16.mxu1 %v2918_v27  ;;  %4443 = vmatpush3.bf16.msra.mxu0 %v2909_v41  ;;  %v2930_v27 = vld [vmem:[#allocation3 + $0x360] sm:$0xff] }
0x20ad   :  { %4444 = vmatprep.subr.bf16.mxu0 %v4911_v2 }
0x20af   :  { %3060 = vmatpush1.bf16.msra.mxu1 %v2917_v47  ;;  %v2929_v47 = vld [vmem:[#allocation3 + $0x358] sm:$0xff] }
0x20b0   :  { %3061 = vmatprep.subr.bf16.mxu1 %v2920_v35 }
0x217d   :  { %v2991_v44 = vpop.f32.mrb[60].mxu1 }
0x217e   :  { %v2992_v25 = vadd.f32 %v2991_v44, %v2955_v63  ;;  %v4436_v61 = vpop.f32.mrb[61].mxu1  ;;  %v2921_v63 = vld [vmem:[#allocation3 + $0x278] sm:$0xff] }
0x217f   :  { %v2994_v57 = vpop.f32.mrb[62].mxu1  ;;  %v2924_v44 = vld [vmem:[#allocation3 + $0x2b8] sm:$0xff]  ;;  %v2923_v61 = vld [vmem:[#allocation3 + $0x2b0] sm:$0xff] }
0x2180   :  { %v2997_v45 = vadd.f32 %v2992_v25, %v2896_v36  ;;  %v4437_v49 = vpop.f32.mrb[63].mxu1  ;;  %v2919_v36 = vld [vmem:[#allocation3 + $0x240] sm:$0xff]  ;;  %v2910_v25 = vld [vmem:[#allocation3 + $0x270] sm:$0xff] }
0x2181   :  { %3062 = vmatpush1.bf16.msra.mxu1 %v2919_v36  ;;  %4445 = vmatpush3.bf16.msra.mxu0 %v2910_v25  ;;  %v2926_v57 = vld [vmem:[#allocation3 + $0x2f0] sm:$0xff]  ;;  %v2925_v49 = vld [vmem:[#allocation3 + $0x2e8] sm:$0xff] }
0x2182   :  { %v3000_v32 = vsel %vm2316_vm11, %v2997_v45, 0.0  ;;  %3063 = vmatprep.subr.bf16.mxu1 %v2922_v37  ;;  %4446 = vmatprep.subr.bf16.mxu0 %v4911_v2 }
0x2183   :  { %3001 = vadd.xlane.f32.xlu0 %v3000_v32  ;;  %v2928_v32 = vld [vmem:[#allocation3 + $0x328] sm:$0xff] }
0x2185   :  { %3064 = vmatpush1.bf16.msra.mxu1 %v2921_v63 }
0x2186   :  { %3065 = vmatprep.subr.bf16.mxu1 %v2924_v44  ;;  %v3834_v44 = vld [vmem:[#allocation10 + $0x25] ss:$0 sm:$0xff] }
0x2189   :  { %3066 = vmatpush1.bf16.msra.mxu1 %v2923_v61 }
0x218a   :  { %3067 = vmatprep.subr.bf16.mxu1 %v2926_v57 }
0x218d   :  { %3068 = vmatpush1.bf16.msra.mxu1 %v2925_v49 }
0x218e   :  { %3069 = vmatprep.subr.bf16.mxu1 %v2928_v32 }
0x2191   :  { %3070 = vmatpush1.bf16.msra.mxu1 %v2927_v50 }
0x2192   :  { %3071 = vmatprep.subr.bf16.mxu1 %v2930_v27 }
0x2195   :  { %3072 = vmatpush1.bf16.msra.mxu1 %v2929_v47 }
0x2196   :  { %4488 = vmatprep.subr.bf16.mxu1 %v4911_v2 }
0x2198   :  { %3090 = vmatmul.mubr.bf16.vlgmr.msra.gmra.mrb[64].mxu1 %v5566_v28 }
0x2199   :  { %4504 = vmatprep.mubr.msk.bf16.mxu1 %vm4931_vm8, %v4911_v2 }
0x2210   :  { %v3002_v52 = vpop.xlane.xlu0 %3001 }
0x2211   :  { %v3003_v38 = vmul.f32 0.0078125, %v3002_v52 }
0x2213   :  { %v3004_v55 = vsub.f32 %v2997_v45, %v3003_v38  ;;  %v2911_v45 = vld [vmem:[#allocation3 + $0x2a8] sm:$0xff] }
0x2214   :  { %4447 = vmatpush3.bf16.msra.mxu0 %v2911_v45  ;;  %v2998_v38 = vld [vmem:[#allocation10 + $0x22] sm:$0x1] }
0x2215   :  { %v3005_v51 = vmul.f32 %v3004_v55, %v3004_v55  ;;  %4448 = vmatprep.subr.bf16.mxu0 %v4911_v2 }
0x2217   :  { %v3006_v58 = vsel %vm2316_vm11, %v3005_v51, 0.0 }
0x2218   :  { %3007 = vadd.xlane.f32.xlu0 %v3006_v58  ;;  %4449 = vmatpush3.bf16.msra.mxu0 %v2912_v53  ;;  %v2999_v58 = vld [vmem:[#allocation10 + $0x23] sm:$0x1]  ;;  %v3015_v53 = vld [vmem:[#allocation10 + $0x24] sm:$0x1] }
0x2219   :  { %4450 = vmatprep.subr.bf16.mxu0 %v4911_v2 }
0x221c   :  { %4451 = vmatpush3.bf16.msra.mxu0 %v2913_v48 }
0x221d   :  { %4452 = vmatprep.subr.bf16.mxu0 %v4911_v2 }
0x2220   :  { %4453 = vmatpush3.bf16.msra.mxu0 %v2914_v46 }
0x2221   :  { %4458 = vmatprep.subr.bf16.mxu0 %v4911_v2 }
0x226b   :  { %v3091_v25 = vpop.f32.mrb[64].mxu1 }
0x226c   :  { %v3103_v61 = vadd.f32 %v3834_v44, %v3091_v25  ;;  %v3093_v57 = vpop.f32.mrb[65].mxu1 }
0x226d   :  { %v3095_v45 = vpop.f32.mrb[66].mxu1 }
0x226e   :  { %v3127_v49 = vpack.c.bf16 %v3103_v61, %v3103_v61  ;;  %v3096_v32 = vpop.f32.mrb[67].mxu1 }
0x22a5   :  { %v3008_v35 = vpop.xlane.xlu0 %3007 }
0x22a6   :  { %v3009_v36 = vmul.f32 0.0078125, %v3008_v35 }
0x22a8   :  { %v3010_v37 = vadd.f32 1e-05, %v3009_v36 }
0x22aa   :  { %4706 = vrsqrt.f32 %v3010_v37 }
0x22b4   :  { %v4707_v52 = vpop.eup %4706 }
0x22b5   :  { %v3012_v51 = vmul.f32 %v4707_v52, %v3004_v55  ;;  %v3835_v55 = vld [vmem:[#allocation10 + $0x26] ss:$0 sm:$0xff] }
0x22b6   :  { %v5725_v50 = vadd.f32 %v3835_v55, %v3093_v57 }
0x22b7   :  { %v3013_v41 = vmul.f32 %v3012_v51, %v2998_v38 }
0x22b8   :  { %v3183_v38 = vmul.f32 %v5033_v4, %v5725_v50 }
0x22b9   :  { %v5718_v63 = vadd.f32 %v3013_v41, %v2999_v58 }
0x22ba   :  { %v3184_v61 = vpack.c.bf16 %v3183_v38, %v3183_v38  ;;  %v2932_v38 = vld [vmem:[#allocation3 + $0x218] sm:$0xff] }
0x22bb   :  { %v3016_v28 = vpack.c.bf16 %v5718_v63, %v5718_v63 }
0x22bd   :  { %4455 = vmatmul.mubr.bf16.vlgmr.msra.gmra.mrb[48].mxu0 %v3016_v28 }
0x22be   :  { %4460 = vmatprep.mubr.msk.bf16.mxu0 %vm4931_vm8, %v4911_v2  ;;  %4459 = vmatpush3.bf16.xpose.msra.mxu0 %v3127_v49  ;;  %v3192_v49 = vsel %vm1125_vm9, %v3184_v61, 0  ;;  %v3181_v61 = vmul.f32 %v5029_v3, %v5725_v50 }
0x22bf   :  { %4464 = vmatprep.subr.bf16.mxu0 %v4911_v2 }
0x2390   :  { %v3051_v27 = vpop.f32.mrb[48].mxu0 }
0x2391   :  { %v3052_v48 = vadd.f32 %v3051_v27, %v3015_v53  ;;  %v4456_v47 = vpop.f32.mrb[49].mxu0 }
0x2392   :  { %v3054_v46 = vpop.f32.mrb[50].mxu0 }
0x2393   :  { %v3111_v35 = vmul.f32 %v5033_v4, %v3052_v48  ;;  %v3112_v36 = vmul.f32 %v5040_v6, %v3052_v48  ;;  %v3113_v37 = vmul.f32 %v5036_v5, %v3052_v48  ;;  %v4457_v52 = vpop.f32.mrb[51].mxu0  ;;  %v3110_v51 = vmul.f32 %v5029_v3, %v3052_v48 }
0x2394   :  { %v2931_v52 = vld [vmem:[#allocation3 + $0x1e0] sm:$0xff] }
0x2395   :  { %v3115_v58 = vrot.slane %v3111_v35, 7  ;;  %v3118_v41 = vrot.slane %v3112_v36, 6  ;;  %v3121_v28 = vrot.slane %v3113_v37, 5  ;;  %4489 = vmatpush3.bf16.msra.mxu1 %v2931_v52 }
0x2396   :  { %4490 = vmatprep.subr.bf16.mxu1 %v4911_v2 }
0x2397   :  { %v3123_v44 = vsel %vm2316_vm11, %v3110_v51, %v3115_v58  ;;  %v2933_v51 = vld [vmem:[#allocation3 + $0x250] sm:$0xff]  ;;  %v2934_v58 = vld [vmem:[#allocation3 + $0x288] sm:$0xff] }
0x2398   :  { %v3124_v25 = vsel %vm2442_vm12, %v3123_v44, %v3118_v41  ;;  %v2935_v41 = vld [vmem:[#allocation3 + $0x2c0] sm:$0xff]  ;;  %v2937_v44 = vld [vmem:[#allocation3 + $0x330] sm:$0xff] }
0x2399   :  { %v3125_v57 = vsel %vm2444_vm13, %v3124_v25, %v3121_v28  ;;  %4491 = vmatpush3.bf16.msra.mxu1 %v2932_v38  ;;  %v2936_v28 = vld [vmem:[#allocation3 + $0x2f8] sm:$0xff] }
0x239a   :  { %v3126_v45 = vpack.c.bf16 %v3125_v57, %v3125_v57  ;;  %4492 = vmatprep.subr.bf16.mxu1 %v4911_v2 }
0x239c   :  { %4461 = vmatmul.mubr.bf16.vlgmr.msra.gmra.mrb[52].mxu0 %v3126_v45 }
0x239d   :  { %4465 = vmatpush3.bf16.msra.mxu0 %v3192_v49  ;;  %4466 = vmatprep.mubr.msk.bf16.mxu0 %vm4931_vm8, %v4911_v2 }
0x239e   :  { %4470 = vmatprep.subr.bf16.mxu0 %v4911_v2  ;;  %4493 = vmatpush3.bf16.msra.mxu1 %v2933_v51 }
0x239f   :  { %4494 = vmatprep.subr.bf16.mxu1 %v4911_v2 }
0x23a2   :  { %4495 = vmatpush3.bf16.msra.mxu1 %v2934_v58 }
0x23a3   :  { %4496 = vmatprep.subr.bf16.mxu1 %v4911_v2 }
0x23a6   :  { %4497 = vmatpush3.bf16.msra.mxu1 %v2935_v41 }
0x23a7   :  { %4498 = vmatprep.subr.bf16.mxu1 %v4911_v2 }
0x23aa   :  { %4499 = vmatpush3.bf16.msra.mxu1 %v2936_v28 }
0x23ab   :  { %4500 = vmatprep.subr.bf16.mxu1 %v4911_v2 }
0x23ae   :  { %4501 = vmatpush3.bf16.msra.mxu1 %v2937_v44 }
0x23af   :  { %4502 = vmatprep.subr.bf16.mxu1 %v4911_v2 }
0x246f   :  { %v3162_v4 = vpop.f32.mrb[52].mxu0 }
0x2470   :  { %v3168_v32 = vmul.f32 0.17677669, %v3162_v4  ;;  %v4462_v55 = vpop.f32.mrb[53].mxu0  ;;  %v3182_v4 = vpack.c.bf16 %v3181_v61, %v3181_v61 }
0x2471   :  { %v3165_v53 = vpop.f32.mrb[54].mxu0 }
0x2472   :  { %v4463_v27 = vpop.f32.mrb[55].mxu0  ;;  %v3169_v48 = vsel %vm2489_vm14, %v3168_v32, -inf  ;;  %v3237_v55 = vsel %vm1125_vm9, %v3182_v4, 0  ;;  %v3279_v53 = vmul.f32 %v5040_v6, %v5725_v50 }
0x2473   :  { %3170 = vmax.xlane.f32.xlu1 %v3169_v48  ;;  %v3330_v48 = vmul.f32 %v5036_v5, %v5725_v50  ;;  %v3380_v50 = vld [vmem:[#allocation10 + $0x27] sm:$0x1] }
0x2474   :  { %v3280_v27 = vpack.c.bf16 %v3279_v53, %v3279_v53 }
0x2476   :  { %v3287_v3 = vsel %vm1125_vm9, %v3280_v27, 0 }
0x2500   :  { %v3171_v47 = vpop.xlane.xlu1 %3170 }
0x2501   :  { %v3172_v46 = vsub.f32 %v3168_v32, %v3171_v47  ;;  %v3331_v47 = vpack.c.bf16 %v3330_v48, %v3330_v48 }
0x2503   :  { %v3173_v35 = vmul.f32 1.442695, %v3172_v46  ;;  %v3337_v6 = vsel %vm1125_vm9, %v3331_v47, 0  ;;  %v3423_v47 = vld [vmem:[#allocation10 + $0x28] sm:$0x1] }
0x2505   :  { %4708 = vpow2.f32 %v3173_v35 }
0x250f   :  { %v4709_v36 = vpop.eup %4708 }
0x2510   :  { %v3175_v37 = vsel %vm2489_vm14, %v4709_v36, 0.0 }
0x2511   :  { %3176 = vadd.xlane.f32.xlu1 %v3175_v37 }
0x259e   :  { %v3177_v25 = vpop.xlane.xlu1 %3176 }
0x259f   :  { %4710 = vrcp.f32 %v3177_v25 }
0x25a9   :  { %v4711_v57 = vpop.eup %4710 }
0x25aa   :  { %v3179_v45 = vmul.f32 %v4711_v57, %v4709_v36  ;;  %v2938_v36 = vld [vmem:[#allocation3 + $0x368] sm:$0xff] }
0x25ab   :  { %4503 = vmatpush3.bf16.msra.mxu1 %v2938_v36 }
0x25ac   :  { %v3180_v49 = vpack.c.bf16 %v3179_v45, %v3179_v45 }
0x25ae   :  { %v3186_v32 = vshrl.u32 %v3180_v49, 16  ;;  %v3282_v46 = vrot.slane %v3180_v49, 1 }
0x25b0   :  { %4467 = vmatmul.mubr.msk.bf16.vlgmr.msra.gmra.mrb[56].mxu0 %vm1071_vm10, %v3186_v32  ;;  %v3332_v35 = vrot.slane %v3186_v32, 1 }
0x25b1   :  { %4471 = vmatpush3.bf16.msra.mxu0 %v3237_v55  ;;  %4472 = vmatprep.mubr.msk.bf16.mxu0 %vm4931_vm8, %v4911_v2 }
0x25b2   :  { %4476 = vmatprep.subr.bf16.mxu0 %v4911_v2 }
0x25bc   :  { %4473 = vmatmul.mubr.msk.bf16.vlgmr.msra.gmra.mrb[56].mxu0 %vm1071_vm10, %v3180_v49 }
0x25bd   :  { %4477 = vmatpush3.bf16.msra.mxu0 %v3287_v3  ;;  %4478 = vmatprep.mubr.msk.bf16.mxu0 %vm4931_vm8, %v4911_v2 }
0x25be   :  { %4482 = vmatprep.subr.bf16.mxu0 %v4911_v2 }
0x25c8   :  { %4479 = vmatmul.mubr.msk.bf16.vlgmr.msra.gmra.mrb[56].mxu0 %vm1071_vm10, %v3282_v46 }
0x25c9   :  { %4483 = vmatpush3.bf16.msra.mxu0 %v3337_v6  ;;  %4484 = vmatprep.mubr.msk.bf16.mxu0 %vm4931_vm8, %v4911_v2  ;;  %v3424_v6 = vld [vmem:[#allocation10 + $0x29] sm:$0x1] }
0x25ca   :  { %3456 = vmatprep.subr.bf16.mxu0 %v5666_v62 }
0x25d4   :  { %4485 = vmatmul.mubr.msk.bf16.vlgmr.msra.gmra.mrb[56].mxu0 %vm1071_vm10, %v3332_v35 }
0x25d5   :  { %3488 = vmatprep.mubr.bf16.mxu0 %v4933_v23 }
0x26a7   :  { %v3373_v37 = vpop.f32.mrb[56].mxu0 }
0x26a8   :  { %v3381_v52 = vpack.c.bf16 %v3373_v37, %v3373_v37  ;;  %v4486_v38 = vpop.f32.mrb[57].mxu0 }
0x26a9   :  { %v3376_v51 = vpop.f32.mrb[58].mxu0 }
0x26aa   :  { %v4487_v5 = vpop.f32.mrb[59].mxu0  ;;  %4505 = vmatmul.mubr.bf16.vlgmr.msra.gmra.mrb[68].mxu1 %v3381_v52 }
0x277d   :  { %v3416_v58 = vpop.f32.mrb[68].mxu1 }
0x277e   :  { %v3417_v41 = vadd.f32 %v3416_v58, %v3380_v50  ;;  %v4506_v28 = vpop.f32.mrb[69].mxu1 }
0x277f   :  { %v3419_v44 = vpop.f32.mrb[70].mxu1 }
0x2780   :  { %v4507_v25 = vpop.f32.mrb[71].mxu1  ;;  %v3422_v61 = vadd.f32 %v3417_v41, %v5718_v63 }
0x2782   :  { %v3425_v57 = vsel %vm2316_vm11, %v3422_v61, 0.0 }
0x2783   :  { %3426 = vadd.xlane.f32.xlu0 %v3425_v57 }
0x2810   :  { %v3427_v45 = vpop.xlane.xlu0 %3426 }
0x2811   :  { %v3428_v49 = vmul.f32 0.0078125, %v3427_v45 }
0x2813   :  { %v3429_v4 = vsub.f32 %v3422_v61, %v3428_v49 }
0x2815   :  { %v3430_v32 = vmul.f32 %v3429_v4, %v3429_v4 }
0x2817   :  { %v3431_v55 = vsel %vm2316_vm11, %v3430_v32, 0.0 }
0x2818   :  { %3432 = vadd.xlane.f32.xlu1 %v3431_v55 }
0x28a5   :  { %v3433_v53 = vpop.xlane.xlu1 %3432 }
0x28a6   :  { %v3434_v27 = vmul.f32 0.0078125, %v3433_v53 }
0x28a8   :  { %v3435_v3 = vadd.f32 1e-05, %v3434_v27 }
0x28aa   :  { %4712 = vrsqrt.f32 %v3435_v3 }
0x28b4   :  { %v4713_v48 = vpop.eup %4712 }
0x28b5   :  { %v3437_v46 = vmul.f32 %v4713_v48, %v3429_v4 }
0x28b7   :  { %v3438_v35 = vmul.f32 %v3437_v46, %v3423_v47 }
0x28b9   :  { %v5773_v63 = vadd.f32 %v3438_v35, %v3424_v6 }
0x28ba   :  { %4899 = dma.done.wait [#allocation7 + $0x3], 2048 }
0x28bb   :  { %4900 = vsyncadd [#allocation7 + $0x3], 4294965248  ;;  %3457 = vmatpush1.bf16.msra.mxu0 %v5664_v42  ;;  %v3507_v36 = vld [vmem:[#allocation4 + $0x1c0] sm:$0xff]  ;;  %v3508_v52 = vld [vmem:[#allocation4 + $0x1c8] sm:$0xff] }
0x28bc   :  { %3458 = vmatprep.subr.bf16.mxu0 %v5670_v43  ;;  %v3499_v37 = vld [vmem:[#allocation4 + $0x180] sm:$0xff]  ;;  %4117 = vmatprep.subr.bf16.mxu1 %v3507_v36  ;;  %v3500_v23 = vld [vmem:[#allocation4 + $0x188] sm:$0xff]  ;;  %v3509_v62 = vld [vmem:[#allocation4 + $0x1d0] sm:$0xff] }
0x28bd   :  { %4118 = vmatpush3.bf16.msra.mxu1 %v3499_v37  ;;  %v3501_v42 = vld [vmem:[#allocation4 + $0x190] sm:$0xff]  ;;  %v3502_v43 = vld [vmem:[#allocation4 + $0x198] sm:$0xff] }
0x28be   :  { %4119 = vmatprep.subr.bf16.mxu1 %v3508_v52  ;;  %v3515_v49 = vld [vmem:[#allocation10 + $0x2a] sm:$0x1]  ;;  %v3559_v52 = vld [vmem:[#allocation10 + $0x2b] sm:$0x1] }
0x28bf   :  { %3459 = vmatpush1.bf16.msra.mxu0 %v5668_v1  ;;  %v3510_v1 = vld [vmem:[#allocation4 + $0x1d8] sm:$0xff] }
0x28c0   :  { %3460 = vmatprep.subr.bf16.mxu0 %v5674_v30  ;;  %v3503_v30 = vld [vmem:[#allocation4 + $0x1a0] sm:$0xff] }
0x28c1   :  { %4120 = vmatpush3.bf16.msra.mxu1 %v3500_v23 }
0x28c2   :  { %4121 = vmatprep.subr.bf16.mxu1 %v3509_v62  ;;  %v3560_v62 = vld [vmem:[#allocation10 + $0x2c] sm:$0x1] }
0x28c3   :  { %3461 = vmatpush1.bf16.msra.mxu0 %v5672_v26  ;;  %v3511_v26 = vld [vmem:[#allocation4 + $0x1e0] sm:$0xff] }
0x28c4   :  { %3462 = vmatprep.subr.bf16.mxu0 %v5678_v24  ;;  %v3504_v24 = vld [vmem:[#allocation4 + $0x1a8] sm:$0xff] }
0x28c5   :  { %4122 = vmatpush3.bf16.msra.mxu1 %v3501_v42 }
0x28c6   :  { %4123 = vmatprep.subr.bf16.mxu1 %v3510_v1 }
0x28c7   :  { %3463 = vmatpush1.bf16.msra.mxu0 %v5676_v40  ;;  %v3512_v40 = vld [vmem:[#allocation4 + $0x1e8] sm:$0xff] }
0x28c8   :  { %3464 = vmatprep.subr.bf16.mxu0 %v5682_v33  ;;  %v3513_v33 = vld [vmem:[#allocation4 + $0x1f0] sm:$0xff] }
0x28c9   :  { %4124 = vmatpush3.bf16.msra.mxu1 %v3502_v43  ;;  %v3841_v43 = vcombine.low %v5178_v7, %v5180_v8  ;;  %v3844_v8 = vcombine.low %v5190_v13, %v5192_v14 }
0x28ca   :  { %4125 = vmatprep.subr.bf16.mxu1 %v3511_v26  ;;  %v3842_v26 = vcombine.low %v5182_v9, %v5184_v10  ;;  %v3845_v9 = vcombine.low %v5194_v15, %v5196_v16  ;;  %v3846_v10 = vcombine.low %v5198_v17, %v5200_v18 }
0x28cb   :  { %3465 = vmatpush1.bf16.msra.mxu0 %v5680_v0  ;;  %v3444_v0 = vpack.c.bf16 %v5773_v63, %v5773_v63 }
0x28cc   :  { %3466 = vmatprep.subr.bf16.mxu0 %v5686_v59  ;;  %v3514_v59 = vld [vmem:[#allocation4 + $0x1f8] sm:$0xff] }
0x28cd   :  { %4126 = vmatpush3.bf16.msra.mxu1 %v3503_v30  ;;  %v3843_v30 = vcombine.low %v5186_v11, %v5188_v12  ;;  %v3847_v11 = vcombine.low %v5202_v19, %v5204_v20  ;;  %v3848_v12 = vcombine.low %v5206_v21, %v5208_v22 }
0x28ce   :  { %4127 = vmatprep.subr.bf16.mxu1 %v3512_v40 }
0x28cf   :  { %3467 = vmatpush1.bf16.msra.mxu0 %v5684_v31  ;;  %v3505_v31 = vld [vmem:[#allocation4 + $0x1b0] sm:$0xff] }
0x28d0   :  { %3468 = vmatprep.subr.bf16.mxu0 %v5690_v29  ;;  %v3840_v29 = vld [vmem:[%s5836_s3 + $0x3] ss:$4 sm:$0x3] }
0x28d1   :  { %4128 = vmatpush3.bf16.msra.mxu1 %v3504_v24 }
0x28d2   :  { %4129 = vmatprep.subr.bf16.mxu1 %v3513_v33 }
0x28d3   :  { %3469 = vmatpush1.bf16.msra.mxu0 %v5688_v56  ;;  %v3506_v56 = vld [vmem:[#allocation4 + $0x1b8] sm:$0xff] }
0x28d4   :  { %3470 = vmatprep.subr.bf16.mxu0 %v5694_v34  ;;  %v3453_v34 = vrot.slane %v3840_v29, %v5379_v54 }
0x28d5   :  { %4130 = vmatpush3.bf16.msra.mxu1 %v3505_v31  ;;  %v3589_v31 = vld [vmem:[#allocation10 + $0x2] sm:$0x1] }
0x28d6   :  { %4131 = vmatprep.subr.bf16.mxu1 %v3514_v59 }
0x28d7   :  { %3471 = vmatpush1.bf16.msra.mxu0 %v5692_v60  ;;  %v3449_v60 = vrot.slane %v3840_v29, %v5374_v39 }
0x28d8   :  { %4508 = vmatprep.subr.bf16.mxu0 %v4911_v2 }
0x28d9   :  { %4132 = vmatpush3.bf16.msra.mxu1 %v3506_v56 }
0x28da   :  { %3489 = vmatmul.mubr.bf16.vlgmr.msra.gmra.mrb[60].mxu0 %v3444_v0 }
0x28db   :  { %4524 = vmatprep.mubr.msk.bf16.mxu0 %vm4931_vm8, %v4911_v2  ;;  %4509 = vmatpush3.bf16.msra.mxu0 %v3841_v43 }
0x28dc   :  { %4510 = vmatprep.subr.bf16.mxu0 %v4911_v2 }
0x28df   :  { %4511 = vmatpush3.bf16.msra.mxu0 %v3842_v26 }
0x28e0   :  { %4512 = vmatprep.subr.bf16.mxu0 %v4911_v2 }
0x28e3   :  { %4513 = vmatpush3.bf16.msra.mxu0 %v3843_v30 }
0x28e4   :  { %4514 = vmatprep.subr.bf16.mxu0 %v4911_v2 }
0x28e7   :  { %4515 = vmatpush3.bf16.msra.mxu0 %v3844_v8 }
0x28e8   :  { %4516 = vmatprep.subr.bf16.mxu0 %v4911_v2 }
0x28eb   :  { %4517 = vmatpush3.bf16.msra.mxu0 %v3845_v9 }
0x28ec   :  { %4518 = vmatprep.subr.bf16.mxu0 %v4911_v2 }
0x28ef   :  { %4519 = vmatpush3.bf16.msra.mxu0 %v3846_v10 }
0x28f0   :  { %4520 = vmatprep.subr.bf16.mxu0 %v4911_v2 }
0x28f3   :  { %4521 = vmatpush3.bf16.msra.mxu0 %v3847_v11 }
0x28f4   :  { %4522 = vmatprep.subr.bf16.mxu0 %v4911_v2 }
0x28f7   :  { %4523 = vmatpush3.bf16.msra.mxu0 %v3848_v12 }
0x29ad   :  { %v3490_v38 = vpop.f32.mrb[60].mxu0 }
0x29ae   :  { %v3491_v51 = vadd.f32 %v3490_v38, %v3449_v60  ;;  %v3492_v5 = vpop.f32.mrb[61].mxu0 }
0x29af   :  { %v3493_v50 = vadd.f32 %v3492_v5, %v3453_v34  ;;  %v3494_v58 = vpop.f32.mrb[62].mxu0 }
0x29b0   :  { %v3497_v41 = vmax.f32 %v3491_v51, 0.0  ;;  %v3495_v28 = vpop.f32.mrb[63].mxu0 }
0x29b1   :  { %v3498_v44 = vmax.f32 %v3493_v50, 0.0 }
0x29b2   :  { %v3516_v61 = vpack.c.bf16 %v3497_v41, %v3497_v41 }
0x29b3   :  { %v3517_v25 = vpack.c.bf16 %v3498_v44, %v3498_v44 }
0x29b5   :  { %3550 = vmatprep.mubr.bf16.mxu1 %v3517_v25 }
0x29b6   :  { %3551 = vmatmul.mubr.bf16.vlgmr.msra.gmra.mrb[72].mxu1 %v3516_v61 }
0x2a89   :  { %v4133_v57 = vpop.f32.mrb[72].mxu1 }
0x2a8a   :  { %v4134_v45 = vpop.f32.mrb[73].mxu1 }
0x2a8b   :  { %v4135_v4 = vadd.f32 %v4134_v45, %v4133_v57  ;;  %v4136_v32 = vpop.f32.mrb[74].mxu1 }
0x2a8c   :  { %v4137_v39 = vpop.f32.mrb[75].mxu1 }
0x2a8d   :  { %v3553_v55 = vadd.f32 %v4135_v4, %v3515_v49 }
0x2a8f   :  { %v3558_v54 = vadd.f32 %v3553_v55, %v5773_v63 }
0x2a91   :  { %v3561_v53 = vsel %vm2316_vm11, %v3558_v54, 0.0 }
0x2a92   :  { %3562 = vadd.xlane.f32.xlu0 %v3561_v53 }
0x2b1f   :  { %v3563_v27 = vpop.xlane.xlu0 %3562 }
0x2b20   :  { %v3564_v3 = vmul.f32 0.0078125, %v3563_v27 }
0x2b22   :  { %v3565_v48 = vsub.f32 %v3558_v54, %v3564_v3 }
0x2b24   :  { %v3566_v47 = vmul.f32 %v3565_v48, %v3565_v48 }
0x2b26   :  { %v3567_v46 = vsel %vm2316_vm11, %v3566_v47, 0.0 }
0x2b27   :  { %3568 = vadd.xlane.f32.xlu0 %v3567_v46 }
0x2bb4   :  { %v3569_v6 = vpop.xlane.xlu0 %3568 }
0x2bb5   :  { %v3570_v35 = vmul.f32 0.0078125, %v3569_v6 }
0x2bb7   :  { %v3571_v36 = vadd.f32 1e-05, %v3570_v35 }
0x2bb9   :  { %4714 = vrsqrt.f32 %v3571_v36 }
0x2bc3   :  { %v4715_v37 = vpop.eup %4714 }
0x2bc4   :  { %v3573_v23 = vmul.f32 %v4715_v37, %v3565_v48 }
0x2bc6   :  { %v3574_v42 = vmul.f32 %v3573_v23, %v3559_v52 }
0x2bc8   :  { %v3575_v63 = vadd.f32 %v3574_v42, %v3560_v62 }
0x2bca   :  { %v3576_v1 = vsel %vm2316_vm11, %v3575_v63, 0.0 }
0x2bcb   :  { %3577 = vadd.xlane.f32.xlu1 %v3576_v1 }
0x2c58   :  { %v3578_v40 = vpop.xlane.xlu1 %3577 }
0x2c59   :  { %v3579_v24 = vmul.f32 0.0078125, %v3578_v40 }
0x2c5b   :  { %v3580_v0 = vsub.f32 %v3575_v63, %v3579_v24 }
0x2c5d   :  { %v3581_v33 = vmul.f32 %v3580_v0, %v3580_v0 }
0x2c5f   :  { %v3582_v7 = vsel %vm2316_vm11, %v3581_v33, 0.0 }
0x2c60   :  { %3583 = vadd.xlane.f32.xlu1 %v3582_v7 }
0x2ced   :  { %v3584_v13 = vpop.xlane.xlu1 %3583 }
0x2cee   :  { %v3585_v14 = vmul.f32 0.0078125, %v3584_v13 }
0x2cf0   :  { %v3586_v15 = vadd.f32 1e-05, %v3585_v14 }
0x2cf2   :  { %4716 = vrsqrt.f32 %v3586_v15 }
0x2cfc   :  { %v4717_v16 = vpop.eup %4716 }
0x2cfd   :  { %v3588_v17 = vmul.f32 %v4717_v16, %v3580_v0 }
0x2cff   :  { %v3590_v18 = vpack.c.bf16 %v3588_v17, %v3588_v17 }
0x2d01   :  { %4525 = vmatmul.mubr.bf16.vlgmr.msra.gmra.mrb[64].mxu0 %v3590_v18 }
0x2dd4   :  { %v3673_v59 = vpop.f32.mrb[64].mxu0 }
0x2dd5   :  { %v3674_v19 = vadd.f32 %v3673_v59, %v3589_v31  ;;  %v4526_v20 = vpop.f32.mrb[65].mxu0 }
0x2dd6   :  { %v3676_v56 = vpop.f32.mrb[66].mxu0 }
0x2dd7   :  { %3679 = vst [vmem:[%s5841_s8] sm:$0x1] %v3674_v19  ;;  %v4527_v21 = vpop.f32.mrb[67].mxu0 }
0x2dd8   :  { %3684 = vsyncpa [#allocation9], 1 }
0x2dd9   :  { %3685 = vsyncpa [#allocation11], 1 }
0x2dda   :  { %3686 = vsyncmov [#allocation5] }
0x2ddd   :  { %s3687_s18 = vpop.sfrf %3686 }
0x2dde   :  { %p3849_p5 = scmp.ne.s32.totalorder %s3687_s18, 0 }
0x2de0   :  { %3691 = shalt.err (%p3849_p5)  }
0x2de1   :  { %3693 = vsyncmov [#allocation5 + $0x1] }
0x2de4   :  { %s3694_s25 = vpop.sfrf %3693 }
0x2de5   :  { %p3850_p0 = scmp.ne.s32.totalorder %s3694_s25, 0 }
0x2de7   :  { %3698 = shalt.err (%p3850_p0)  }
0x2de8   :  { %3699 = vsyncmov [#allocation6] }
0x2deb   :  { %s3700_s4 = vpop.sfrf %3699 }
0x2dec   :  { %p3851_p1 = scmp.ne.s32.totalorder %s3700_s4, 0 }
0x2dee   :  { %3704 = shalt.err (%p3851_p1)  }
0x2def   :  { %3706 = vsyncmov [#allocation6 + $0x1] }
0x2df2   :  { %s3707_s2 = vpop.sfrf %3706 }
0x2df3   :  { %p3852_p2 = scmp.ne.s32.totalorder %s3707_s2, 0 }
0x2df5   :  { %3711 = shalt.err (%p3852_p2)  }
0x2df6   :  { %3712 = vsyncmov [#allocation7] }
0x2df9   :  { %s3713_s8 = vpop.sfrf %3712 }
0x2dfa   :  { %p3853_p3 = scmp.ne.s32.totalorder %s3713_s8, 0 }
0x2dfc   :  { %3717 = shalt.err (%p3853_p3)  }
0x2dfd   :  { %3719 = vsyncmov [#allocation7 + $0x1] }
0x2e00   :  { %s3720_s28 = vpop.sfrf %3719 }
0x2e01   :  { %p3854_p12 = scmp.ne.s32.totalorder %s3720_s28, 0 }
0x2e03   :  { %3724 = shalt.err (%p3854_p12)  }
0x2e04   :  { %3726 = vsyncmov [#allocation7 + $0x2] }
0x2e07   :  { %s3727_s10 = vpop.sfrf %3726 }
0x2e08   :  { %p3855_p4 = scmp.ne.s32.totalorder %s3727_s10, 0 }
0x2e0a   :  { %3731 = shalt.err (%p3855_p4)  }
0x2e0b   :  { %3733 = vsyncmov [#allocation7 + $0x3] }
0x2e0e   :  { %s3734_s15 = vpop.sfrf %3733 }
0x2e0f   :  { %p3856_p6 = scmp.ne.s32.totalorder %s3734_s15, 0 }
0x2e11   :  { %3738 = shalt.err (%p3856_p6)  }

</bundles_post_ra>
